<compile_context>
chip_gen: v6e
topology: v6e:2x2x1
jax: 0.10.0
libtpu: 0.0.40
codegen_flags: <defaults>
</compile_context>

<pallas_src>
import jax
import jax.numpy as jnp
from jax.experimental import pallas as pl
from jax.experimental.pallas import tpu as pltpu

NUM_CLASSES = 0

# Original (unfolded) per-layer (in, out) dims, mlp1..mlp10, for parameter init.
LAYER_DIMS = [
    (4, 64),                     # mlp1
    (64, 64),                    # mlp2  -> outputs1
    (64, 64),                    # mlp3
    (64, 128),                   # mlp4
    (128, 1024),                 # mlp5  -> outputs2
    (1088 + NUM_CLASSES, 512),   # mlp6 (concat [outputs2, outputs1])
    (512, 256),                  # mlp7
    (256, 128),                  # mlp8
    (128, 128),                  # mlp9
    (128, 2),                    # mlp10
]

OUT_PAD = 128  # lane-dense padded width of the folded mlp7..mlp10 output


# ----------------------------------------------------------------------------- kernel


def pointnet_kernel(
    x_ref,
    f12, b12, f14, b14,          # folded K=4 layers (f32, VPU path)
    w5, b5,                      # mlp5 (bf16 weights)
    w6a, w6b, b6,                # split mlp6 (bf16 weights)
    f710, b710,                  # folded mlp7..mlp10, padded to 128 lanes (bf16 weights)
    out_ref,
):
    f32 = jnp.float32
    bf16 = jnp.bfloat16

    x = x_ref[...].astype(f32)                              # (tm, 4)

    def k4_affine(w_ref, b_ref):
        # K=4 contraction as VPU broadcast-FMAs (skip a wasteful padded-K MXU pass).
        w = w_ref[...]                                      # f32 (4, dout)
        return (x[:, 0:1] * w[0:1, :]
                + x[:, 1:2] * w[1:2, :]
                + x[:, 2:3] * w[2:3, :]
                + x[:, 3:4] * w[3:4, :]
                + b_ref[...])                               # (tm, dout) f32

    # outputs1 = mlp2(mlp1(x)); h4 = mlp4(mlp3(outputs1)) -- both folded to K=4.
    out1 = k4_affine(f12, b12).astype(bf16)                 # (tm, 64)  bf16
    h4 = k4_affine(f14, b14).astype(bf16)                   # (tm, 128) bf16

    # outputs2 = mlp5(h4): first real MXU pass (f32 accumulation, f32 bias).
    out2 = (jnp.dot(h4, w5[...], preferred_element_type=f32)
            + b5[...]).astype(bf16)                         # (tm, 1024) bf16

    # mlp6 on concat([outputs2, outputs1]) without materializing the 1088-wide buffer.
    h6 = (jnp.dot(out2, w6a[...], preferred_element_type=f32)
          + jnp.dot(out1, w6b[...], preferred_element_type=f32)
          + b6[...]).astype(bf16)                           # (tm, 512) bf16

    # mlp7..mlp10 folded; logits live in lanes [:, :2] of the padded 128-wide output.
    logits = (jnp.dot(h6, f710[...], preferred_element_type=f32)
              + b710[...])                                  # (tm, 128) f32
    out_ref[...] = logits.astype(out_ref.dtype)


# ----------------------------------------------------------------- params & packing


def init_params(key):
    """Deterministic synthetic init; weights stored as (in, out), all f32."""
    params = []
    for i, (din, dout) in enumerate(LAYER_DIMS):
        kw, kb = jax.random.split(jax.random.fold_in(key, i))
        bound = 1.0 / jnp.sqrt(din)
        w = jax.random.uniform(kw, (din, dout), jnp.float32, -bound, bound)
        b = jax.random.uniform(kb, (dout,), jnp.float32, -bound, bound)
        params.append((w, b))
    return params


def _pack_params(params):
    """Fold the affine chain offline in f32; return the kernel's weight/bias list."""
    hp = jax.lax.Precision.HIGHEST
    f32, bf16 = jnp.float32, jnp.bfloat16
    ws = [w.astype(f32) for (w, _) in params]
    bs = [b.astype(f32) for (_, b) in params]

    def fold(w_a, b_a, w_b, b_b):
        # y = (x @ w_a + b_a) @ w_b + b_b  ==  x @ (w_a @ w_b) + (b_a @ w_b + b_b)
        return (jnp.dot(w_a, w_b, precision=hp),
                jnp.dot(b_a, w_b, precision=hp) + b_b)

    # outputs1 path: mlp1-mlp2.
    f12, b12 = fold(ws[0], bs[0], ws[1], bs[1])              # (4, 64)
    # mlp1..mlp4 (input of mlp5).
    f13, b13 = fold(f12, b12, ws[2], bs[2])
    f14, b14 = fold(f13, b13, ws[3], bs[3])                  # (4, 128)
    # mlp5 kept as real MXU work.
    w5, b5 = ws[4], bs[4]                                    # (128, 1024)
    # mlp6 split over concat([outputs2, outputs1]).
    w6a = ws[5][:1024, :]                                    # (1024, 512)
    w6b = ws[5][1024:, :]                                    # (64, 512)
    b6 = bs[5]
    # mlp7..mlp10 folded.
    f78, b78 = fold(ws[6], bs[6], ws[7], bs[7])
    f79, b79 = fold(f78, b78, ws[8], bs[8])
    f710, b710 = fold(f79, b79, ws[9], bs[9])                # (512, 2)

    # Pad the final layer to 128 output lanes -> lane-dense stores.
    f710p = jnp.zeros((512, OUT_PAD), f32).at[:, :2].set(f710)
    b710p = jnp.zeros((OUT_PAD,), f32).at[:2].set(b710)

    def r(b):
        return b.reshape(1, -1).astype(f32)

    return [
        f12.astype(f32), r(b12),           # VPU K=4 path stays f32
        f14.astype(f32), r(b14),
        w5.astype(bf16), r(b5),
        w6a.astype(bf16), w6b.astype(bf16), r(b6),
        f710p.astype(bf16), r(b710p),
    ]


# ----------------------------------------------------------------------------- wrapper


def _cdiv(a, b):
    return (a + b - 1) // b


def _round_up(x, m):
    return (x + m - 1) // m * m


def _select_tiling(rows, tm):
    """Balanced tiling: pick the grid first, then the tile, so padding is bounded."""
    grid = max(_cdiv(rows, tm), 1)
    if rows > 8 and grid < 2:
        grid = 2                      # feed both v7x TensorCores on the "parallel" axis
    if grid > 2 and grid % 2 == 1:
        grid += 1                     # even step count -> balanced across 2 cores
    tm_eff = _round_up(_cdiv(rows, grid), 8)
    rows_p = tm_eff * grid            # pads < 8 zero rows per grid step
    return tm_eff, grid, rows_p


def pointnet_forward(point_cloud, params, tm=2048):
    # tm=2048 amortizes per-step overhead on v5e/v6e and keeps the peak live set
    # (~20-25 MiB activations + ~1.5 MiB single-buffered weights) inside v7x's 64 MiB.
    B, N, Cin = point_cloud.shape
    rows = B * N
    x = point_cloud.reshape(rows, Cin).astype(jnp.float32)

    tm_eff, grid, rows_p = _select_tiling(rows, tm)
    if rows_p != rows:
        x = jnp.pad(x, ((0, rows_p - rows), (0, 0)))  # zero rows; sliced off below

    packed = _pack_params(params)

    def const_spec(shape):
        # Resident weights/biases: constant index_map, single-buffered (never change).
        return pl.BlockSpec(shape, lambda i: (0, 0), pipeline_mode=pl.Buffered(1))

    in_specs = [pl.BlockSpec((tm_eff, Cin), lambda i: (i, 0))]
    in_specs += [const_spec(p.shape) for p in packed]

    # Advisory cost estimate so XLA schedules/overlaps the custom call sensibly.
    macs_per_row = (4 * 64 + 4 * 128 + 128 * 1024
                    + 1024 * 512 + 64 * 512 + 512 * OUT_PAD)
    weight_bytes = sum(int(p.size) * p.dtype.itemsize for p in packed)
    cost = pl.CostEstimate(
        flops=2 * macs_per_row * rows_p,
        transcendentals=0,
        # Weights counted once: constant index_map + Buffered(1) -> fetched once.
        bytes_accessed=rows_p * (Cin * 4 + OUT_PAD * 2) + weight_bytes,
    )

    out = pl.pallas_call(
        pointnet_kernel,
        out_shape=jax.ShapeDtypeStruct((rows_p, OUT_PAD), jnp.bfloat16),
        grid_spec=pltpu.PrefetchScalarGridSpec(
            num_scalar_prefetch=0,
            grid=(grid,),
            in_specs=in_specs,
            out_specs=pl.BlockSpec((tm_eff, OUT_PAD), lambda i: (i, 0)),
        ),
        compiler_params=pltpu.CompilerParams(
            dimension_semantics=("parallel",),
            vmem_limit_bytes=56 << 20,   # below v7x's 64 MiB physical; ample elsewhere
        ),
        cost_estimate=cost,
    )(x, *packed)

    return out[:rows, :2].astype(jnp.float32).reshape(B, N, 2)


# -------------------------------------------------------------------------- references


def pointnet_reference_f32(point_cloud, params):
    """Pure f32 10-layer chain matching the (intended) PyTorch forward."""
    hp = jax.lax.Precision.HIGHEST

    def lin(h, p):
        return jnp.dot(h, p[0], precision=hp) + p[1]

    h = lin(point_cloud.astype(jnp.float32), params[0])
    out1 = lin(h, params[1])
    h = lin(out1, params[2])
    h = lin(h, params[3])
    out2 = lin(h, params[4])
    h = jnp.concatenate([out2, out1], axis=-1)
    for p in params[5:]:
        h = lin(h, p)
    return h


def pointnet_reference_packed(point_cloud, packed):
    """Mirrors the kernel's folded / mixed-precision math exactly (strict check)."""
    f12, b12, f14, b14, w5, b5, w6a, w6b, b6, f710, b710 = packed
    f32, bf16 = jnp.float32, jnp.bfloat16
    hp = jax.lax.Precision.HIGHEST

    x = point_cloud.reshape(-1, point_cloud.shape[-1]).astype(f32)
    out1 = (jnp.dot(x, f12, precision=hp) + b12).astype(bf16)
    h4 = (jnp.dot(x, f14, precision=hp) + b14).astype(bf16)
    out2 = (jnp.dot(h4, w5, preferred_element_type=f32) + b5).astype(bf16)
    h6 = (jnp.dot(out2, w6a, preferred_element_type=f32)
          + jnp.dot(out1, w6b, preferred_element_type=f32) + b6).astype(bf16)
    logits = jnp.dot(h6, f710, preferred_element_type=f32) + b710
    logits = logits.astype(bf16).astype(f32)
    return logits[:, :2].reshape(*point_cloud.shape[:-1], 2)


# -------------------------------------------------------------------------------- main


if __name__ == "__main__":
    key = jax.random.PRNGKey(0)
    kx, kp = jax.random.split(key)

    B, N = 2, 128  # 256 point-rows; tiling picks grid=2, tm_eff=128 -> both cores busy
    point_cloud = jax.random.normal(kx, (B, N, 4), jnp.float32)
    params = init_params(kp)

    out = pointnet_forward(point_cloud, params)
    out = jax.block_until_ready(out)
    assert out.shape == (B, N, 2)

    # Strict check against a reference with exactly the kernel's folded/mixed precision.
    ref_packed = pointnet_reference_packed(point_cloud, _pack_params(params))
    assert jnp.allclose(out, ref_packed, atol=2e-3, rtol=2e-3), (
        float(jnp.max(jnp.abs(out - ref_packed))))

    # Loose sanity check against the full-f32 10-layer forward (bf16 weights drift).
    ref_f32 = pointnet_reference_f32(point_cloud, params)
    assert jnp.allclose(out, ref_f32, atol=5e-3, rtol=5e-2), (
        float(jnp.max(jnp.abs(out - ref_f32))))

    print("KERNEL_OK")
</pallas_src>

<mosaic_0001>
module attributes {stable_mosaic.version = 11 : i64} {
  func.func @pointnet_kernel(%arg0: i32, %arg1: memref<128x4xf32, #tpu.memory_space<vmem>>, %arg2: memref<4x64xf32, #tpu.memory_space<vmem>>, %arg3: memref<1x64xf32, #tpu.memory_space<vmem>>, %arg4: memref<4x128xf32, #tpu.memory_space<vmem>>, %arg5: memref<1x128xf32, #tpu.memory_space<vmem>>, %arg6: memref<128x1024xbf16, #tpu.memory_space<vmem>>, %arg7: memref<1x1024xf32, #tpu.memory_space<vmem>>, %arg8: memref<1024x512xbf16, #tpu.memory_space<vmem>>, %arg9: memref<64x512xbf16, #tpu.memory_space<vmem>>, %arg10: memref<1x512xf32, #tpu.memory_space<vmem>>, %arg11: memref<512x128xbf16, #tpu.memory_space<vmem>>, %arg12: memref<1x128xf32, #tpu.memory_space<vmem>>, %arg13: memref<128x128xbf16, #tpu.memory_space<vmem>>) attributes {dimension_semantics = [#tpu.dimension_semantics<parallel>], iteration_bounds = array<i64: 2>, scalar_prefetch = 0 : i64, scratch_operands = 0 : i64, tpu.core_type = #tpu.core_type<tc>, window_params = [{transform_indices = @transform_0, window_bounds = array<i64: 128, 4>}, {pipeline_mode = #tpu.pipeline_mode<synchronous>, transform_indices = @transform_1, window_bounds = array<i64: 4, 64>}, {pipeline_mode = #tpu.pipeline_mode<synchronous>, transform_indices = @transform_2, window_bounds = array<i64: 1, 64>}, {pipeline_mode = #tpu.pipeline_mode<synchronous>, transform_indices = @transform_3, window_bounds = array<i64: 4, 128>}, {pipeline_mode = #tpu.pipeline_mode<synchronous>, transform_indices = @transform_4, window_bounds = array<i64: 1, 128>}, {pipeline_mode = #tpu.pipeline_mode<synchronous>, transform_indices = @transform_5, window_bounds = array<i64: 128, 1024>}, {pipeline_mode = #tpu.pipeline_mode<synchronous>, transform_indices = @transform_6, window_bounds = array<i64: 1, 1024>}, {pipeline_mode = #tpu.pipeline_mode<synchronous>, transform_indices = @transform_7, window_bounds = array<i64: 1024, 512>}, {pipeline_mode = #tpu.pipeline_mode<synchronous>, transform_indices = @transform_8, window_bounds = array<i64: 64, 512>}, {pipeline_mode = #tpu.pipeline_mode<synchronous>, transform_indices = @transform_9, window_bounds = array<i64: 1, 512>}, {pipeline_mode = #tpu.pipeline_mode<synchronous>, transform_indices = @transform_10, window_bounds = array<i64: 512, 128>}, {pipeline_mode = #tpu.pipeline_mode<synchronous>, transform_indices = @transform_11, window_bounds = array<i64: 1, 128>}, {transform_indices = @transform_12, window_bounds = array<i64: 128, 128>}]} {
    %c0 = arith.constant 0 : index
    %c0_0 = arith.constant 0 : index
    %0 = vector.load %arg1[%c0, %c0_0] : memref<128x4xf32, #tpu.memory_space<vmem>>, vector<128x4xf32>
    %c0_1 = arith.constant 0 : index
    %c0_2 = arith.constant 0 : index
    %1 = vector.load %arg2[%c0_1, %c0_2] : memref<4x64xf32, #tpu.memory_space<vmem>>, vector<4x64xf32>
    %2 = vector.extract_strided_slice %0 {offsets = [0, 0], sizes = [128, 1], strides = [1, 1]} : vector<128x4xf32> to vector<128x1xf32>
    %3 = vector.extract_strided_slice %1 {offsets = [0, 0], sizes = [1, 64], strides = [1, 1]} : vector<4x64xf32> to vector<1x64xf32>
    %4 = vector.broadcast %2 : vector<128x1xf32> to vector<128x64xf32>
    %5 = vector.broadcast %3 : vector<1x64xf32> to vector<128x64xf32>
    %6 = arith.mulf %4, %5 : vector<128x64xf32>
    %7 = vector.extract_strided_slice %0 {offsets = [0, 1], sizes = [128, 1], strides = [1, 1]} : vector<128x4xf32> to vector<128x1xf32>
    %8 = vector.extract_strided_slice %1 {offsets = [1, 0], sizes = [1, 64], strides = [1, 1]} : vector<4x64xf32> to vector<1x64xf32>
    %9 = vector.broadcast %7 : vector<128x1xf32> to vector<128x64xf32>
    %10 = vector.broadcast %8 : vector<1x64xf32> to vector<128x64xf32>
    %11 = arith.mulf %9, %10 : vector<128x64xf32>
    %12 = arith.addf %6, %11 : vector<128x64xf32>
    %13 = vector.extract_strided_slice %0 {offsets = [0, 2], sizes = [128, 1], strides = [1, 1]} : vector<128x4xf32> to vector<128x1xf32>
    %14 = vector.extract_strided_slice %1 {offsets = [2, 0], sizes = [1, 64], strides = [1, 1]} : vector<4x64xf32> to vector<1x64xf32>
    %15 = vector.broadcast %13 : vector<128x1xf32> to vector<128x64xf32>
    %16 = vector.broadcast %14 : vector<1x64xf32> to vector<128x64xf32>
    %17 = arith.mulf %15, %16 : vector<128x64xf32>
    %18 = arith.addf %12, %17 : vector<128x64xf32>
    %19 = vector.extract_strided_slice %0 {offsets = [0, 3], sizes = [128, 1], strides = [1, 1]} : vector<128x4xf32> to vector<128x1xf32>
    %20 = vector.extract_strided_slice %1 {offsets = [3, 0], sizes = [1, 64], strides = [1, 1]} : vector<4x64xf32> to vector<1x64xf32>
    %21 = vector.broadcast %19 : vector<128x1xf32> to vector<128x64xf32>
    %22 = vector.broadcast %20 : vector<1x64xf32> to vector<128x64xf32>
    %23 = arith.mulf %21, %22 : vector<128x64xf32>
    %24 = arith.addf %18, %23 : vector<128x64xf32>
    %c0_3 = arith.constant 0 : index
    %c0_4 = arith.constant 0 : index
    %25 = vector.load %arg3[%c0_3, %c0_4] : memref<1x64xf32, #tpu.memory_space<vmem>>, vector<1x64xf32>
    %26 = vector.broadcast %25 : vector<1x64xf32> to vector<128x64xf32>
    %27 = arith.addf %24, %26 : vector<128x64xf32>
    %28 = arith.truncf %27 : vector<128x64xf32> to vector<128x64xbf16>
    %c0_5 = arith.constant 0 : index
    %c0_6 = arith.constant 0 : index
    %29 = vector.load %arg4[%c0_5, %c0_6] : memref<4x128xf32, #tpu.memory_space<vmem>>, vector<4x128xf32>
    %30 = vector.extract_strided_slice %0 {offsets = [0, 0], sizes = [128, 1], strides = [1, 1]} : vector<128x4xf32> to vector<128x1xf32>
    %31 = vector.extract_strided_slice %29 {offsets = [0, 0], sizes = [1, 128], strides = [1, 1]} : vector<4x128xf32> to vector<1x128xf32>
    %32 = vector.broadcast %30 : vector<128x1xf32> to vector<128x128xf32>
    %33 = vector.broadcast %31 : vector<1x128xf32> to vector<128x128xf32>
    %34 = arith.mulf %32, %33 : vector<128x128xf32>
    %35 = vector.extract_strided_slice %0 {offsets = [0, 1], sizes = [128, 1], strides = [1, 1]} : vector<128x4xf32> to vector<128x1xf32>
    %36 = vector.extract_strided_slice %29 {offsets = [1, 0], sizes = [1, 128], strides = [1, 1]} : vector<4x128xf32> to vector<1x128xf32>
    %37 = vector.broadcast %35 : vector<128x1xf32> to vector<128x128xf32>
    %38 = vector.broadcast %36 : vector<1x128xf32> to vector<128x128xf32>
    %39 = arith.mulf %37, %38 : vector<128x128xf32>
    %40 = arith.addf %34, %39 : vector<128x128xf32>
    %41 = vector.extract_strided_slice %0 {offsets = [0, 2], sizes = [128, 1], strides = [1, 1]} : vector<128x4xf32> to vector<128x1xf32>
    %42 = vector.extract_strided_slice %29 {offsets = [2, 0], sizes = [1, 128], strides = [1, 1]} : vector<4x128xf32> to vector<1x128xf32>
    %43 = vector.broadcast %41 : vector<128x1xf32> to vector<128x128xf32>
    %44 = vector.broadcast %42 : vector<1x128xf32> to vector<128x128xf32>
    %45 = arith.mulf %43, %44 : vector<128x128xf32>
    %46 = arith.addf %40, %45 : vector<128x128xf32>
    %47 = vector.extract_strided_slice %0 {offsets = [0, 3], sizes = [128, 1], strides = [1, 1]} : vector<128x4xf32> to vector<128x1xf32>
    %48 = vector.extract_strided_slice %29 {offsets = [3, 0], sizes = [1, 128], strides = [1, 1]} : vector<4x128xf32> to vector<1x128xf32>
    %49 = vector.broadcast %47 : vector<128x1xf32> to vector<128x128xf32>
    %50 = vector.broadcast %48 : vector<1x128xf32> to vector<128x128xf32>
    %51 = arith.mulf %49, %50 : vector<128x128xf32>
    %52 = arith.addf %46, %51 : vector<128x128xf32>
    %c0_7 = arith.constant 0 : index
    %c0_8 = arith.constant 0 : index
    %53 = vector.load %arg5[%c0_7, %c0_8] : memref<1x128xf32, #tpu.memory_space<vmem>>, vector<1x128xf32>
    %54 = vector.broadcast %53 : vector<1x128xf32> to vector<128x128xf32>
    %55 = arith.addf %52, %54 : vector<128x128xf32>
    %56 = arith.truncf %55 : vector<128x128xf32> to vector<128x128xbf16>
    %c0_9 = arith.constant 0 : index
    %c0_10 = arith.constant 0 : index
    %57 = vector.load %arg6[%c0_9, %c0_10] : memref<128x1024xbf16, #tpu.memory_space<vmem>>, vector<128x1024xbf16>
    %cst = arith.constant dense<0.000000e+00> : vector<128x1024xf32>
    %58 = tpu.matmul %56, %57, %cst {dimension_numbers = #tpu.dot_dimension_numbers<[1], [0], [0], [1], [0, 0, 1, 1], [], []>} : vector<128x128xbf16>, vector<128x1024xbf16>, vector<128x1024xf32> -> vector<128x1024xf32>
    %c0_11 = arith.constant 0 : index
    %c0_12 = arith.constant 0 : index
    %59 = vector.load %arg7[%c0_11, %c0_12] : memref<1x1024xf32, #tpu.memory_space<vmem>>, vector<1x1024xf32>
    %60 = vector.broadcast %59 : vector<1x1024xf32> to vector<128x1024xf32>
    %61 = arith.addf %58, %60 : vector<128x1024xf32>
    %62 = arith.truncf %61 : vector<128x1024xf32> to vector<128x1024xbf16>
    %c0_13 = arith.constant 0 : index
    %c0_14 = arith.constant 0 : index
    %63 = vector.load %arg8[%c0_13, %c0_14] : memref<1024x512xbf16, #tpu.memory_space<vmem>>, vector<1024x512xbf16>
    %cst_15 = arith.constant dense<0.000000e+00> : vector<128x512xf32>
    %64 = tpu.matmul %62, %63, %cst_15 {dimension_numbers = #tpu.dot_dimension_numbers<[1], [0], [0], [1], [0, 0, 1, 1], [], []>} : vector<128x1024xbf16>, vector<1024x512xbf16>, vector<128x512xf32> -> vector<128x512xf32>
    %c0_16 = arith.constant 0 : index
    %c0_17 = arith.constant 0 : index
    %65 = vector.load %arg9[%c0_16, %c0_17] : memref<64x512xbf16, #tpu.memory_space<vmem>>, vector<64x512xbf16>
    %cst_18 = arith.constant dense<0.000000e+00> : vector<128x512xf32>
    %66 = tpu.matmul %28, %65, %cst_18 {dimension_numbers = #tpu.dot_dimension_numbers<[1], [0], [0], [1], [0, 0, 1, 1], [], []>} : vector<128x64xbf16>, vector<64x512xbf16>, vector<128x512xf32> -> vector<128x512xf32>
    %67 = arith.addf %64, %66 : vector<128x512xf32>
    %c0_19 = arith.constant 0 : index
    %c0_20 = arith.constant 0 : index
    %68 = vector.load %arg10[%c0_19, %c0_20] : memref<1x512xf32, #tpu.memory_space<vmem>>, vector<1x512xf32>
    %69 = vector.broadcast %68 : vector<1x512xf32> to vector<128x512xf32>
    %70 = arith.addf %67, %69 : vector<128x512xf32>
    %71 = arith.truncf %70 : vector<128x512xf32> to vector<128x512xbf16>
    %c0_21 = arith.constant 0 : index
    %c0_22 = arith.constant 0 : index
    %72 = vector.load %arg11[%c0_21, %c0_22] : memref<512x128xbf16, #tpu.memory_space<vmem>>, vector<512x128xbf16>
    %cst_23 = arith.constant dense<0.000000e+00> : vector<128x128xf32>
    %73 = tpu.matmul %71, %72, %cst_23 {dimension_numbers = #tpu.dot_dimension_numbers<[1], [0], [0], [1], [0, 0, 1, 1], [], []>} : vector<128x512xbf16>, vector<512x128xbf16>, vector<128x128xf32> -> vector<128x128xf32>
    %c0_24 = arith.constant 0 : index
    %c0_25 = arith.constant 0 : index
    %74 = vector.load %arg12[%c0_24, %c0_25] : memref<1x128xf32, #tpu.memory_space<vmem>>, vector<1x128xf32>
    %75 = vector.broadcast %74 : vector<1x128xf32> to vector<128x128xf32>
    %76 = arith.addf %73, %75 : vector<128x128xf32>
    %77 = arith.truncf %76 : vector<128x128xf32> to vector<128x128xbf16>
    %c0_26 = arith.constant 0 : index
    %c0_27 = arith.constant 0 : index
    %78 = vector.load %arg13[%c0_26, %c0_27] : memref<128x128xbf16, #tpu.memory_space<vmem>>, vector<128x128xbf16>
    tpu.vector_store %arg13[%c0_26, %c0_27], %77 {strides = array<i32>} : memref<128x128xbf16, #tpu.memory_space<vmem>>, vector<128x128xbf16>,
    return
  }
  func.func @transform_0(%arg0: i32) -> (i32, i32) {
    %c0_i32 = arith.constant 0 : i32
    %c0_i32_0 = arith.constant 0 : i32
    return %arg0, %c0_i32 : i32, i32
  }
  func.func @transform_1(%arg0: i32) -> (i32, i32) {
    %c0_i32 = arith.constant 0 : i32
    %c0_i32_0 = arith.constant 0 : i32
    %c0_i32_1 = arith.constant 0 : i32
    return %c0_i32, %c0_i32_0 : i32, i32
  }
  func.func @transform_2(%arg0: i32) -> (i32, i32) {
    %c0_i32 = arith.constant 0 : i32
    %c0_i32_0 = arith.constant 0 : i32
    %c0_i32_1 = arith.constant 0 : i32
    return %c0_i32, %c0_i32_0 : i32, i32
  }
  func.func @transform_3(%arg0: i32) -> (i32, i32) {
    %c0_i32 = arith.constant 0 : i32
    %c0_i32_0 = arith.constant 0 : i32
    %c0_i32_1 = arith.constant 0 : i32
    return %c0_i32, %c0_i32_0 : i32, i32
  }
  func.func @transform_4(%arg0: i32) -> (i32, i32) {
    %c0_i32 = arith.constant 0 : i32
    %c0_i32_0 = arith.constant 0 : i32
    %c0_i32_1 = arith.constant 0 : i32
    return %c0_i32, %c0_i32_0 : i32, i32
  }
  func.func @transform_5(%arg0: i32) -> (i32, i32) {
    %c0_i32 = arith.constant 0 : i32
    %c0_i32_0 = arith.constant 0 : i32
    %c0_i32_1 = arith.constant 0 : i32
    return %c0_i32, %c0_i32_0 : i32, i32
  }
  func.func @transform_6(%arg0: i32) -> (i32, i32) {
    %c0_i32 = arith.constant 0 : i32
    %c0_i32_0 = arith.constant 0 : i32
    %c0_i32_1 = arith.constant 0 : i32
    return %c0_i32, %c0_i32_0 : i32, i32
  }
  func.func @transform_7(%arg0: i32) -> (i32, i32) {
    %c0_i32 = arith.constant 0 : i32
    %c0_i32_0 = arith.constant 0 : i32
    %c0_i32_1 = arith.constant 0 : i32
    return %c0_i32, %c0_i32_0 : i32, i32
  }
  func.func @transform_8(%arg0: i32) -> (i32, i32) {
    %c0_i32 = arith.constant 0 : i32
    %c0_i32_0 = arith.constant 0 : i32
    %c0_i32_1 = arith.constant 0 : i32
    return %c0_i32, %c0_i32_0 : i32, i32
  }
  func.func @transform_9(%arg0: i32) -> (i32, i32) {
    %c0_i32 = arith.constant 0 : i32
    %c0_i32_0 = arith.constant 0 : i32
    %c0_i32_1 = arith.constant 0 : i32
    return %c0_i32, %c0_i32_0 : i32, i32
  }
  func.func @transform_10(%arg0: i32) -> (i32, i32) {
    %c0_i32 = arith.constant 0 : i32
    %c0_i32_0 = arith.constant 0 : i32
    %c0_i32_1 = arith.constant 0 : i32
    return %c0_i32, %c0_i32_0 : i32, i32
  }
  func.func @transform_11(%arg0: i32) -> (i32, i32) {
    %c0_i32 = arith.constant 0 : i32
    %c0_i32_0 = arith.constant 0 : i32
    %c0_i32_1 = arith.constant 0 : i32
    return %c0_i32, %c0_i32_0 : i32, i32
  }
  func.func @transform_12(%arg0: i32) -> (i32, i32) {
    %c0_i32 = arith.constant 0 : i32
    %c0_i32_0 = arith.constant 0 : i32
    return %arg0, %c0_i32 : i32, i32
  }
}

</mosaic_0001>

<bundles_post_ra>
// kernel: tpu_custom_call.1
= control target key start
LH: loop header
LB: loop body
LE: loop exit
PB: predicated region body
PF: predicated region fallthrough
CT: control target
= control target key end

     0   :  { %17 = vsyncpa [#allocation3], 0  ;;  %s8960_s0 = inlined_call_operand.vmem [shape: f32[256,4], index: 0, kind: input, shape index: {}]   ;;  %s8961_s1 = inlined_call_operand.vmem [shape: f32[4,64], index: 1, kind: input, shape index: {}]   ;;  %s8962_s2 = inlined_call_operand.vmem [shape: f32[1,64], index: 2, kind: input, shape index: {}]   ;;  %s8963_s3 = inlined_call_operand.vmem [shape: f32[4,128], index: 3, kind: input, shape index: {}]   ;;  %s8964_s4 = inlined_call_operand.vmem [shape: f32[1,128], index: 4, kind: input, shape index: {}]   ;;  %s8965_s5 = inlined_call_operand.hbm [shape: bf16[128,1024], index: 5, kind: input, shape index: {}]   ;;  %s8966_s6 = inlined_call_operand.vmem [shape: f32[1,1024], index: 6, kind: input, shape index: {}]   ;;  %s8967_s7 = inlined_call_operand.hbm [shape: bf16[1024,512], index: 7, kind: input, shape index: {}]   ;;  %s8968_s8 = inlined_call_operand.hbm [shape: bf16[64,512], index: 8, kind: input, shape index: {}]   ;;  %s8969_s9 = inlined_call_operand.vmem [shape: f32[1,512], index: 9, kind: input, shape index: {}]   ;;  %s8970_s10 = inlined_call_operand.vmem [shape: bf16[512,128], index: 10, kind: input, shape index: {}]   ;;  %s8971_s11 = inlined_call_operand.vmem [shape: f32[1,128], index: 11, kind: input, shape index: {}]   ;;  %s8972_s12 = inlined_call_operand.hbm [shape: bf16[256,128], index: 12, kind: output, shape index: {}]  }
   0x1   :  { %18 = vsyncpa [#allocation6], 0 }
   0x2   :  { %19 = vsyncpa [#allocation4], 0 }
   0x3   :  { %21 = vsyncpa [#allocation4 + $0x1], 0  ;;  %s6959_s21 = smov 0   ;;  %s6961_s22 = smov 0  }
   0x4   :  { %s6963_s23 = smov 0   ;;  %s6965_s24 = smov 0  }
   0x5 LB: > { %9004 = sst [smem:[#allocation12_spill]] %s6874_s23  ;;  %s6980_s25 = sadd.s32 4294967295, %s6878_s24   ;;  %s6878_s24 = sphi %s6965_s24, %s9167_s24   ;;  %s6874_s23 = sphi %s6963_s23, %s9169_s23   ;;  %s6870_s22 = sphi %s6961_s22, %s9171_s22   ;;  %s6866_s21 = sphi %s6959_s21, %s9170_s21  }
   0x6   : > { %s5559_s26 = sadd.s32 4294967294, %s6878_s24   ;;  %s6984_s27 = sadd.s32 1, %s6878_s24  }
   0x7   : > { %9005 = sst [smem:[#allocation13_spill]] %s6984_s27  ;;  %s291_s28 = sadd.s32 1, %s6874_s23 }
   0x8   : > { %s288_s29 = ssub.s32 %s6878_s24, %s6984_s27  ;;  %p301_p0 = scmp.ne.s32.totalorder %s6874_s23, %s6870_s22 }
   0x9   : > { %p289_p1 = scmp.eq.s32.totalorder %s288_s29, 0  ;;  %p302_p2 = scmp.eq.s32.totalorder %s6980_s25, 1 }
   0xa   : > { %p307_p3 = scmp.ne.s32.totalorder %s6870_s22, %s6866_s21  ;;  %p308_p4 = scmp.eq.s32.totalorder %s5559_s26, 1 }
   0xb   : > { %s6995_s30 = scalar_select %p289_p1, %s6874_s23, %s291_s28  }
   0xc   : > { %p6997_p5 = por %p302_p2, %p301_p0  ;;  %p7001_p6 = por %p308_p4, %p307_p3 }
   0xd   : > { %9006 = sst [smem:[#allocation14_spill]] %s6995_s30  ;;  %p5560_p7 = scmp.ge.s32.totalorder %s6878_s24, 1 }
   0xe   : > { %s9008_s14 = scalar_select %p7001_p6, 1, 0 }
   0xf   : > { %p315_p8 = scmp.lt.s32.totalorder %s6878_s24, 3  ;;  %p6200_p9 = scmp.eq.s32.totalorder %s6980_s25, 0 }
  0x10   : > { %9009 = sst [smem:[#allocation15_spill]] %s9008_s14  ;;  %s6880_s16 = smov [#allocation5]  }
  0x11   : > { %p7008_p10 = pnand %p5560_p7, %p315_p8  ;;  %s355_s17 = sshll.u32 %s6880_s16, 4  ;;  %s356_s17 = int_to_ptr.vmem [resolvable:$true] %s355_s17 }
  0x12   : > { %s6881_s19 = smov [#allocation2]   ;;  %s6743_s26 = scalar_lea.vmem %s356_s17, 32768 }
  0x13   : > { %p6186_p11 = pneg %p7008_p10  ;;  %s339_s20 = sshll.u32 %s6881_s19, 4  ;;  %s340_s20 = int_to_ptr.vmem [resolvable:$true] %s339_s20 }
  0x14   : > { %p6744_p0 = scmp.ne.s32.totalorder %s356_s17, %s6743_s26  ;;  %p6751_p3 = scmp.lt.s32.totalorder %s356_s17, %s356_s17 }
  0x15   : > { %p7016_p12 = pnand %p6200_p9, %p6186_p11  ;;  %p6752_p4 = scmp.lt.s32.totalorder %s6743_s26, %s6743_s26 }
  0x17   : > { %p6734_p13 = pneg %p7016_p12  ;;  %p6753_p7 = por %p6752_p4, %p6751_p3 }
  0x19   : > { %p6746_p1 = pnand %p6744_p0, %p6734_p13 }
  0x1b   : > { %p6747_p2 = pneg %p6746_p1 }
  0x1d   : > { %p6754_p8 = pnand %p6753_p7, %p6747_p2 }
  0x1f   : > { %6757 = shalt.err (!%p6754_p8)
}
  0x20   : > { %s6882_s28 = smov 256   ;;  %s6883_s29 = smov 16  }
  0x21   : > { %6192 = dma.hbm_to_vmem [thread:$0]  (!%p7016_p12), %s8967_s7, 32768, %s356_s17, [#allocation6], %s6882_s28, %s6882_s28, %s6883_s29  }
  0x22   : > { %s6769_s30 = scalar_lea.vmem %s340_s20, 8192  ;;  %p6777_p2 = scmp.lt.s32.totalorder %s340_s20, %s340_s20 }
  0x23   : > { %p6770_p11 = scmp.ne.s32.totalorder %s340_s20, %s6769_s30  ;;  %p6778_p3 = scmp.lt.s32.totalorder %s6769_s30, %s6769_s30 }
  0x25   : > { %p6772_p0 = pnand %p6770_p11, %p6734_p13  ;;  %p6779_p4 = por %p6778_p3, %p6777_p2 }
  0x27   : > { %p6773_p1 = pneg %p6772_p0 }
  0x29   : > { %p6780_p7 = pnand %p6779_p4, %p6773_p1 }
  0x2b   : > { %6783 = shalt.err (!%p6780_p7)
}
  0x2c   : > { %s6884_s26 = smov 512   ;;  %s6885_s23 = smov 32  }
  0x2d   : > { %6189 = dma.hbm_to_vmem [thread:$0]  (!%p7016_p12), %s8965_s5, 8192, %s340_s20, [#allocation3], %s6884_s26, %s6884_s26, %s6885_s23  }
  0x2e   : > { %s6886_s17 = smov [#allocation7]  }
  0x2f   : > { %s368_s16 = sshll.u32 %s6886_s17, 4  ;;  %s369_s16 = int_to_ptr.vmem [resolvable:$true] %s368_s16 }
  0x30   : > { %s6795_s19 = scalar_lea.vmem %s369_s16, 2048  ;;  %p6803_p1 = scmp.lt.s32.totalorder %s369_s16, %s369_s16 }
  0x31   : > { %p6796_p8 = scmp.ne.s32.totalorder %s369_s16, %s6795_s19  ;;  %p6804_p2 = scmp.lt.s32.totalorder %s6795_s19, %s6795_s19 }
  0x33   : > { %p6798_p11 = pnand %p6796_p8, %p6734_p13  ;;  %p6805_p3 = por %p6804_p2, %p6803_p1 }
  0x35   : > { %p6799_p0 = pneg %p6798_p11 }
  0x37   : > { %p6806_p4 = pnand %p6805_p3, %p6799_p0 }
  0x39   : > { %6809 = shalt.err (!%p6806_p4)
}
  0x3a   : > { %6195 = dma.hbm_to_vmem [thread:$0]  (!%p7016_p12), %s8968_s8, 2048, %s369_s16, [#allocation6], %s6882_s28, %s6882_s28, %s6883_s29  }
  0x3b   : > { %402 = sbr.rel (%p7008_p10) target bundleno = 1223 (0x4c7), region = 68 }
  0x40   : > { %6853 = dma.done.wait (%p6200_p9), [#allocation3], 8192  }
  0x41   : > { %6855 = vsyncadd (%p6200_p9), [#allocation3], 4294959104 }
  0x42   : > { %6857 = dma.done.wait (%p6200_p9), [#allocation6], 34816  }
  0x43   : > { %6859 = vsyncadd (%p6200_p9), [#allocation6], 4294932480  ;;  %s5570_s30 = sshll.u32 %s6980_s25, 4  ;;  %v6887_v0 = vmov 2   ;;  %v6888_v1 = vmov 1   ;;  %v6889_v2 = vmov 0  }
  0x44   : > { %6253 = vset.pattern.permute.xlu0 %v6887_v0  ;;  %6252 = vset.pattern.permute.xlu1 %v6888_v1  ;;  %p453_p10 = scmp.lt.s32.totalorder %s5570_s30, 31  ;;  %v6890_v6 = vmov 3   ;;  %v1124_v10 = vld [vmem:[#allocation2 + $0x1c0] sm:$0xff]  ;;  %v1125_v12 = vld [vmem:[#allocation2 + $0x1c8] sm:$0xff]  ;;  %vm2362_vm0 = vcmask 523264   ;;  %s449_s28 = sand.u32 1, %s6870_s22  }
  0x45   : > { %1526 = vmatprep.mubr.bf16.mxu0 %v6889_v2  ;;  %1639 = vmatprep.mubr.bf16.mxu1 %v6889_v2  ;;  %v1128_v11 = vld [vmem:[#allocation2 + $0x1e0] sm:$0xff]  ;;  %v1129_v14 = vld [vmem:[#allocation2 + $0x1e8] sm:$0xff]  ;;  %s5569_s29 = sshll.u32 %s449_s28, 6  ;;  %s5996_s17 = sshll.u32 %s6980_s25, 10 }
  0x46   : > { %s9173_s30 = smov (!%p453_p10, %s5570_s30), 31  ;;  %v5631_v13 = vcombine.high %v1124_v10, %v1128_v11  ;;  %v5633_v15 = vcombine.high %v1125_v12, %v1129_v14  ;;  %v5630_v16 = vcombine.low %v1124_v10, %v1128_v11  ;;  %v5632_v17 = vcombine.low %v1125_v12, %v1129_v14  ;;  %v1116_v18 = vld [vmem:[#allocation2 + $0x180] sm:$0xff]  ;;  %v1117_v20 = vld [vmem:[#allocation2 + $0x188] sm:$0xff]  ;;  %s8882_s26 = scalar_lea.vmem [#allocation8], %s5569_s29 }
  0x47   : > { %s5571_s14 = sshll.u32 %s9173_s30, 3  ;;  %v1120_v19 = vld [vmem:[#allocation2 + $0x1a0] sm:$0xff]  ;;  %v1121_v23 = vld [vmem:[#allocation2 + $0x1a8] sm:$0xff]  ;;  %s5466_s16 = sshll.u32 %s8882_s26, 4  ;;  %s8915_s16 = int_to_ptr.vmem [resolvable:$true] %s5466_s16 }
  0x48   : > { %s7070_s20 = scalar_lea.vmem %s8960_s0, %s5571_s14  ;;  %1494 = vmatprep.subr.bf16.mxu0 %v5631_v13  ;;  %1607 = vmatprep.subr.bf16.mxu1 %v5633_v15  ;;  %v5623_v22 = vcombine.high %v1116_v18, %v1120_v19  ;;  %v5625_v24 = vcombine.high %v1117_v20, %v1121_v23  ;;  %v5622_v25 = vcombine.low %v1116_v18, %v1120_v19  ;;  %v1108_v27 = vld [vmem:[#allocation2 + $0x140] sm:$0xff]  ;;  %v1109_v29 = vld [vmem:[#allocation2 + $0x148] sm:$0xff]  ;;  %s8913_s27 = scalar_lea.hbm %s8972_s12, %s5996_s17 }
  0x49   : > { %v7073_v3 = vld [vmem:[%s7070_s20] sm:$0xff]  ;;  %v7078_v4 = vld [vmem:[%s7070_s20 + $0x18] sm:$0xff]  ;;  %v7081_v5 = vld [vmem:[%s7070_s20 + $0x8] sm:$0xff]  ;;  %1495 = vmatpush1.bf16.msra.mxu0 %v5630_v16  ;;  %1608 = vmatpush1.bf16.msra.mxu1 %v5632_v17  ;;  %v5624_v26 = vcombine.low %v1117_v20, %v1121_v23  ;;  %s8920_s30 = scalar_lea.sflag [#allocation4], %s449_s28  ;;  %s6810_s14 = scalar_lea.vmem %s8915_s16, 1024 }
  0x4a   : > { %678 = vperm.xlu0 %6253, %v7073_v3   ;;  %578 = vperm.xlu1 %6252, %v7073_v3   ;;  %v7088_v7 = vld [vmem:[%s7070_s20 + $0x20] sm:$0xff]  ;;  %v7093_v8 = vld [vmem:[%s7070_s20 + $0x38] sm:$0xff]  ;;  %v7099_v9 = vld [vmem:[%s7070_s20 + $0x10] sm:$0xff]  ;;  %p6811_p9 = scmp.ne.s32.totalorder %s8915_s16, %s6810_s14  ;;  %s6891_s25 = smov [#allocation8]  }
  0x4b   : > { %v7106_v21 = vld [vmem:[%s7070_s20 + $0x28] sm:$0xff]  ;;  %1496 = vmatprep.subr.bf16.mxu0 %v5623_v22  ;;  %1609 = vmatprep.subr.bf16.mxu1 %v5625_v24  ;;  %v1112_v28 = vld [vmem:[#allocation2 + $0x160] sm:$0xff]  ;;  %v7117_v39 = vld [vmem:[%s7070_s20 + $0x58] sm:$0xff]  ;;  %s6814_s15 = sshll.u32 %s6891_s25, 4  ;;  %s6815_s15 = int_to_ptr.vmem [resolvable:$false] %s6814_s15 }
  0x4c   : > { %v7111_v30 = vld [vmem:[%s7070_s20 + $0x40] sm:$0xff]  ;;  %v5615_v31 = vcombine.high %v1108_v27, %v1112_v28  ;;  %v1113_v32 = vld [vmem:[#allocation2 + $0x168] sm:$0xff]  ;;  %v5614_v34 = vcombine.low %v1108_v27, %v1112_v28  ;;  %v470_v19 = vld [vmem:[%s7070_s20 + $0x50] sm:$0xff]  ;;  %v557_v28 = vlaneseq  ;;  %p6812_p12 = pnand %p6811_p9, %p6997_p5  ;;  %s6816_s18 = scalar_lea.vmem %s6815_s15, 2048 }
  0x4d   : > { %1497 = vmatpush1.bf16.msra.mxu0 %v5622_v25  ;;  %1610 = vmatpush1.bf16.msra.mxu1 %v5624_v26  ;;  %v5617_v33 = vcombine.high %v1109_v29, %v1113_v32  ;;  %v5616_v35 = vcombine.low %v1109_v29, %v1113_v32  ;;  %v1100_v36 = vld [vmem:[#allocation2 + $0x100] sm:$0xff]  ;;  %v1101_v38 = vld [vmem:[#allocation2 + $0x108] sm:$0xff]  ;;  %v466_v22 = vld [vmem:[%s7070_s20 + $0x30] sm:$0xff]  ;;  %p6817_p7 = scmp.lt.s32.totalorder %s8915_s16, %s6815_s15  ;;  %p6818_p8 = scmp.lt.s32.totalorder %s6816_s18, %s6810_s14 }
  0x4e   : > { %690 = vperm.xlu0 %6253, %v7078_v4   ;;  %582 = vperm.xlu1 %6252, %v7081_v5   ;;  %v1104_v37 = vld [vmem:[#allocation2 + $0x120] sm:$0xff]  ;;  %v1105_v41 = vld [vmem:[#allocation2 + $0x128] sm:$0xff]  ;;  %p6813_p13 = pneg %p6812_p12 }
  0x4f   : > { %1498 = vmatprep.subr.bf16.mxu0 %v5615_v31  ;;  %1611 = vmatprep.subr.bf16.mxu1 %v5617_v33  ;;  %v5607_v40 = vcombine.high %v1100_v36, %v1104_v37  ;;  %v5609_v42 = vcombine.high %v1101_v38, %v1105_v41  ;;  %v5606_v43 = vcombine.low %v1100_v36, %v1104_v37  ;;  %v1092_v45 = vld [vmem:[#allocation2 + $0xc0] sm:$0xff]  ;;  %v1093_v47 = vld [vmem:[#allocation2 + $0xc8] sm:$0xff]  ;;  %v7194_v31 = vshrl.u32 %v557_v28, 7  ;;  %p6819_p11 = por %p6818_p8, %p6817_p7 }
  0x50   : > { %v5608_v44 = vcombine.low %v1101_v38, %v1105_v41  ;;  %v1096_v46 = vld [vmem:[#allocation2 + $0xe0] sm:$0xff]  ;;  %v1097_v49 = vld [vmem:[#allocation2 + $0xe8] sm:$0xff]  ;;  %v7219_v41 = vld [vmem:[#allocation2 + $0x1d0] sm:$0xff] }
  0x51   : > { %1499 = vmatpush1.bf16.msra.mxu0 %v5614_v34  ;;  %1612 = vmatpush1.bf16.msra.mxu1 %v5616_v35  ;;  %v5599_v48 = vcombine.high %v1092_v45, %v1096_v46  ;;  %v5601_v50 = vcombine.high %v1093_v47, %v1097_v49  ;;  %v5598_v51 = vcombine.low %v1092_v45, %v1096_v46  ;;  %v1084_v53 = vld [vmem:[#allocation2 + $0x80] sm:$0xff]  ;;  %v1085_v55 = vld [vmem:[#allocation2 + $0x88] sm:$0xff]  ;;  %v7202_v34 = vsub.s32 0, %v7194_v31  ;;  %v7227_v45 = vld [vmem:[#allocation2 + $0x1f8] sm:$0xff]  ;;  %p6820_p0 = pnand %p6819_p11, %p6813_p13 }
  0x52   : > { %6259 = vset.pattern.permute.xlu0 %v6890_v6  ;;  %6254 = vset.pattern.permute.xlu1 %v6887_v0  ;;  %v5600_v52 = vcombine.low %v1093_v47, %v1097_v49  ;;  %v1088_v54 = vld [vmem:[#allocation2 + $0xa0] sm:$0xff]  ;;  %v1089_v57 = vld [vmem:[#allocation2 + $0xa8] sm:$0xff]  ;;  %v7205_v35 = vsub.s32 1, %v7194_v31 }
  0x53   : > { %782 = vperm.xlu0 %6259, %v7081_v5   ;;  %682 = vperm.xlu1 %6254, %v7081_v5   ;;  %v5591_v56 = vcombine.high %v1084_v53, %v1088_v54  ;;  %v5593_v58 = vcombine.high %v1085_v55, %v1089_v57  ;;  %v5590_v59 = vcombine.low %v1084_v53, %v1088_v54  ;;  %v1076_v61 = vld [vmem:[#allocation2 + $0x40] sm:$0xff]  ;;  %v1077_v63 = vld [vmem:[#allocation2 + $0x48] sm:$0xff] }
  0x54   : > { %1500 = vmatprep.subr.bf16.mxu0 %v5607_v40  ;;  %1613 = vmatprep.subr.bf16.mxu1 %v5609_v42  ;;  %v5592_v60 = vcombine.low %v1085_v55, %v1089_v57  ;;  %v1080_v62 = vld [vmem:[#allocation2 + $0x60] sm:$0xff]  ;;  %v1081_v11 = vld [vmem:[#allocation2 + $0x68] sm:$0xff]  ;;  %9012 = vst [vmem:[#allocation16_spill] sm:$0xff] %v7202_v34  ;;  %9013 = vst [vmem:[#allocation17_spill] sm:$0xff] %v7205_v35 }
  0x55   : > { %1501 = vmatpush1.bf16.msra.mxu0 %v5606_v43  ;;  %1614 = vmatpush1.bf16.msra.mxu1 %v5608_v44  ;;  %v5583_v10 = vcombine.high %v1076_v61, %v1080_v62  ;;  %v5582_v12 = vcombine.low %v1076_v61, %v1080_v62  ;;  %v5584_v13 = vcombine.low %v1077_v63, %v1081_v11  ;;  %v1072_v14 = vld [vmem:[#allocation2 + $0x20] sm:$0xff]  ;;  %v1069_v15 = vld [vmem:[#allocation2 + $0x8] sm:$0xff]  ;;  %v7221_v42 = vld [vmem:[#allocation2 + $0x1f0] sm:$0xff]  ;;  %v7262_v62 = vsub.s32 3, %v7194_v31 }
  0x56   : > { %1502 = vmatprep.subr.bf16.mxu0 %v5599_v48  ;;  %1615 = vmatprep.subr.bf16.mxu1 %v5601_v50  ;;  %v7137_v20 = vld [vmem:[%s7070_s20 + $0x68] sm:$0xff]  ;;  %v7149_v24 = vld [vmem:[%s7070_s20 + $0x60] sm:$0xff]  ;;  %v5635_v43 = vcombine.high %v7219_v41, %v7221_v42  ;;  %v7225_v44 = vld [vmem:[#allocation2 + $0x1d8] sm:$0xff]  ;;  %v7237_v48 = vsub.s32 2, %v7194_v31 }
  0x57   : > { %794 = vperm.xlu0 %6259, %v7088_v7   ;;  %6255 = vset.pattern.permute.xlu1 %v6890_v6  ;;  %v469_v23 = vld [vmem:[%s7070_s20 + $0x48] sm:$0xff]  ;;  %v476_v37 = vld [vmem:[%s8961_s1] sm:$0xf]  ;;  %9015 = vst [vmem:[#allocation19_spill] sm:$0xff] %v7262_v62 }
  0x58   : > { %778 = vperm.xlu1 %6255, %v7073_v3   ;;  %v7215_v38 = vrot.slane %v476_v37, %v7202_v34  ;;  %v7230_v46 = vrot.slane %v476_v37, %v7205_v35  ;;  %9014 = vst [vmem:[#allocation18_spill] sm:$0xff] %v7237_v48  ;;  %v7248_v54 = vrot.slane %v476_v37, %v7237_v48  ;;  %v908_v61 = vld [vmem:[%s8963_s3] sm:$0xf] }
  0x59   : > { %1503 = vmatpush1.bf16.msra.mxu0 %v5598_v51  ;;  %1616 = vmatpush1.bf16.msra.mxu1 %v5600_v52 }
  0x5a   : > { %1504 = vmatprep.subr.bf16.mxu0 %v5591_v56  ;;  %1617 = vmatprep.subr.bf16.mxu1 %v5593_v58 }
  0x5b   : > { %806 = vperm.xlu0 %6259, %v7093_v8  }
  0x5c   : > { %6256 = vset.pattern.permute.xlu1 %v6889_v2 }
  0x5d   : > { %489 = vperm.xlu1 %6256, %v7099_v9   ;;  %1505 = vmatpush1.bf16.msra.mxu0 %v5590_v59 }
  0x5e   : > { %1618 = vmatpush1.bf16.msra.mxu1 %v5592_v60  ;;  %1506 = vmatprep.subr.bf16.mxu0 %v5583_v10 }
  0x5f   : > { %6269 = vset.pattern.permute.xlu0 %v6888_v1 }
  0x60   : > { %586 = vperm.xlu0 %6269, %v7099_v9  }
  0x61   : > { %494 = vperm.xlu1 %6256, %v7078_v4   ;;  %1507 = vmatpush1.bf16.msra.mxu0 %v5582_v12  ;;  %v7269_v12 = vrot.slane %v908_v61, %v7205_v35 }
  0x64   : > { %598 = vperm.xlu0 %6269, %v7106_v21  }
  0x65   : > { %6257 = vset.pattern.permute.xlu1 %v6888_v1 }
  0x66   : > { %590 = vperm.xlu1 %6257, %v7078_v4  }
  0x68   : > { %610 = vperm.xlu0 %6269, %v7111_v30  }
  0x6a   : > { %6258 = vset.pattern.permute.xlu1 %v6887_v0 }
  0x6b   : > { %686 = vperm.xlu1 %6258, %v7099_v9  }
  0x6c   : > { %622 = vperm.xlu0 %6269, %v7117_v39  }
  0x6f   : > { %6260 = vset.pattern.permute.xlu1 %v6890_v6 }
  0x70   : > { %6276 = vset.pattern.permute.xlu0 %v6889_v2  ;;  %786 = vperm.xlu1 %6260, %v7099_v9   ;;  %v5585_v9 = vcombine.high %v1077_v63, %v1081_v11 }
  0x71   : > { %479 = vperm.xlu0 %6276, %v7073_v3   ;;  %v1068_v3 = vld [vmem:[#allocation2] sm:$0xff] }
  0x72   : > { %1619 = vmatprep.subr.bf16.mxu1 %v5585_v9  ;;  %v5575_v16 = vcombine.high %v1068_v3, %v1072_v14  ;;  %v5574_v17 = vcombine.low %v1068_v3, %v1072_v14  ;;  %v7272_v3 = vrot.slane %v476_v37, %v7262_v62  ;;  %v7276_v14 = vrot.slane %v908_v61, %v7237_v48 }
  0x73   : > { %1620 = vmatpush1.bf16.msra.mxu1 %v5584_v13 }
  0x74   : > { %790 = vperm.xlu1 %6260, %v7078_v4   ;;  %v1073_v4 = vld [vmem:[#allocation2 + $0x28] sm:$0xff]  ;;  %1508 = vmatprep.subr.bf16.mxu0 %v5575_v16 }
  0x75   : > { %484 = vperm.xlu0 %6276, %v7081_v5   ;;  %v5577_v5 = vcombine.high %v1069_v15, %v1073_v4  ;;  %v5576_v18 = vcombine.low %v1069_v15, %v1073_v4  ;;  %1509 = vmatpush1.bf16.msra.mxu0 %v5574_v17  ;;  %v7279_v15 = vrot.slane %v908_v61, %v7202_v34 }
  0x76   : > { %1720 = vmatprep.subr.bf16.mxu0 %v5635_v43  ;;  %v7287_v17 = vrot.slane %v908_v61, %v7262_v62 }
  0x77   : > { %1621 = vmatprep.subr.bf16.mxu1 %v5577_v5 }
  0x78   : > { %6261 = vset.pattern.permute.xlu1 %v6889_v2  ;;  %1622 = vmatpush1.bf16.msra.mxu1 %v5576_v18 }
  0x79   : > { %504 = vperm.xlu1 %6261, %v7106_v21   ;;  %499 = vperm.xlu0 %6276, %v7088_v7  }
  0x7d   : > { %6262 = vset.pattern.permute.xlu1 %v6888_v1  ;;  %514 = vperm.xlu0 %6276, %v7093_v8  }
  0x7e   : > { %594 = vperm.xlu1 %6262, %v7088_v7  }
  0x81   : > { %529 = vperm.xlu0 %6276, %v470_v19  }
  0x82   : > { %6263 = vset.pattern.permute.xlu1 %v6887_v0 }
  0x83   : > { %694 = vperm.xlu1 %6263, %v7088_v7   ;;  %v7158_v7 = vld [vmem:[%s7070_s20 + $0x70] sm:$0xff] }
  0x85   : > { %544 = vperm.xlu0 %6276, %v7137_v20  }
  0x87   : > { %698 = vperm.xlu1 %6263, %v7106_v21  }
  0x89   : > { %6280 = vset.pattern.permute.xlu0 %v6887_v0 }
  0x8a   : > { %702 = vperm.xlu0 %6280, %v466_v22  }
  0x8b   : > { %6264 = vset.pattern.permute.xlu1 %v6890_v6 }
  0x8c   : > { %798 = vperm.xlu1 %6264, %v7106_v21   ;;  %v7165_v21 = vld [vmem:[%s7070_s20 + $0x78] sm:$0xff] }
  0x8e   : > { %714 = vperm.xlu0 %6280, %v469_v23  }
  0x90   : > { %6265 = vset.pattern.permute.xlu1 %v6889_v2 }
  0x91   : > { %509 = vperm.xlu1 %6265, %v466_v22  }
  0x92   : > { %726 = vperm.xlu0 %6280, %v7149_v24  }
  0x95   : > { %6266 = vset.pattern.permute.xlu1 %v6888_v1 }
  0x96   : > { %602 = vperm.xlu1 %6266, %v466_v22   ;;  %6282 = vset.pattern.permute.xlu0 %v6890_v6 }
  0x97   : > { %818 = vperm.xlu0 %6282, %v470_v19  }
  0x9a   : > { %606 = vperm.xlu1 %6266, %v7093_v8  }
  0x9b   : > { %830 = vperm.xlu0 %6282, %v7137_v20  }
  0x9e   : > { %6267 = vset.pattern.permute.xlu1 %v6887_v0 }
  0x9f   : > { %706 = vperm.xlu1 %6267, %v7093_v8   ;;  %6286 = vset.pattern.permute.xlu0 %v6888_v1 }
  0xa0   : > { %634 = vperm.xlu0 %6286, %v7158_v7  }
  0xa3   : > { %6268 = vset.pattern.permute.xlu1 %v6890_v6 }
  0xa4   : > { %802 = vperm.xlu1 %6268, %v466_v22   ;;  %6289 = vset.pattern.permute.xlu0 %v6887_v0 }
  0xa5   : > { %738 = vperm.xlu0 %6289, %v7165_v21  }
  0xa8   : > { %6270 = vset.pattern.permute.xlu1 %v6889_v2 }
  0xa9   : > { %519 = vperm.xlu1 %6270, %v7111_v30   ;;  %6291 = vset.pattern.permute.xlu0 %v6890_v6 }
  0xad   : > { %524 = vperm.xlu1 %6270, %v469_v23  }
  0xb1   : > { %6271 = vset.pattern.permute.xlu1 %v6888_v1 }
  0xb2   : > { %614 = vperm.xlu1 %6271, %v469_v23  }
  0xb6   : > { %6272 = vset.pattern.permute.xlu1 %v6887_v0 }
  0xb7   : > { %710 = vperm.xlu1 %6272, %v7111_v30  }
  0xbb   : > { %6273 = vset.pattern.permute.xlu1 %v6890_v6 }
  0xbc   : > { %810 = vperm.xlu1 %6273, %v7111_v30  }
  0xc0   : > { %814 = vperm.xlu1 %6273, %v469_v23  }
  0xc4   : > { %6274 = vset.pattern.permute.xlu1 %v6889_v2 }
  0xc5   : > { %534 = vperm.xlu1 %6274, %v7117_v39   ;;  %v7180_v8 = vpop.permute.xlu1 %578  ;;  %v7182_v25 = vpop.permute.xlu0 %678 }
  0xc6   : > { %v645_v4 = vmul.f32 %v7230_v46, %v7180_v8  ;;  %v933_v5 = vmul.f32 %v7269_v12, %v7180_v8  ;;  %v745_v22 = vmul.f32 %v7248_v54, %v7182_v25  ;;  %v969_v23 = vmul.f32 %v7276_v14, %v7182_v25 }
  0xc9   : > { %6275 = vset.pattern.permute.xlu1 %v6888_v1  ;;  %v7185_v26 = vpop.permute.xlu1 %582  ;;  %v7187_v27 = vpop.permute.xlu0 %690 }
  0xca   : > { %618 = vperm.xlu1 %6275, %v470_v19   ;;  %v748_v56 = vmul.f32 %v7248_v54, %v7187_v27  ;;  %v646_v37 = vmul.f32 %v7230_v46, %v7185_v26  ;;  %v934_v8 = vmul.f32 %v7269_v12, %v7185_v26 }
  0xce   : > { %6277 = vset.pattern.permute.xlu1 %v6887_v0  ;;  %v7190_v29 = vpop.permute.xlu1 %682  ;;  %v7192_v30 = vpop.permute.xlu0 %782 }
  0xcf   : > { %718 = vperm.xlu1 %6277, %v470_v19   ;;  %v746_v43 = vmul.f32 %v7248_v54, %v7190_v29  ;;  %v846_v25 = vmul.f32 %v7272_v3, %v7192_v30 }
  0xd2   : > { %v7196_v32 = vpop.permute.xlu0 %794 }
  0xd3   : > { %722 = vperm.xlu1 %6277, %v7117_v39   ;;  %v7199_v33 = vpop.permute.xlu1 %778 }
  0xd4   : > { %v845_v26 = vmul.f32 %v7272_v3, %v7199_v33 }
  0xd6   : > { %v7207_v36 = vpop.permute.xlu0 %806 }
  0xd7   : > { %6278 = vset.pattern.permute.xlu1 %v6890_v6 }
  0xd8   : > { %822 = vperm.xlu1 %6278, %v7117_v39   ;;  %v7217_v40 = vpop.permute.xlu1 %489  ;;  %v5637_v39 = vcombine.high %v7225_v44, %v7227_v45 }
  0xd9   : > { %v563_v49 = vmul.f32 %v7215_v38, %v7217_v40 }
  0xda   : > { %1833 = vmatprep.subr.bf16.mxu1 %v5637_v39 }
  0xdb   : > { %v7234_v47 = vpop.permute.xlu0 %586 }
  0xdc   : > { %v647_v50 = vmul.f32 %v7230_v46, %v7234_v47  ;;  %6279 = vset.pattern.permute.xlu1 %v6889_v2  ;;  %v495_v51 = vpop.permute.xlu1 %494 }
  0xdd   : > { %539 = vperm.xlu1 %6279, %v7149_v24   ;;  %v564_v57 = vmul.f32 %v7215_v38, %v495_v51 }
  0xde   : > { %v663_v52 = vadd.f32 %v647_v50, %v563_v49  ;;  %v970_v49 = vmul.f32 %v7276_v14, %v7190_v29 }
  0xdf   : > { %v7245_v53 = vpop.permute.xlu0 %598 }
  0xe1   : > { %6281 = vset.pattern.permute.xlu1 %v6888_v1  ;;  %v591_v55 = vpop.permute.xlu1 %590 }
  0xe2   : > { %v648_v58 = vmul.f32 %v7230_v46, %v591_v55  ;;  %626 = vperm.xlu1 %6281, %v7149_v24  }
  0xe3   : > { %v7256_v59 = vpop.permute.xlu0 %610 }
  0xe4   : > { %v664_v60 = vadd.f32 %v648_v58, %v564_v57  ;;  %v1006_v57 = vmul.f32 %v7287_v17, %v7192_v30  ;;  %v936_v58 = vmul.f32 %v7269_v12, %v591_v55  ;;  %v935_v30 = vmul.f32 %v7269_v12, %v7234_v47  ;;  %v7333_v47 = vld [vmem:[%s8962_s2] ss:$0 sm:$0xff] }
  0xe6   : > { %630 = vperm.xlu1 %6281, %v7137_v20   ;;  %v687_v63 = vpop.permute.xlu1 %686  ;;  %v764_v10 = vadd.f32 %v748_v56, %v664_v60 }
  0xe7   : > { %v747_v11 = vmul.f32 %v7248_v54, %v687_v63  ;;  %v7266_v9 = vpop.permute.xlu0 %622 }
  0xe9   : > { %v763_v13 = vadd.f32 %v747_v11, %v663_v52 }
  0xea   : > { %6283 = vset.pattern.permute.xlu1 %v6887_v0 }
  0xeb   : > { %730 = vperm.xlu1 %6283, %v7137_v20   ;;  %v787_v16 = vpop.permute.xlu1 %786 }
  0xec   : > { %v847_v18 = vmul.f32 %v7272_v3, %v787_v16  ;;  %v480_v19 = vpop.permute.xlu0 %479 }
  0xed   : > { %v561_v20 = vmul.f32 %v7215_v38, %v480_v19  ;;  %v913_v28 = vmul.f32 %v7279_v15, %v480_v19  ;;  %v650_v19 = vmul.f32 %v7230_v46, %v7245_v53 }
  0xee   : > { %v863_v39 = vadd.f32 %v847_v18, %v763_v13  ;;  %v916_v18 = vmul.f32 %v7279_v15, %v495_v51 }
  0xef   : > { %v661_v50 = vadd.f32 %v645_v4, %v561_v20  ;;  %v949_v52 = vadd.f32 %v933_v5, %v913_v28  ;;  %6284 = vset.pattern.permute.xlu1 %v6890_v6  ;;  %v791_v56 = vpop.permute.xlu1 %790  ;;  %v1005_v5 = vmul.f32 %v7287_v17, %v7199_v33  ;;  %v915_v28 = vmul.f32 %v7279_v15, %v7217_v40 }
  0xf0   : > { %v848_v60 = vmul.f32 %v7272_v3, %v791_v56  ;;  %v485_v61 = vpop.permute.xlu0 %484  ;;  %826 = vperm.xlu1 %6284, %v7149_v24  }
  0xf1   : > { %v761_v29 = vadd.f32 %v745_v22, %v661_v50  ;;  %v985_v11 = vadd.f32 %v969_v23, %v949_v52  ;;  %v562_v13 = vmul.f32 %v7215_v38, %v485_v61  ;;  %v914_v4 = vmul.f32 %v7279_v15, %v485_v61 }
  0xf2   : > { %v864_v55 = vadd.f32 %v848_v60, %v764_v10  ;;  %v972_v23 = vmul.f32 %v7276_v14, %v7187_v27  ;;  %v952_v50 = vadd.f32 %v936_v58, %v916_v18  ;;  %v951_v40 = vadd.f32 %v935_v30, %v915_v28  ;;  %v1118_v30 = vld [vmem:[#allocation2 + $0x190] sm:$0xff] }
  0xf3   : > { %v861_v20 = vadd.f32 %v845_v26, %v761_v29  ;;  %v662_v24 = vadd.f32 %v646_v37, %v562_v13  ;;  %v950_v22 = vadd.f32 %v934_v8, %v914_v4  ;;  %v1021_v51 = vadd.f32 %v1005_v5, %v985_v11  ;;  %v1122_v18 = vld [vmem:[#allocation2 + $0x1b0] sm:$0xff] }
  0xf4   : > { %6285 = vset.pattern.permute.xlu1 %v6889_v2  ;;  %v7328_v33 = vpop.permute.xlu1 %504  ;;  %v500_v27 = vpop.permute.xlu0 %499  ;;  %v971_v52 = vmul.f32 %v7276_v14, %v687_v63  ;;  %v887_v26 = vadd.f32 %v7333_v47, %v864_v55  ;;  %v1008_v58 = vmul.f32 %v7287_v17, %v791_v56  ;;  %v1007_v11 = vmul.f32 %v7287_v17, %v787_v16 }
  0xf5   : > { %v762_v10 = vadd.f32 %v746_v43, %v662_v24  ;;  %v986_v37 = vadd.f32 %v970_v49, %v950_v22  ;;  %v566_v8 = vmul.f32 %v7215_v38, %v7328_v33  ;;  %549 = vperm.xlu1 %6285, %v7158_v7   ;;  %v7346_v43 = vld [vmem:[%s8964_s4] ss:$0 sm:$0xff]  ;;  %v886_v49 = vadd.f32 %v7333_v47, %v863_v39  ;;  %v1119_v22 = vld [vmem:[#allocation2 + $0x198] sm:$0xff] }
  0xf6   : > { %v988_v13 = vadd.f32 %v972_v23, %v952_v50  ;;  %v565_v63 = vmul.f32 %v7215_v38, %v500_v27  ;;  %v884_v4 = vadd.f32 %v7333_v47, %v861_v20  ;;  %v987_v16 = vadd.f32 %v971_v52, %v951_v40  ;;  %v1123_v23 = vld [vmem:[#allocation2 + $0x1b8] sm:$0xff] }
  0xf7   : > { %v862_v60 = vadd.f32 %v846_v25, %v762_v10  ;;  %v1022_v61 = vadd.f32 %v1006_v57, %v986_v37  ;;  %v7341_v29 = vadd.f32 %v650_v19, %v566_v8  ;;  %v1044_v57 = vadd.f32 %v7346_v43, %v1021_v51 }
  0xf8   : > { %v7357_v55 = vpack.c.bf16 %v887_v26, %v886_v49  ;;  %v1024_v19 = vadd.f32 %v1008_v58, %v988_v13  ;;  %v5634_v50 = vcombine.low %v7219_v41, %v7221_v42  ;;  %v5636_v51 = vcombine.low %v7225_v44, %v7227_v45  ;;  %v7371_v52 = vpop.permute.xlu0 %514  ;;  %v1114_v13 = vld [vmem:[#allocation2 + $0x170] sm:$0xff] }
  0xf9   : > { %v885_v56 = vadd.f32 %v7333_v47, %v862_v60  ;;  %554 = vperm.xlu1 %6285, %v7165_v21   ;;  %v595_v25 = vpop.permute.xlu1 %594  ;;  %v1045_v5 = vadd.f32 %v7346_v43, %v1022_v61  ;;  %v5627_v10 = vcombine.high %v1118_v30, %v1122_v18  ;;  %v1023_v37 = vadd.f32 %v1007_v11, %v987_v16  ;;  %v1110_v11 = vld [vmem:[#allocation2 + $0x150] sm:$0xff] }
  0xfa   : > { %v649_v39 = vmul.f32 %v7230_v46, %v595_v25  ;;  %v917_v8 = vmul.f32 %v7279_v15, %v500_v27  ;;  %v937_v40 = vmul.f32 %v7269_v12, %v595_v25  ;;  %v849_v26 = vmul.f32 %v7272_v3, %v7196_v32 }
  0xfb   : > { %v7359_v24 = vpack.c.bf16 %v885_v56, %v884_v4  ;;  %v7361_v20 = vpack.c.bf16 %v1045_v5, %v1044_v57  ;;  %v5629_v42 = vcombine.high %v1119_v22, %v1123_v23  ;;  %v1047_v44 = vadd.f32 %v7346_v43, %v1024_v19  ;;  %v1111_v57 = vld [vmem:[#allocation2 + $0x158] sm:$0xff] }
  0xfc   : > { %v665_v28 = vadd.f32 %v649_v39, %v565_v63  ;;  %v5628_v58 = vcombine.low %v1119_v22, %v1123_v23  ;;  %v1046_v60 = vadd.f32 %v7346_v43, %v1023_v37  ;;  %v953_v61 = vadd.f32 %v937_v40, %v917_v8  ;;  %v1115_v5 = vld [vmem:[#allocation2 + $0x178] sm:$0xff] }
  0xfd   : > { %6287 = vset.pattern.permute.xlu1 %v6888_v1  ;;  %1527 = vmatmul.mubr.bf16.vlgmr.msra.gmra.mxu0 %v7361_v20  ;;  %v5626_v1 = vcombine.low %v1118_v30, %v1122_v18  ;;  %v1009_v63 = vmul.f32 %v7287_v17, %v7196_v32  ;;  %v938_v4 = vmul.f32 %v7269_v12, %v7245_v53  ;;  %v7394_v32 = vpop.permute.xlu0 %529  ;;  %v1102_v53 = vld [vmem:[#allocation2 + $0x110] sm:$0xff]  ;;  %v1103_v22 = vld [vmem:[#allocation2 + $0x118] sm:$0xff] }
  0xfe   : > { %1640 = vmatmul.mubr.bf16.vlgmr.msra.gmra.mxu1 %v7361_v20  ;;  %638 = vperm.xlu1 %6287, %v7165_v21   ;;  %v695_v41 = vpop.permute.xlu1 %694  ;;  %v918_v56 = vmul.f32 %v7279_v15, %v7328_v33  ;;  %v7392_v16 = vpack.c.bf16 %v1047_v44, %v1046_v60  ;;  %v1106_v33 = vld [vmem:[#allocation2 + $0x130] sm:$0xff]  ;;  %v1107_v23 = vld [vmem:[#allocation2 + $0x138] sm:$0xff]  ;;  %v5620_v37 = vcombine.low %v1111_v57, %v1115_v5 }
  0xff   : > { %v749_v45 = vmul.f32 %v7248_v54, %v695_v41  ;;  %v973_v27 = vmul.f32 %v7276_v14, %v695_v41  ;;  %1536 = vmatprep.mubr.bf16.mxu0 %v6889_v2  ;;  %1649 = vmatprep.mubr.bf16.mxu1 %v6889_v2  ;;  %v5613_v41 = vcombine.high %v1103_v22, %v1107_v23 }
 0x100   : > { %1721 = vmatpush1.bf16.msra.mxu0 %v5634_v50  ;;  %1834 = vmatpush1.bf16.msra.mxu1 %v5636_v51  ;;  %v5618_v50 = vcombine.low %v1110_v11, %v1114_v13  ;;  %v5621_v51 = vcombine.high %v1111_v57, %v1115_v5  ;;  %v1090_v5 = vld [vmem:[#allocation2 + $0xb0] sm:$0xff] }
 0x101   : > { %v765_v49 = vadd.f32 %v749_v45, %v665_v28  ;;  %1722 = vmatprep.subr.bf16.mxu0 %v5627_v10  ;;  %1835 = vmatprep.subr.bf16.mxu1 %v5629_v42  ;;  %v989_v18 = vadd.f32 %v973_v27, %v953_v61  ;;  %v954_v10 = vadd.f32 %v938_v4, %v918_v56  ;;  %v1094_v42 = vld [vmem:[#allocation2 + $0xd0] sm:$0xff]  ;;  %v7406_v60 = vpop.permute.xlu0 %544 }
 0x102   : > { %6288 = vset.pattern.permute.xlu1 %v6887_v0  ;;  %v699_v25 = vpop.permute.xlu1 %698  ;;  %v5619_v0 = vcombine.high %v1110_v11, %v1114_v13  ;;  %v5612_v11 = vcombine.low %v1103_v22, %v1107_v23  ;;  %v1086_v4 = vld [vmem:[#allocation2 + $0x90] sm:$0xff] }
 0x103   : > { %v865_v30 = vadd.f32 %v849_v26, %v765_v49  ;;  %v750_v39 = vmul.f32 %v7248_v54, %v699_v25  ;;  %734 = vperm.xlu1 %6288, %v7158_v7   ;;  %v974_v19 = vmul.f32 %v7276_v14, %v699_v25  ;;  %v1025_v8 = vadd.f32 %v1009_v63, %v989_v18  ;;  %v1087_v18 = vld [vmem:[#allocation2 + $0x98] sm:$0xff] }
 0x104   : > { %1723 = vmatpush1.bf16.msra.mxu0 %v5626_v1  ;;  %1836 = vmatpush1.bf16.msra.mxu1 %v5628_v58  ;;  %v5611_v26 = vcombine.high %v1102_v53, %v1106_v33  ;;  %v1095_v1 = vld [vmem:[#allocation2 + $0xd8] sm:$0xff]  ;;  %v5595_v23 = vcombine.high %v1086_v4, %v1090_v5 }
 0x105   : > { %v766_v28 = vadd.f32 %v750_v39, %v7341_v29  ;;  %1537 = vmatmul.mubr.bf16.gmra.mxu0 %v7392_v16  ;;  %v1098_v29 = vld [vmem:[#allocation2 + $0xf0] sm:$0xff]  ;;  %v990_v44 = vadd.f32 %v974_v19, %v954_v10  ;;  %1724 = vmatprep.subr.bf16.mxu0 %v5619_v0  ;;  %v1099_v58 = vld [vmem:[#allocation2 + $0xf8] sm:$0xff]  ;;  %v1048_v56 = vadd.f32 %v7346_v43, %v1025_v8  ;;  %v703_v22 = vpop.permute.xlu0 %702 }
 0x106   : > { %1650 = vmatmul.mubr.bf16.gmra.mxu1 %v7392_v16  ;;  %1546 = vmatprep.mubr.bf16.mxu0 %v6889_v2  ;;  %v5603_v13 = vcombine.high %v1094_v42, %v1098_v29  ;;  %v5605_v63 = vcombine.high %v1095_v1, %v1099_v58  ;;  %v1091_v39 = vld [vmem:[#allocation2 + $0xb8] sm:$0xff]  ;;  %v5602_v0 = vcombine.low %v1094_v42, %v1098_v29 }
 0x107   : > { %6290 = vset.pattern.permute.xlu1 %v6890_v6  ;;  %v799_v40 = vpop.permute.xlu1 %798  ;;  %1659 = vmatprep.mubr.bf16.mxu1 %v6889_v2  ;;  %v5610_v6 = vcombine.low %v1102_v53, %v1106_v33  ;;  %v888_v53 = vadd.f32 %v7333_v47, %v865_v30  ;;  %v5604_v33 = vcombine.low %v1095_v1, %v1099_v58  ;;  %v1083_v8 = vld [vmem:[#allocation2 + $0x78] sm:$0xff]  ;;  %v1070_v1 = vld [vmem:[#allocation2 + $0x10] sm:$0xff] }
 0x108   : > { %v850_v45 = vmul.f32 %v7272_v3, %v799_v40  ;;  %v1010_v27 = vmul.f32 %v7287_v17, %v799_v40  ;;  %834 = vperm.xlu1 %6290, %v7158_v7   ;;  %1725 = vmatpush1.bf16.msra.mxu0 %v5618_v50  ;;  %v5594_v10 = vcombine.low %v1086_v4, %v1090_v5  ;;  %v1074_v58 = vld [vmem:[#allocation2 + $0x30] sm:$0xff] }
 0x109   : > { %1837 = vmatprep.subr.bf16.mxu1 %v5621_v51  ;;  %1726 = vmatprep.subr.bf16.mxu0 %v5611_v26  ;;  %v1082_v51 = vld [vmem:[#allocation2 + $0x70] sm:$0xff]  ;;  %v5596_v42 = vcombine.low %v1087_v18, %v1091_v39 }
 0x10a   : > { %v866_v61 = vadd.f32 %v850_v45, %v766_v28  ;;  %v1026_v49 = vadd.f32 %v1010_v27, %v990_v44  ;;  %1838 = vmatpush1.bf16.msra.mxu1 %v5620_v37  ;;  %v5597_v28 = vcombine.high %v1087_v18, %v1091_v39  ;;  %v1079_v37 = vld [vmem:[#allocation2 + $0x58] sm:$0xff]  ;;  %v568_v44 = vmul.f32 %v7215_v38, %v7371_v52 }
 0x10b   : > { %1839 = vmatprep.subr.bf16.mxu1 %v5613_v41  ;;  %v751_v41 = vmul.f32 %v7248_v54, %v703_v22  ;;  %v5589_v27 = vcombine.high %v1079_v37, %v1083_v8 }
 0x10c   : > { %v889_v7 = vadd.f32 %v7333_v47, %v866_v61  ;;  %v1049_v25 = vadd.f32 %v7346_v43, %v1026_v49  ;;  %838 = vperm.xlu1 %6290, %v7165_v21   ;;  %v510_v57 = vpop.permute.xlu1 %509  ;;  %1727 = vmatpush1.bf16.msra.mxu0 %v5610_v6  ;;  %v1078_v21 = vld [vmem:[#allocation2 + $0x50] sm:$0xff]  ;;  %v1071_v61 = vld [vmem:[#allocation2 + $0x18] sm:$0xff] }
 0x10d   : > { %1728 = vmatprep.subr.bf16.mxu0 %v5603_v13  ;;  %v567_v40 = vmul.f32 %v7215_v38, %v510_v57  ;;  %v5587_v29 = vcombine.high %v1078_v21, %v1082_v51  ;;  %v1075_v49 = vld [vmem:[#allocation2 + $0x38] sm:$0xff]  ;;  %v5586_v4 = vcombine.low %v1078_v21, %v1082_v51 }
 0x10e   : > { %v7413_v19 = vpack.c.bf16 %v1049_v25, %v1048_v56  ;;  %1840 = vmatpush1.bf16.msra.mxu1 %v5612_v11  ;;  %v7415_v50 = vpack.c.bf16 %v889_v7, %v888_v53  ;;  %v920_v11 = vmul.f32 %v7279_v15, %v7371_v52  ;;  %v5588_v7 = vcombine.low %v1079_v37, %v1083_v8 }
 0x10f   : > { %1841 = vmatprep.subr.bf16.mxu1 %v5605_v63  ;;  %v5579_v25 = vcombine.high %v1070_v1, %v1074_v58  ;;  %v5581_v39 = vcombine.high %v1071_v61, %v1075_v49  ;;  %v852_v53 = vmul.f32 %v7272_v3, %v7207_v36  ;;  %v919_v52 = vmul.f32 %v7279_v15, %v510_v57 }
 0x110   : > { %1547 = vmatmul.mubr.bf16.gmra.mxu0 %v7413_v19  ;;  %1660 = vmatmul.mubr.bf16.gmra.mxu1 %v7413_v19  ;;  %v975_v37 = vmul.f32 %v7276_v14, %v703_v22  ;;  %v653_v22 = vmul.f32 %v7230_v46, %v7256_v59 }
 0x111   : > { %v603_v30 = vpop.permute.xlu1 %602  ;;  %1556 = vmatprep.mubr.bf16.mxu0 %v6889_v2  ;;  %1669 = vmatprep.mubr.bf16.mxu1 %v6889_v2 }
 0x112   : > { %v651_v26 = vmul.f32 %v7230_v46, %v603_v30  ;;  %1729 = vmatpush1.bf16.msra.mxu0 %v5602_v0  ;;  %1842 = vmatpush1.bf16.msra.mxu1 %v5604_v33  ;;  %v939_v5 = vmul.f32 %v7269_v12, %v603_v30  ;;  %v5578_v33 = vcombine.low %v1070_v1, %v1074_v58 }
 0x113   : > { %1730 = vmatprep.subr.bf16.mxu0 %v5595_v23  ;;  %1843 = vmatprep.subr.bf16.mxu1 %v5597_v28  ;;  %v5580_v23 = vcombine.low %v1071_v61, %v1075_v49  ;;  %v1012_v30 = vmul.f32 %v7287_v17, %v7207_v36 }
 0x114   : > { %v667_v45 = vadd.f32 %v651_v26, %v567_v40 }
 0x115   : > { %v607_v6 = vpop.permute.xlu1 %606 }
 0x116   : > { %v767_v13 = vadd.f32 %v751_v41, %v667_v45  ;;  %v652_v63 = vmul.f32 %v7230_v46, %v607_v6  ;;  %1731 = vmatpush1.bf16.msra.mxu0 %v5594_v10  ;;  %v940_v56 = vmul.f32 %v7269_v12, %v607_v6  ;;  %1844 = vmatpush1.bf16.msra.mxu1 %v5596_v42  ;;  %v6294_v45 = vld [vmem:[#allocation7 + $0x64] ss:$16 sps:$4 sm:$0xff]  }
 0x117   : > { %1732 = vmatprep.subr.bf16.mxu0 %v5587_v29  ;;  %1845 = vmatprep.subr.bf16.mxu1 %v5589_v27  ;;  %v955_v10 = vadd.f32 %v939_v5, %v919_v52  ;;  %v6297_v27 = vld [vmem:[#allocation7 + $0x6c] ss:$16 sps:$4 sm:$0xff]  }
 0x118   : > { %v668_v18 = vadd.f32 %v652_v63, %v568_v44  ;;  %v956_v28 = vadd.f32 %v940_v56, %v920_v11 }
 0x119   : > { %v991_v41 = vadd.f32 %v975_v37, %v955_v10 }
 0x11a   : > { %v707_v0 = vpop.permute.xlu1 %706  ;;  %1733 = vmatpush1.bf16.msra.mxu0 %v5586_v4  ;;  %1846 = vmatpush1.bf16.msra.mxu1 %v5588_v7 }
 0x11b   : > { %v752_v21 = vmul.f32 %v7248_v54, %v707_v0  ;;  %v976_v51 = vmul.f32 %v7276_v14, %v707_v0  ;;  %1734 = vmatprep.subr.bf16.mxu0 %v5579_v25  ;;  %1847 = vmatprep.subr.bf16.mxu1 %v5581_v39  ;;  %v715_v25 = vpop.permute.xlu0 %714 }
 0x11d   : > { %v768_v8 = vadd.f32 %v752_v21, %v668_v18  ;;  %v992_v57 = vadd.f32 %v976_v51, %v956_v28  ;;  %v941_v28 = vmul.f32 %v7269_v12, %v7256_v59 }
 0x11e   : > { %1735 = vmatpush1.bf16.msra.mxu0 %v5578_v33  ;;  %1848 = vmatpush1.bf16.msra.mxu1 %v5580_v23 }
 0x11f   : > { %v868_v40 = vadd.f32 %v852_v53, %v768_v8  ;;  %v803_v26 = vpop.permute.xlu1 %802  ;;  %v1028_v42 = vadd.f32 %v1012_v30, %v992_v57  ;;  %2395 = vmatprep.subr.bf16.mxu0 %v6294_v45  ;;  %2508 = vmatprep.subr.bf16.mxu1 %v6297_v27  ;;  %v754_v53 = vmul.f32 %v7248_v54, %v715_v25 }
 0x120   : > { %v851_v29 = vmul.f32 %v7272_v3, %v803_v26  ;;  %v1011_v44 = vmul.f32 %v7287_v17, %v803_v26  ;;  %v978_v8 = vmul.f32 %v7276_v14, %v715_v25 }
 0x121   : > { %v891_v58 = vadd.f32 %v7333_v47, %v868_v40  ;;  %v1051_v6 = vadd.f32 %v7346_v43, %v1028_v42 }
 0x122   : > { %v867_v1 = vadd.f32 %v851_v29, %v767_v13  ;;  %v1027_v36 = vadd.f32 %v1011_v44, %v991_v41 }
 0x124   : > { %v890_v61 = vadd.f32 %v7333_v47, %v867_v1  ;;  %v1050_v49 = vadd.f32 %v7346_v43, %v1027_v36  ;;  %v520_v11 = vpop.permute.xlu1 %519 }
 0x125   : > { %v569_v63 = vmul.f32 %v7215_v38, %v520_v11  ;;  %v921_v21 = vmul.f32 %v7279_v15, %v520_v11 }
 0x126   : > { %v7448_v4 = vpack.c.bf16 %v1051_v6, %v1050_v49  ;;  %v7450_v13 = vpack.c.bf16 %v891_v58, %v890_v61 }
 0x127   : > { %v669_v56 = vadd.f32 %v653_v22, %v569_v63  ;;  %v957_v40 = vadd.f32 %v941_v28, %v921_v21  ;;  %v923_v28 = vmul.f32 %v7279_v15, %v7394_v32 }
 0x128   : > { %1557 = vmatmul.mubr.bf16.gmra.mxu0 %v7448_v4  ;;  %1670 = vmatmul.mubr.bf16.gmra.mxu1 %v7448_v4  ;;  %v525_v7 = vpop.permute.xlu1 %524 }
 0x129   : > { %1566 = vmatprep.mubr.bf16.mxu0 %v6889_v2  ;;  %1679 = vmatprep.mubr.bf16.mxu1 %v6889_v2  ;;  %v570_v18 = vmul.f32 %v7215_v38, %v525_v7  ;;  %v922_v10 = vmul.f32 %v7279_v15, %v525_v7 }
 0x12d   : > { %v615_v5 = vpop.permute.xlu1 %614 }
 0x12e   : > { %v654_v39 = vmul.f32 %v7230_v46, %v615_v5  ;;  %v942_v51 = vmul.f32 %v7269_v12, %v615_v5  ;;  %v7480_v5 = vpop.permute.xlu0 %726 }
 0x130   : > { %v670_v52 = vadd.f32 %v654_v39, %v570_v18  ;;  %v958_v26 = vadd.f32 %v942_v51, %v922_v10 }
 0x132   : > { %v770_v0 = vadd.f32 %v754_v53, %v670_v52  ;;  %v711_v33 = vpop.permute.xlu1 %710  ;;  %v994_v45 = vadd.f32 %v978_v8, %v958_v26  ;;  %v571_v53 = vmul.f32 %v7215_v38, %v7394_v32  ;;  %v944_v32 = vmul.f32 %v7269_v12, %v7266_v9 }
 0x133   : > { %v753_v23 = vmul.f32 %v7248_v54, %v711_v33  ;;  %v977_v37 = vmul.f32 %v7276_v14, %v711_v33 }
 0x135   : > { %v769_v30 = vadd.f32 %v753_v23, %v669_v56  ;;  %v993_v29 = vadd.f32 %v977_v37, %v957_v40  ;;  %v656_v56 = vmul.f32 %v7230_v46, %v7266_v9  ;;  %v819_v23 = vpop.permute.xlu0 %818 }
 0x136   : > { %v855_v10 = vmul.f32 %v7272_v3, %v819_v23 }
 0x137   : > { %v811_v57 = vpop.permute.xlu1 %810 }
 0x138   : > { %v853_v41 = vmul.f32 %v7272_v3, %v811_v57  ;;  %v1013_v42 = vmul.f32 %v7287_v17, %v811_v57 }
 0x13a   : > { %v869_v59 = vadd.f32 %v853_v41, %v769_v30  ;;  %v1029_v27 = vadd.f32 %v1013_v42, %v993_v29 }
 0x13b   : > { %v815_v44 = vpop.permute.xlu1 %814 }
 0x13c   : > { %v854_v1 = vmul.f32 %v7272_v3, %v815_v44  ;;  %v1014_v36 = vmul.f32 %v7287_v17, %v815_v44  ;;  %v892_v6 = vadd.f32 %v7333_v47, %v869_v59  ;;  %v1052_v61 = vadd.f32 %v7346_v43, %v1029_v27 }
 0x13d   : > { %v1015_v59 = vmul.f32 %v7287_v17, %v819_v23 }
 0x13e   : > { %v870_v22 = vadd.f32 %v854_v1, %v770_v0  ;;  %v1030_v58 = vadd.f32 %v1014_v36, %v994_v45 }
 0x140   : > { %v893_v49 = vadd.f32 %v7333_v47, %v870_v22  ;;  %v1053_v11 = vadd.f32 %v7346_v43, %v1030_v58  ;;  %v535_v63 = vpop.permute.xlu1 %534 }
 0x141   : > { %v572_v7 = vmul.f32 %v7215_v38, %v535_v63  ;;  %v924_v57 = vmul.f32 %v7279_v15, %v535_v63 }
 0x142   : > { %v7478_v25 = vpack.c.bf16 %v1053_v11, %v1052_v61  ;;  %v7482_v18 = vpack.c.bf16 %v893_v49, %v892_v6 }
 0x143   : > { %v672_v39 = vadd.f32 %v656_v56, %v572_v7  ;;  %v960_v27 = vadd.f32 %v944_v32, %v924_v57 }
 0x144   : > { %1567 = vmatmul.mubr.bf16.gmra.mxu0 %v7478_v25  ;;  %1680 = vmatmul.mubr.bf16.gmra.mxu1 %v7478_v25 }
 0x145   : > { %v619_v52 = vpop.permute.xlu1 %618  ;;  %1576 = vmatprep.mubr.bf16.mxu0 %v6889_v2  ;;  %1689 = vmatprep.mubr.bf16.mxu1 %v6889_v2 }
 0x146   : > { %v655_v0 = vmul.f32 %v7230_v46, %v619_v52  ;;  %v943_v21 = vmul.f32 %v7269_v12, %v619_v52 }
 0x148   : > { %v671_v33 = vadd.f32 %v655_v0, %v571_v53  ;;  %v959_v40 = vadd.f32 %v943_v21, %v923_v28  ;;  %v757_v0 = vmul.f32 %v7248_v54, %v7480_v5 }
 0x14a   : > { %v719_v51 = vpop.permute.xlu1 %718 }
 0x14b   : > { %v755_v30 = vmul.f32 %v7248_v54, %v719_v51  ;;  %v979_v37 = vmul.f32 %v7276_v14, %v719_v51  ;;  %v574_v51 = vmul.f32 %v7215_v38, %v7406_v60 }
 0x14d   : > { %v771_v8 = vadd.f32 %v755_v30, %v671_v33  ;;  %v995_v29 = vadd.f32 %v979_v37, %v959_v40  ;;  %v831_v40 = vpop.permute.xlu0 %830 }
 0x14e   : > { %v723_v26 = vpop.permute.xlu1 %722 }
 0x14f   : > { %v871_v41 = vadd.f32 %v855_v10, %v771_v8  ;;  %v756_v42 = vmul.f32 %v7248_v54, %v723_v26  ;;  %v980_v44 = vmul.f32 %v7276_v14, %v723_v26  ;;  %v1031_v36 = vadd.f32 %v1015_v59, %v995_v29 }
 0x150   : > { %v926_v26 = vmul.f32 %v7279_v15, %v7406_v60 }
 0x151   : > { %v772_v45 = vadd.f32 %v756_v42, %v672_v39  ;;  %v996_v22 = vadd.f32 %v980_v44, %v960_v27  ;;  %v894_v11 = vadd.f32 %v7333_v47, %v871_v41  ;;  %v1054_v9 = vadd.f32 %v7346_v43, %v1031_v36 }
 0x152   : > { %v858_v44 = vmul.f32 %v7272_v3, %v831_v40 }
 0x153   : > { %v823_v1 = vpop.permute.xlu1 %822 }
 0x154   : > { %v856_v58 = vmul.f32 %v7272_v3, %v823_v1  ;;  %v1016_v6 = vmul.f32 %v7287_v17, %v823_v1  ;;  %v1018_v1 = vmul.f32 %v7287_v17, %v831_v40 }
 0x156   : > { %v872_v61 = vadd.f32 %v856_v58, %v772_v45  ;;  %v1032_v49 = vadd.f32 %v1016_v6, %v996_v22  ;;  %v981_v45 = vmul.f32 %v7276_v14, %v7480_v5 }
 0x158   : > { %v895_v63 = vadd.f32 %v7333_v47, %v872_v61  ;;  %v1055_v56 = vadd.f32 %v7346_v43, %v1032_v49  ;;  %v540_v7 = vpop.permute.xlu1 %539 }
 0x159   : > { %v573_v33 = vmul.f32 %v7215_v38, %v540_v7  ;;  %v925_v41 = vmul.f32 %v7279_v15, %v540_v7 }
 0x15a   : > { %v7509_v39 = vpack.c.bf16 %v1055_v56, %v1054_v9  ;;  %v7511_v53 = vpack.c.bf16 %v895_v63, %v894_v11  ;;  %v635_v9 = vpop.permute.xlu0 %634 }
 0x15b   : > { %v659_v7 = vmul.f32 %v7230_v46, %v635_v9 }
 0x15c   : > { %1577 = vmatmul.mubr.bf16.gmra.mxu0 %v7509_v39  ;;  %1690 = vmatmul.mubr.bf16.gmra.mxu1 %v7509_v39 }
 0x15d   : > { %v627_v52 = vpop.permute.xlu1 %626  ;;  %1586 = vmatprep.mubr.bf16.mxu0 %v6889_v2  ;;  %1699 = vmatprep.mubr.bf16.mxu1 %v6889_v2 }
 0x15e   : > { %v657_v23 = vmul.f32 %v7230_v46, %v627_v52  ;;  %v945_v8 = vmul.f32 %v7269_v12, %v627_v52 }
 0x160   : > { %v673_v28 = vadd.f32 %v657_v23, %v573_v33  ;;  %v961_v27 = vadd.f32 %v945_v8, %v925_v41 }
 0x161   : > { %v631_v21 = vpop.permute.xlu1 %630 }
 0x162   : > { %v658_v30 = vmul.f32 %v7230_v46, %v631_v21  ;;  %v773_v10 = vadd.f32 %v757_v0, %v673_v28  ;;  %v946_v37 = vmul.f32 %v7269_v12, %v631_v21  ;;  %v997_v61 = vadd.f32 %v981_v45, %v961_v27 }
 0x164   : > { %v674_v57 = vadd.f32 %v658_v30, %v574_v51  ;;  %v962_v32 = vadd.f32 %v946_v37, %v926_v26  ;;  %v739_v37 = vpop.permute.xlu0 %738 }
 0x165   : > { %v760_v26 = vmul.f32 %v7248_v54, %v739_v37 }
 0x166   : > { %v731_v42 = vpop.permute.xlu1 %730 }
 0x167   : > { %v758_v29 = vmul.f32 %v7248_v54, %v731_v42  ;;  %v982_v59 = vmul.f32 %v7276_v14, %v731_v42 }
 0x169   : > { %v774_v36 = vadd.f32 %v758_v29, %v674_v57  ;;  %v998_v22 = vadd.f32 %v982_v59, %v962_v32  ;;  %v947_v59 = vmul.f32 %v7269_v12, %v635_v9 }
 0x16b   : > { %v874_v58 = vadd.f32 %v858_v44, %v774_v36  ;;  %v827_v60 = vpop.permute.xlu1 %826  ;;  %v1034_v6 = vadd.f32 %v1018_v1, %v998_v22 }
 0x16c   : > { %v857_v49 = vmul.f32 %v7272_v3, %v827_v60  ;;  %v1017_v11 = vmul.f32 %v7287_v17, %v827_v60 }
 0x16d   : > { %v897_v5 = vadd.f32 %v7333_v47, %v874_v58  ;;  %v1057_v52 = vadd.f32 %v7346_v43, %v1034_v6 }
 0x16e   : > { %v873_v63 = vadd.f32 %v857_v49, %v773_v10  ;;  %v1033_v56 = vadd.f32 %v1017_v11, %v997_v61 }
 0x170   : > { %v896_v0 = vadd.f32 %v7333_v47, %v873_v63  ;;  %v1056_v33 = vadd.f32 %v7346_v43, %v1033_v56  ;;  %v550_v23 = vpop.permute.xlu1 %549 }
 0x171   : > { %v575_v28 = vmul.f32 %v7215_v38, %v550_v23  ;;  %v927_v44 = vmul.f32 %v7279_v15, %v550_v23  ;;  %v6300_v23 = vld [vmem:[#allocation7 + $0x44] ss:$16 sps:$4 sm:$0xff]  }
 0x172   : > { %v7543_v21 = vpack.c.bf16 %v1057_v52, %v1056_v33  ;;  %v7545_v51 = vpack.c.bf16 %v897_v5, %v896_v0 }
 0x173   : > { %v675_v30 = vadd.f32 %v659_v7, %v575_v28  ;;  %v963_v22 = vadd.f32 %v947_v59, %v927_v44  ;;  %v6303_v28 = vld [vmem:[#allocation7 + $0x4c] ss:$16 sps:$4 sm:$0xff]  }
 0x174   : > { %1587 = vmatmul.mubr.bf16.gmra.mxu0 %v7543_v21  ;;  %1700 = vmatmul.mubr.bf16.gmra.mxu1 %v7543_v21  ;;  %v555_v10 = vpop.permute.xlu1 %554 }
 0x175   : > { %1596 = vmatprep.mubr.bf16.mxu0 %v6889_v2  ;;  %1709 = vmatprep.mubr.bf16.mxu1 %v6889_v2  ;;  %v576_v57 = vmul.f32 %v7215_v38, %v555_v10  ;;  %v928_v1 = vmul.f32 %v7279_v15, %v555_v10  ;;  %v6309_v10 = vld [vmem:[#allocation7 + $0x2c] ss:$16 sps:$4 sm:$0xff]  }
 0x179   : > { %v639_v8 = vpop.permute.xlu1 %638 }
 0x17a   : > { %v660_v40 = vmul.f32 %v7230_v46, %v639_v8  ;;  %v948_v45 = vmul.f32 %v7269_v12, %v639_v8  ;;  %v984_v46 = vmul.f32 %v7276_v14, %v739_v37  ;;  %v6304_v37 = vld [vmem:[#allocation7 + $0x20] ss:$16 sps:$4 sm:$0xff]   ;;  %v6307_v8 = vld [vmem:[#allocation7 + $0x28] ss:$16 sps:$4 sm:$0xff]  }
 0x17c   : > { %v676_v41 = vadd.f32 %v660_v40, %v576_v57  ;;  %v964_v58 = vadd.f32 %v948_v45, %v928_v1  ;;  %v6312_v57 = vld [vmem:[#allocation7 + $0x4] ss:$16 sps:$4 sm:$0xff]   ;;  %v6310_v40 = vld [vmem:[#allocation7] ss:$16 sps:$4 sm:$0xff]  }
 0x17d   : > { %v6328_v45 = vld [vmem:[#allocation5 + $0xa0] ss:$16 sps:$4 sm:$0xff]   ;;  %v6339_v1 = vld [vmem:[#allocation5 + $0x284] ss:$16 sps:$4 sm:$0xff]  }
 0x17e   : > { %v776_v42 = vadd.f32 %v760_v26, %v676_v41  ;;  %v735_v32 = vpop.permute.xlu1 %734  ;;  %v1000_v11 = vadd.f32 %v984_v46, %v964_v58  ;;  %v6313_v26 = vld [vmem:[#allocation7 + $0x8] ss:$16 sps:$4 sm:$0xff]   ;;  %v6318_v41 = vld [vmem:[#allocation5 + $0xe4] ss:$16 sps:$4 sm:$0xff]  }
 0x17f   : > { %v759_v29 = vmul.f32 %v7248_v54, %v735_v32  ;;  %v983_v38 = vmul.f32 %v7276_v14, %v735_v32  ;;  %v6330_v32 = vld [vmem:[#allocation5 + $0xa4] ss:$16 sps:$4 sm:$0xff]  }
 0x180   : > { %v6342_v58 = vld [vmem:[#allocation5 + $0x64] ss:$16 sps:$4 sm:$0xff]  }
 0x181   : > { %v775_v27 = vadd.f32 %v759_v29, %v675_v30  ;;  %v999_v6 = vadd.f32 %v983_v38, %v963_v22  ;;  %v6306_v30 = vld [vmem:[#allocation7 + $0x24] ss:$16 sps:$4 sm:$0xff]   ;;  %v6337_v22 = vld [vmem:[#allocation5 + $0x280] ss:$16 sps:$4 sm:$0xff]  }
 0x182   : > { %v6333_v29 = vld [vmem:[#allocation5 + $0x2a4] ss:$16 sps:$4 sm:$0xff]  }
 0x183   : > { %v835_v36 = vpop.permute.xlu1 %834 }
 0x184   : > { %v859_v60 = vmul.f32 %v7272_v3, %v835_v36  ;;  %v1019_v54 = vmul.f32 %v7287_v17, %v835_v36  ;;  %v6334_v36 = vld [vmem:[#allocation5 + $0x80] ss:$16 sps:$4 sm:$0xff]  }
 0x186   : > { %v875_v61 = vadd.f32 %v859_v60, %v775_v27  ;;  %v1035_v9 = vadd.f32 %v1019_v54, %v999_v6  ;;  %v6336_v27 = vld [vmem:[#allocation5 + $0x84] ss:$16 sps:$4 sm:$0xff]  }
 0x187   : > { %v839_v49 = vpop.permute.xlu1 %838  ;;  %v6345_v60 = vld [vmem:[#allocation5 + $0x264] ss:$16 sps:$4 sm:$0xff]  }
 0x188   : > { %v860_v12 = vmul.f32 %v7272_v3, %v839_v49  ;;  %v1020_v15 = vmul.f32 %v7287_v17, %v839_v49  ;;  %v898_v14 = vadd.f32 %v7333_v47, %v875_v61  ;;  %v1058_v7 = vadd.f32 %v7346_v43, %v1035_v9  ;;  %v6292_v3 = vld [vmem:[#allocation7 + $0x60] ss:$16 sps:$4 sm:$0xff]   ;;  %v6295_v17 = vld [vmem:[#allocation7 + $0x68] ss:$16 sps:$4 sm:$0xff]   ;;  %v6348_v49 = vld [vmem:[#allocation5 + $0x44] ss:$16 sps:$4 sm:$0xff]  }
 0x189   : > { %v6343_v61 = vld [vmem:[#allocation5 + $0x260] ss:$16 sps:$4 sm:$0xff]  }
 0x18a   : > { %v876_v63 = vadd.f32 %v860_v12, %v776_v42  ;;  %v1036_v56 = vadd.f32 %v1020_v15, %v1000_v11  ;;  %v6321_v42 = vld [vmem:[#allocation5 + $0x2e4] ss:$16 sps:$4 sm:$0xff]   ;;  %v6346_v15 = vld [vmem:[#allocation5 + $0x40] ss:$16 sps:$4 sm:$0xff]  }
 0x18b   : > { %v6351_v11 = vld [vmem:[#allocation5 + $0x244] ss:$16 sps:$4 sm:$0xff]  }
 0x18c   : > { %v899_v5 = vadd.f32 %v7333_v47, %v876_v63  ;;  %v1059_v52 = vadd.f32 %v7346_v43, %v1036_v56  ;;  %v6298_v47 = vld [vmem:[#allocation7 + $0x40] ss:$16 sps:$4 sm:$0xff]   ;;  %v6301_v43 = vld [vmem:[#allocation7 + $0x48] ss:$16 sps:$4 sm:$0xff]   ;;  %v6354_v56 = vld [vmem:[#allocation5 + $0x24] ss:$16 sps:$4 sm:$0xff]  }
 0x18d   : > { %v6349_v63 = vld [vmem:[#allocation5 + $0x240] ss:$16 sps:$4 sm:$0xff]  }
 0x18e   : > { %v7569_v0 = vpack.c.bf16 %v899_v5, %v898_v14  ;;  %v7571_v33 = vpack.c.bf16 %v1059_v52, %v1058_v7  ;;  %v6357_v14 = vld [vmem:[#allocation5 + $0x224] ss:$16 sps:$4 sm:$0xff]   ;;  %v6355_v52 = vld [vmem:[#allocation5 + $0x220] ss:$16 sps:$4 sm:$0xff]  }
 0x190   : > { %1597 = vmatmul.mubr.bf16.gmra.mxu0 %v7571_v33  ;;  %1710 = vmatmul.mubr.bf16.gmra.mxu1 %v7571_v33 }
 0x191   : > { %1752 = vmatprep.mubr.bf16.mxu0 %v6889_v2  ;;  %1865 = vmatprep.mubr.bf16.mxu1 %v6889_v2 }
 0x198   : > { %1753 = vmatmul.mubr.bf16.vlgmr.msra.gmra.mxu0 %v7361_v20  ;;  %1866 = vmatmul.mubr.bf16.vlgmr.msra.gmra.mxu1 %v7361_v20  ;;  %v6315_v20 = vld [vmem:[#allocation7 + $0xc] ss:$16 sps:$4 sm:$0xff]  }
 0x199   : > { %1762 = vmatprep.mubr.bf16.mxu0 %v6889_v2  ;;  %1875 = vmatprep.mubr.bf16.mxu1 %v6889_v2 }
 0x19a   : > { %2396 = vmatpush1.bf16.msra.mxu0 %v6292_v3  ;;  %2509 = vmatpush1.bf16.msra.mxu1 %v6295_v17  ;;  %v6363_v3 = vld [vmem:[#allocation5 + $0x204] ss:$16 sps:$4 sm:$0xff]  }
 0x19b   : > { %2397 = vmatprep.subr.bf16.mxu0 %v6300_v23  ;;  %2510 = vmatprep.subr.bf16.mxu1 %v6303_v28  ;;  %v6358_v28 = vld [vmem:[#allocation5] ss:$16 sps:$4 sm:$0xff]  }
 0x19e   : > { %2398 = vmatpush1.bf16.msra.mxu0 %v6298_v47  ;;  %2511 = vmatpush1.bf16.msra.mxu1 %v6301_v43  ;;  %v6361_v47 = vld [vmem:[#allocation5 + $0x200] ss:$16 sps:$4 sm:$0xff]   ;;  %v6366_v43 = vld [vmem:[#allocation5 + $0x1e4] ss:$16 sps:$4 sm:$0xff]  }
 0x19f   : > { %2399 = vmatprep.subr.bf16.mxu0 %v6306_v30  ;;  %2512 = vmatprep.subr.bf16.mxu1 %v6309_v10  ;;  %v6369_v30 = vld [vmem:[#allocation5 + $0x3e4] ss:$16 sps:$4 sm:$0xff]  }
 0x1a0   : > { %1763 = vmatmul.mubr.bf16.gmra.mxu0 %v7392_v16  ;;  %1876 = vmatmul.mubr.bf16.gmra.mxu1 %v7392_v16  ;;  %v6316_v16 = vld [vmem:[#allocation5 + $0xe0] ss:$16 sps:$4 sm:$0xff]  }
 0x1a1   : > { %1772 = vmatprep.mubr.bf16.mxu0 %v6889_v2  ;;  %1885 = vmatprep.mubr.bf16.mxu1 %v6889_v2 }
 0x1a2   : > { %2400 = vmatpush1.bf16.msra.mxu0 %v6304_v37  ;;  %2513 = vmatpush1.bf16.msra.mxu1 %v6307_v8  ;;  %v6367_v8 = vld [vmem:[#allocation5 + $0x3e0] ss:$16 sps:$4 sm:$0xff]  }
 0x1a3   : > { %2401 = vmatprep.subr.bf16.mxu0 %v6312_v57  ;;  %2514 = vmatprep.subr.bf16.mxu1 %v6315_v20  ;;  %v6372_v57 = vld [vmem:[#allocation5 + $0x1c4] ss:$16 sps:$4 sm:$0xff]  }
 0x1a4   : > { %v6375_v20 = vld [vmem:[#allocation5 + $0x3c4] ss:$16 sps:$4 sm:$0xff]  }
 0x1a6   : > { %2402 = vmatpush1.bf16.msra.mxu0 %v6310_v40  ;;  %2515 = vmatpush1.bf16.msra.mxu1 %v6313_v26 }
 0x1a7   : > { %3893 = vmatprep.subr.bf16.mxu0 %v6318_v41  ;;  %4006 = vmatprep.subr.bf16.mxu1 %v6321_v42  ;;  %v6370_v41 = vld [vmem:[#allocation5 + $0x1c0] ss:$16 sps:$4 sm:$0xff]  }
 0x1a8   : > { %1773 = vmatmul.mubr.bf16.gmra.mxu0 %v7413_v19  ;;  %1886 = vmatmul.mubr.bf16.gmra.mxu1 %v7413_v19  ;;  %v6319_v19 = vld [vmem:[#allocation5 + $0x2e0] ss:$16 sps:$4 sm:$0xff]  }
 0x1a9   : > { %1782 = vmatprep.mubr.bf16.mxu0 %v6889_v2  ;;  %1895 = vmatprep.mubr.bf16.mxu1 %v6889_v2  ;;  %v6373_v42 = vld [vmem:[#allocation5 + $0x3c0] ss:$16 sps:$4 sm:$0xff]  }
 0x1b0   : > { %1783 = vmatmul.mubr.bf16.gmra.mxu0 %v7448_v4  ;;  %1896 = vmatmul.mubr.bf16.gmra.mxu1 %v7448_v4  ;;  %v6324_v4 = vld [vmem:[#allocation5 + $0xc4] ss:$16 sps:$4 sm:$0xff]  }
 0x1b1   : > { %1792 = vmatprep.mubr.bf16.mxu0 %v6889_v2  ;;  %1905 = vmatprep.mubr.bf16.mxu1 %v6889_v2 }
 0x1b8   : > { %1793 = vmatmul.mubr.bf16.gmra.mxu0 %v7478_v25  ;;  %1906 = vmatmul.mubr.bf16.gmra.mxu1 %v7478_v25  ;;  %v6327_v25 = vld [vmem:[#allocation5 + $0x2c4] ss:$16 sps:$4 sm:$0xff]  }
 0x1b9   : > { %1802 = vmatprep.mubr.bf16.mxu0 %v6889_v2  ;;  %1915 = vmatprep.mubr.bf16.mxu1 %v6889_v2 }
 0x1bd   : > { %v7615_v59 = vpop.f32.mrf.mxu0 }
 0x1be   : > { %v7617_v44 = vpop.f32.mrf.mxu1 }
 0x1bf   : > { %v7619_v38 = vpop.f32.mrf.mxu0 }
 0x1c0   : > { %1803 = vmatmul.mubr.bf16.gmra.mxu0 %v7509_v39  ;;  %1916 = vmatmul.mubr.bf16.gmra.mxu1 %v7509_v39  ;;  %v6322_v39 = vld [vmem:[#allocation5 + $0xc0] ss:$16 sps:$4 sm:$0xff]   ;;  %v7625_v46 = vpop.f32.mrf.mxu1 }
 0x1c1   : > { %1812 = vmatprep.mubr.bf16.mxu0 %v6889_v2  ;;  %1925 = vmatprep.mubr.bf16.mxu1 %v6889_v2  ;;  %v7629_v54 = vpop.f32.mrf.mxu0 }
 0x1c2   : > { %v7631_v6 = vpop.f32.mrf.mxu1 }
 0x1c3   : > { %v7633_v9 = vpop.f32.mrf.mxu0 }
 0x1c4   : > { %v7639_v12 = vpop.f32.mrf.mxu1 }
 0x1c5   : > { %v7643_v7 = vpop.f32.mrf.mxu0 }
 0x1c6   : > { %v7645_v5 = vpop.f32.mrf.mxu1 }
 0x1c7   : > { %v7647_v17 = vpop.f32.mrf.mxu0 }
 0x1c8   : > { %1813 = vmatmul.mubr.bf16.gmra.mxu0 %v7543_v21  ;;  %1926 = vmatmul.mubr.bf16.gmra.mxu1 %v7543_v21  ;;  %v6325_v21 = vld [vmem:[#allocation5 + $0x2c0] ss:$16 sps:$4 sm:$0xff]   ;;  %v7653_v23 = vpop.f32.mrf.mxu1 }
 0x1c9   : > { %1822 = vmatprep.mubr.bf16.mxu0 %v6889_v2  ;;  %1935 = vmatprep.mubr.bf16.mxu1 %v6889_v2  ;;  %v7657_v10 = vpop.f32.mrf.mxu0 }
 0x1ca   : > { %v7659_v37 = vpop.f32.mrf.mxu1 }
 0x1cb   : > { %v7661_v40 = vpop.f32.mrf.mxu0 }
 0x1cc   : > { %v7667_v26 = vpop.f32.mrf.mxu1 }
 0x1d0   : > { %1823 = vmatmul.mubr.bf16.gmra.mxu0 %v7571_v33  ;;  %1936 = vmatmul.mubr.bf16.gmra.mxu1 %v7571_v33  ;;  %v6360_v33 = vld [vmem:[#allocation5 + $0x4] ss:$16 sps:$4 sm:$0xff]  }
 0x1d1   : > { %2419 = vmatprep.mubr.bf16.mxu0 %v6889_v2  ;;  %2532 = vmatprep.mubr.bf16.mxu1 %v6889_v2 }
 0x1d8   : > { %5654 = vmatmul.mubr.msk.bf16.vlgmr.msra.gmra.mxu0 %vm2362_vm0, %v7359_v24  ;;  %5662 = vmatmul.mubr.msk.bf16.vlgmr.msra.gmra.mxu1 %vm2362_vm0, %v7359_v24  ;;  %v6331_v24 = vld [vmem:[#allocation5 + $0x2a0] ss:$16 sps:$4 sm:$0xff]  }
 0x1d9   : > { %3894 = vmatpush1.bf16.msra.mxu0 %v6316_v16  ;;  %4007 = vmatpush1.bf16.msra.mxu1 %v6319_v19  ;;  %v7669_v16 = vpop.f32.mrf.mxu0  ;;  %v6378_v19 = vld [vmem:[#allocation5 + $0x1a4] ss:$16 sps:$4 sm:$0xff]  }
 0x1da   : > { %3895 = vmatprep.subr.bf16.mxu0 %v6324_v4  ;;  %4008 = vmatprep.subr.bf16.mxu1 %v6327_v25  ;;  %v6381_v4 = vld [vmem:[#allocation5 + $0x3a4] ss:$16 sps:$4 sm:$0xff]   ;;  %v7671_v25 = vpop.f32.mrf.mxu1 }
 0x1db   : > { %2429 = vmatprep.mubr.bf16.mxu0 %v6889_v2  ;;  %2542 = vmatprep.mubr.bf16.mxu1 %v6889_v2 }
 0x1dd   : > { %3896 = vmatpush1.bf16.msra.mxu0 %v6322_v39  ;;  %4009 = vmatpush1.bf16.msra.mxu1 %v6325_v21  ;;  %v6379_v39 = vld [vmem:[#allocation5 + $0x3a0] ss:$16 sps:$4 sm:$0xff]   ;;  %v7675_v21 = vpop.f32.mrf.mxu0 }
 0x1de   : > { %3897 = vmatprep.subr.bf16.mxu0 %v6330_v32  ;;  %4010 = vmatprep.subr.bf16.mxu1 %v6333_v29  ;;  %v6384_v32 = vld [vmem:[#allocation5 + $0x184] ss:$16 sps:$4 sm:$0xff]  }
 0x1df   : > { %v6387_v29 = vld [vmem:[#allocation5 + $0x384] ss:$16 sps:$4 sm:$0xff]  }
 0x1e0   : > { %5655 = vmatmul.mubr.msk.bf16.gmra.mxu0 %vm2362_vm0, %v7357_v55  ;;  %5663 = vmatmul.mubr.msk.bf16.gmra.mxu1 %vm2362_vm0, %v7357_v55  ;;  %v6340_v55 = vld [vmem:[#allocation5 + $0x60] ss:$16 sps:$4 sm:$0xff]  }
 0x1e1   : > { %3898 = vmatpush1.bf16.msra.mxu0 %v6328_v45  ;;  %4011 = vmatpush1.bf16.msra.mxu1 %v6331_v24  ;;  %v7677_v45 = vpop.f32.mrf.mxu1  ;;  %v6382_v24 = vld [vmem:[#allocation5 + $0x180] ss:$16 sps:$4 sm:$0xff]  }
 0x1e2   : > { %3899 = vmatprep.subr.bf16.mxu0 %v6336_v27  ;;  %4012 = vmatprep.subr.bf16.mxu1 %v6339_v1  ;;  %v6385_v27 = vld [vmem:[#allocation5 + $0x380] ss:$16 sps:$4 sm:$0xff]   ;;  %v7683_v1 = vpop.f32.mrf.mxu0 }
 0x1e3   : > { %2439 = vmatprep.mubr.bf16.mxu0 %v6889_v2  ;;  %2552 = vmatprep.mubr.bf16.mxu1 %v6889_v2 }
 0x1e5   : > { %3900 = vmatpush1.bf16.msra.mxu0 %v6334_v36  ;;  %4013 = vmatpush1.bf16.msra.mxu1 %v6337_v22  ;;  %v6390_v36 = vld [vmem:[#allocation5 + $0x164] ss:$16 sps:$4 sm:$0xff]  }
 0x1e6   : > { %3901 = vmatprep.subr.bf16.mxu0 %v6342_v58  ;;  %4014 = vmatprep.subr.bf16.mxu1 %v6345_v60  ;;  %v6393_v22 = vld [vmem:[#allocation5 + $0x364] ss:$16 sps:$4 sm:$0xff]   ;;  %v7685_v58 = vpop.f32.mrf.mxu1  ;;  %v6388_v60 = vld [vmem:[#allocation5 + $0x160] ss:$16 sps:$4 sm:$0xff]  }
 0x1e8   : > { %5656 = vmatmul.mubr.msk.bf16.gmra.mxu0 %vm2362_vm0, %v7415_v50  ;;  %5664 = vmatmul.mubr.msk.bf16.gmra.mxu1 %vm2362_vm0, %v7415_v50  ;;  %v6352_v50 = vld [vmem:[#allocation5 + $0x20] ss:$16 sps:$4 sm:$0xff]  }
 0x1e9   : > { %3902 = vmatpush1.bf16.msra.mxu0 %v6340_v55  ;;  %4015 = vmatpush1.bf16.msra.mxu1 %v6343_v61  ;;  %v7689_v55 = vpop.f32.mrf.mxu0  ;;  %v6396_v61 = vld [vmem:[#allocation5 + $0x144] ss:$16 sps:$4 sm:$0xff]  }
 0x1ea   : > { %3903 = vmatprep.subr.bf16.mxu0 %v6348_v49  ;;  %4016 = vmatprep.subr.bf16.mxu1 %v6351_v11  ;;  %v6399_v49 = vld [vmem:[#allocation5 + $0x344] ss:$16 sps:$4 sm:$0xff]   ;;  %v7691_v11 = vpop.f32.mrf.mxu1 }
 0x1eb   : > { %2449 = vmatprep.mubr.bf16.mxu0 %v6889_v2  ;;  %2562 = vmatprep.mubr.bf16.mxu1 %v6889_v2 }
 0x1ed   : > { %3904 = vmatpush1.bf16.msra.mxu0 %v6346_v15  ;;  %4017 = vmatpush1.bf16.msra.mxu1 %v6349_v63  ;;  %v7696_v15 = vld [vmem:[%s8966_s6] sm:$0xff]  ;;  %v7698_v63 = vpop.f32.mrf.mxu0 }
 0x1ee   : > { %3905 = vmatprep.subr.bf16.mxu0 %v6354_v56  ;;  %4018 = vmatprep.subr.bf16.mxu1 %v6357_v14  ;;  %v7706_v56 = vrot.slane %v7696_v15, %v7205_v35  ;;  %v7708_v14 = vpop.f32.mrf.mxu1  ;;  %v6525_v35 = vld [vmem:[#allocation5 + $0x2ac] ss:$16 sps:$4 sm:$0xff]  }
 0x1f0   : > { %5657 = vmatmul.mubr.msk.bf16.gmra.mxu0 %vm2362_vm0, %v7450_v13  ;;  %5665 = vmatmul.mubr.msk.bf16.gmra.mxu1 %vm2362_vm0, %v7450_v13  ;;  %v6364_v13 = vld [vmem:[#allocation5 + $0x1e0] ss:$16 sps:$4 sm:$0xff]  }
 0x1f1   : > { %3906 = vmatpush1.bf16.msra.mxu0 %v6352_v50  ;;  %4019 = vmatpush1.bf16.msra.mxu1 %v6355_v52  ;;  %v6394_v50 = vld [vmem:[#allocation5 + $0x140] ss:$16 sps:$4 sm:$0xff]  }
 0x1f2   : > { %3907 = vmatprep.subr.bf16.mxu0 %v6360_v33  ;;  %4020 = vmatprep.subr.bf16.mxu1 %v6363_v3  ;;  %v6397_v52 = vld [vmem:[#allocation5 + $0x340] ss:$16 sps:$4 sm:$0xff]   ;;  %v7712_v33 = vrot.slane %v7696_v15, %v7262_v62  ;;  %v6402_v3 = vld [vmem:[#allocation5 + $0x124] ss:$16 sps:$4 sm:$0xff]  }
 0x1f3   : > { %2459 = vmatprep.mubr.bf16.mxu0 %v6889_v2  ;;  %2572 = vmatprep.mubr.bf16.mxu1 %v6889_v2 }
 0x1f5   : > { %3908 = vmatpush1.bf16.msra.mxu0 %v6358_v28  ;;  %4021 = vmatpush1.bf16.msra.mxu1 %v6361_v47  ;;  %v6405_v28 = vld [vmem:[#allocation5 + $0x324] ss:$16 sps:$4 sm:$0xff]   ;;  %v1648_v47 = vadd.f32 %v7639_v12, %v7712_v33 }
 0x1f6   : > { %3909 = vmatprep.subr.bf16.mxu0 %v6366_v43  ;;  %4022 = vmatprep.subr.bf16.mxu1 %v6369_v30  ;;  %v7719_v43 = vpop.f32.mrf.mxu0  ;;  %v1531_v30 = vadd.f32 %v7619_v38, %v7706_v56  ;;  %v6408_v12 = vld [vmem:[#allocation5 + $0x104] ss:$16 sps:$4 sm:$0xff]  }
 0x1f8   : > { %5658 = vmatmul.mubr.msk.bf16.gmra.mxu0 %vm2362_vm0, %v7482_v18  ;;  %5666 = vmatmul.mubr.msk.bf16.gmra.mxu1 %vm2362_vm0, %v7482_v18  ;;  %v6376_v18 = vld [vmem:[#allocation5 + $0x1a0] ss:$16 sps:$4 sm:$0xff]  }
 0x1f9   : > { %3910 = vmatpush2.bf16.msra.mxu0 %v6364_v13  ;;  %4023 = vmatpush2.bf16.msra.mxu1 %v6367_v8  ;;  %v7724_v13 = vpop.f32.mrf.mxu1  ;;  %v6400_v8 = vld [vmem:[#allocation5 + $0x120] ss:$16 sps:$4 sm:$0xff]  }
 0x1fa   : > { %3911 = vmatprep.subr.bf16.mxu0 %v6372_v57  ;;  %4024 = vmatprep.subr.bf16.mxu1 %v6375_v20  ;;  %v6403_v57 = vld [vmem:[#allocation5 + $0x320] ss:$16 sps:$4 sm:$0xff]  }
 0x1fb   : > { %2469 = vmatprep.mubr.bf16.mxu0 %v6889_v2  ;;  %2582 = vmatprep.mubr.bf16.mxu1 %v6889_v2 }
 0x1fd   : > { %3912 = vmatpush2.bf16.msra.mxu0 %v6370_v41  ;;  %4025 = vmatpush2.bf16.msra.mxu1 %v6373_v42  ;;  %v6411_v41 = vld [vmem:[#allocation5 + $0x304] ss:$16 sps:$4 sm:$0xff]   ;;  %v7736_v42 = vpop.f32.mrf.mxu0 }
 0x1fe   : > { %3913 = vmatprep.subr.bf16.mxu0 %v6378_v19  ;;  %4026 = vmatprep.subr.bf16.mxu1 %v6381_v4  ;;  %v7746_v19 = vpop.f32.mrf.mxu1  ;;  %v6406_v4 = vld [vmem:[#allocation5 + $0x100] ss:$16 sps:$4 sm:$0xff]  }
 0x200   : > { %5659 = vmatmul.mubr.msk.bf16.gmra.mxu0 %vm2362_vm0, %v7511_v53  ;;  %5667 = vmatmul.mubr.msk.bf16.gmra.mxu1 %vm2362_vm0, %v7511_v53  ;;  %v6391_v53 = vld [vmem:[#allocation5 + $0x360] ss:$16 sps:$4 sm:$0xff]  }
 0x201   : > { %3914 = vmatpush2.bf16.msra.mxu0 %v6376_v18  ;;  %4027 = vmatpush2.bf16.msra.mxu1 %v6379_v39  ;;  %v6409_v39 = vld [vmem:[#allocation5 + $0x300] ss:$16 sps:$4 sm:$0xff]  }
 0x202   : > { %3915 = vmatprep.subr.bf16.mxu0 %v6384_v32  ;;  %4028 = vmatprep.subr.bf16.mxu1 %v6387_v29  ;;  %v6414_v32 = vld [vmem:[#allocation5 + $0x4e4] ss:$16 sps:$4 sm:$0xff]   ;;  %v1545_v29 = vadd.f32 %v7661_v40, %v7706_v56 }
 0x203   : > { %2479 = vmatprep.mubr.bf16.mxu0 %v6889_v2  ;;  %2592 = vmatprep.mubr.bf16.mxu1 %v6889_v2 }
 0x205   : > { %3916 = vmatpush2.bf16.msra.mxu0 %v6382_v24  ;;  %4029 = vmatpush2.bf16.msra.mxu1 %v6385_v27  ;;  %v6417_v24 = vld [vmem:[#allocation5 + $0x6e4] ss:$16 sps:$4 sm:$0xff]  }
 0x206   : > { %3917 = vmatprep.subr.bf16.mxu0 %v6390_v36  ;;  %4030 = vmatprep.subr.bf16.mxu1 %v6393_v22  ;;  %v7760_v36 = vpop.f32.mrf.mxu0 }
 0x208   : > { %5660 = vmatmul.mubr.msk.bf16.gmra.mxu0 %vm2362_vm0, %v7545_v51  ;;  %5668 = vmatmul.mubr.msk.bf16.gmra.mxu1 %vm2362_vm0, %v7545_v51  ;;  %v1535_v51 = vadd.f32 %v7633_v9, %v7706_v56  ;;  %v1644_v9 = vadd.f32 %v7625_v46, %v7712_v33  ;;  %v7744_v46 = vrot.slane %v7696_v15, %v7237_v48 }
 0x209   : > { %3918 = vmatpush2.bf16.msra.mxu0 %v6388_v60  ;;  %4031 = vmatpush2.bf16.msra.mxu1 %v6391_v53  ;;  %v7766_v60 = vpop.f32.mrf.mxu1  ;;  %v1654_v53 = vadd.f32 %v7653_v23, %v7712_v33 }
 0x20a   : > { %3919 = vmatprep.subr.bf16.mxu0 %v6396_v61  ;;  %4032 = vmatprep.subr.bf16.mxu1 %v6399_v49  ;;  %v7728_v20 = vpack.c.bf16 %v1535_v51, %v1531_v30  ;;  %v7734_v38 = vpack.c.bf16 %v1648_v47, %v1644_v9  ;;  %v1642_v22 = vadd.f32 %v7617_v44, %v7744_v46  ;;  %v6418_v51 = vld [vmem:[#allocation5 + $0x4c0] ss:$16 sps:$4 sm:$0xff]  }
 0x20b   : > { %2489 = vmatprep.mubr.bf16.mxu0 %v6889_v2  ;;  %2602 = vmatprep.mubr.bf16.mxu1 %v6889_v2  ;;  %v7732_v2 = vrot.slane %v7696_v15, %v7202_v34  ;;  %v7778_v44 = vpop.f32.mrf.mxu1  ;;  %v1656_v47 = vadd.f32 %v7659_v37, %v7744_v46  ;;  %v1555_v30 = vadd.f32 %v7689_v55, %v7706_v56  ;;  %v6421_v9 = vld [vmem:[#allocation5 + $0x6c0] ss:$16 sps:$4 sm:$0xff]   ;;  %v6528_v34 = vld [vmem:[#allocation5 + $0x8c] ss:$16 sps:$4 sm:$0xff]  }
 0x20c   : > { %v1652_v37 = vadd.f32 %v7645_v5, %v7744_v46  ;;  %v1551_v55 = vadd.f32 %v7675_v21, %v7706_v56  ;;  %v6427_v5 = vld [vmem:[#allocation5 + $0x6a0] ss:$16 sps:$4 sm:$0xff]   ;;  %v6432_v21 = vld [vmem:[#allocation5 + $0x484] ss:$16 sps:$4 sm:$0xff]  }
 0x20d   : > { %3920 = vmatpush2.bf16.msra.mxu0 %v6394_v50  ;;  %4033 = vmatpush2.bf16.msra.mxu1 %v6397_v52  ;;  %v1533_v18 = vadd.f32 %v7629_v54, %v7732_v2  ;;  %v1529_v27 = vadd.f32 %v7615_v59, %v7732_v2  ;;  %v1658_v54 = vadd.f32 %v7667_v26, %v7712_v33  ;;  %v7772_v59 = vpop.f32.mrf.mxu0  ;;  %v6412_v26 = vld [vmem:[#allocation5 + $0x4e0] ss:$16 sps:$4 sm:$0xff]   ;;  %v6420_v50 = vld [vmem:[#allocation5 + $0x4c4] ss:$16 sps:$4 sm:$0xff]  }
 0x20e   : > { %3921 = vmatprep.subr.bf16.mxu0 %v6402_v3  ;;  %4034 = vmatprep.subr.bf16.mxu1 %v6405_v28  ;;  %v6423_v3 = vld [vmem:[#allocation5 + $0x6c4] ss:$16 sps:$4 sm:$0xff]   ;;  %v1543_v23 = vadd.f32 %v7657_v10, %v7732_v2  ;;  %v1539_v10 = vadd.f32 %v7643_v7, %v7732_v2  ;;  %v6424_v7 = vld [vmem:[#allocation5 + $0x4a0] ss:$16 sps:$4 sm:$0xff]  }
 0x20f   : > { %v7768_v40 = vpack.c.bf16 %v1533_v18, %v1529_v27  ;;  %v7780_v52 = vpack.c.bf16 %v1658_v54, %v1654_v53  ;;  %v7787_v28 = vpop.f32.mrf.mxu0  ;;  %v1664_v18 = vadd.f32 %v7677_v45, %v7712_v33  ;;  %v6435_v45 = vld [vmem:[#allocation5 + $0x684] ss:$16 sps:$4 sm:$0xff]   ;;  %v6430_v54 = vld [vmem:[#allocation5 + $0x480] ss:$16 sps:$4 sm:$0xff]  }
 0x210   : > { %5661 = vmatmul.mubr.msk.bf16.gmra.mxu0 %vm2362_vm0, %v7569_v0  ;;  %5669 = vmatmul.mubr.msk.bf16.gmra.mxu1 %vm2362_vm0, %v7569_v0  ;;  %v1646_v0 = vadd.f32 %v7631_v6, %v7744_v46  ;;  %v1541_v6 = vadd.f32 %v7647_v17, %v7706_v56  ;;  %v6415_v17 = vld [vmem:[#allocation5 + $0x6e0] ss:$16 sps:$4 sm:$0xff]  }
 0x211   : > { %3922 = vmatpush2.bf16.msra.mxu0 %v6400_v8  ;;  %3925 = vmatprep.mubr.bf16.mxu0 %v7728_v20  ;;  %v7794_v8 = vpop.f32.mrf.mxu1 }
 0x212   : > { %4035 = vmatpush2.bf16.msra.mxu1 %v6403_v57  ;;  %4038 = vmatprep.mubr.bf16.mxu1 %v7734_v38  ;;  %v7774_v61 = vpack.c.bf16 %v1646_v0, %v1642_v22  ;;  %v7776_v49 = vpack.c.bf16 %v1545_v29, %v1541_v6  ;;  %v6426_v57 = vld [vmem:[#allocation5 + $0x4a4] ss:$16 sps:$4 sm:$0xff]   ;;  %v1666_v22 = vadd.f32 %v7685_v58, %v7744_v46 }
 0x213   : > { %3923 = vmatprep.subr.bf16.mxu0 %v6408_v12  ;;  %4036 = vmatprep.subr.bf16.mxu1 %v6411_v41  ;;  %v1668_v12 = vadd.f32 %v7691_v11, %v7712_v33  ;;  %v6429_v41 = vld [vmem:[#allocation5 + $0x6a4] ss:$16 sps:$4 sm:$0xff]   ;;  %v7812_v11 = vpack.c.bf16 %v1555_v30, %v1551_v55  ;;  %v7814_v0 = vpop.f32.mrf.mxu1  ;;  %v1565_v6 = vadd.f32 %v7760_v36, %v7706_v56 }
 0x214   : > { %v1662_v58 = vadd.f32 %v7671_v25, %v7744_v46  ;;  %v1561_v36 = vadd.f32 %v7719_v43, %v7706_v56  ;;  %v6444_v25 = vld [vmem:[#allocation5 + $0x444] ss:$16 sps:$4 sm:$0xff]   ;;  %v1676_v55 = vadd.f32 %v7746_v19, %v7744_v46  ;;  %v1571_v19 = vadd.f32 %v7787_v28, %v7706_v56 }
 0x215   : > { %3924 = vmatpush2.bf16.msra.mxu0 %v6406_v4  ;;  %v7804_v4 = vpack.c.bf16 %v1543_v23, %v1539_v10  ;;  %v7816_v29 = vpack.c.bf16 %v1668_v12, %v1664_v18  ;;  %v1687_v53 = vpop.f32.mrf.mxu1  ;;  %v6441_v23 = vld [vmem:[#allocation5 + $0x664] ss:$16 sps:$4 sm:$0xff]  }
 0x216   : > { %4037 = vmatpush2.bf16.msra.mxu1 %v6409_v39  ;;  %4119 = vmatprep.subr.bf16.mxu0 %v6414_v32  ;;  %v7808_v39 = vpop.f32.mrf.mxu0  ;;  %v7810_v32 = vpack.c.bf16 %v1656_v47, %v1652_v37  ;;  %v7844_v30 = vpack.c.bf16 %v1666_v22, %v1662_v58  ;;  %v6447_v12 = vld [vmem:[#allocation5 + $0x644] ss:$16 sps:$4 sm:$0xff]   ;;  %v6442_v37 = vld [vmem:[#allocation5 + $0x440] ss:$16 sps:$4 sm:$0xff]  }
 0x217   : > { %4232 = vmatprep.subr.bf16.mxu1 %v6417_v24  ;;  %v1553_v24 = vadd.f32 %v7683_v1, %v7732_v2  ;;  %v1678_v1 = vadd.f32 %v7766_v60, %v7712_v33  ;;  %v6436_v60 = vld [vmem:[#allocation5 + $0x460] ss:$16 sps:$4 sm:$0xff]  }
 0x218   : > { %3926 = vmatmul.mubr.bf16.vlgmr.msra.gmra.mxu0 %v7768_v40  ;;  %v1574_v27 = vpop.f32.mrf.mxu0  ;;  %v6454_v58 = vld [vmem:[#allocation5 + $0x400] ss:$16 sps:$4 sm:$0xff]  }
 0x219   : > { %4039 = vmatmul.mubr.bf16.vlgmr.msra.gmra.mxu1 %v7774_v61  ;;  %3935 = vmatprep.mubr.bf16.mxu0 %v7776_v49  ;;  %v1575_v18 = vadd.f32 %v1574_v27, %v7706_v56 }
 0x21a   : > { %4048 = vmatprep.mubr.bf16.mxu1 %v7780_v52  ;;  %4120 = vmatpush1.bf16.msra.mxu0 %v6412_v26  ;;  %v6433_v26 = vld [vmem:[#allocation5 + $0x680] ss:$16 sps:$4 sm:$0xff]  }
 0x21b   : > { %4233 = vmatpush1.bf16.msra.mxu1 %v6415_v17  ;;  %4121 = vmatprep.subr.bf16.mxu0 %v6420_v50  ;;  %v6438_v17 = vld [vmem:[#allocation5 + $0x464] ss:$16 sps:$4 sm:$0xff]   ;;  %v1549_v50 = vadd.f32 %v7669_v16, %v7732_v2  ;;  %v1674_v16 = vadd.f32 %v7724_v13, %v7712_v33  ;;  %v1563_v13 = vadd.f32 %v7736_v42, %v7732_v2 }
 0x21c   : > { %4234 = vmatprep.subr.bf16.mxu1 %v6423_v3  ;;  %v7832_v3 = vpop.f32.mrf.mxu0  ;;  %v6453_v42 = vld [vmem:[#allocation5 + $0x624] ss:$16 sps:$4 sm:$0xff]  }
 0x21d   : > { %v7840_v47 = vpack.c.bf16 %v1553_v24, %v1549_v50  ;;  %v7848_v10 = vpack.c.bf16 %v1678_v1, %v1674_v16  ;;  %v6459_v1 = vld [vmem:[#allocation5 + $0x604] ss:$16 sps:$4 sm:$0xff]  }
 0x21e   : > { %4122 = vmatpush1.bf16.msra.mxu0 %v6418_v51  ;;  %v7838_v51 = vpop.f32.mrf.mxu1  ;;  %v1580_v43 = vpop.f32.mrf.mxu0 }
 0x21f   : > { %4235 = vmatpush1.bf16.msra.mxu1 %v6421_v9  ;;  %4123 = vmatprep.subr.bf16.mxu0 %v6426_v57  ;;  %v7846_v9 = vpack.c.bf16 %v1565_v6, %v1561_v36  ;;  %v6439_v57 = vld [vmem:[#allocation5 + $0x660] ss:$16 sps:$4 sm:$0xff]   ;;  %v1684_v6 = vadd.f32 %v7794_v8, %v7712_v33  ;;  %v1573_v8 = vadd.f32 %v7808_v39, %v7732_v2 }
 0x220   : > { %3936 = vmatmul.mubr.bf16.gmra.mxu0 %v7804_v4  ;;  %4236 = vmatprep.subr.bf16.mxu1 %v6429_v41  ;;  %v1693_v41 = vpop.f32.mrf.mxu1  ;;  %v1582_v24 = vpop.f32.mrf.mxu0  ;;  %v1686_v36 = vadd.f32 %v7814_v0, %v7744_v46  ;;  %v1682_v0 = vadd.f32 %v7778_v44, %v7744_v46 }
 0x221   : > { %4049 = vmatmul.mubr.bf16.gmra.mxu1 %v7810_v32  ;;  %3945 = vmatprep.mubr.bf16.mxu0 %v7812_v11 }
 0x222   : > { %4058 = vmatprep.mubr.bf16.mxu1 %v7816_v29  ;;  %4124 = vmatpush1.bf16.msra.mxu0 %v6424_v7  ;;  %v6445_v7 = vld [vmem:[#allocation5 + $0x640] ss:$16 sps:$4 sm:$0xff]   ;;  %v7866_v22 = vpop.f32.mrf.mxu1  ;;  %v1584_v28 = vpop.f32.mrf.mxu0 }
 0x223   : > { %4237 = vmatpush1.bf16.msra.mxu1 %v6427_v5  ;;  %4125 = vmatprep.subr.bf16.mxu0 %v6432_v21  ;;  %v6450_v5 = vld [vmem:[#allocation5 + $0x424] ss:$16 sps:$4 sm:$0xff]   ;;  %v1559_v21 = vadd.f32 %v7698_v63, %v7732_v2  ;;  %v6448_v63 = vld [vmem:[#allocation5 + $0x420] ss:$16 sps:$4 sm:$0xff]   ;;  %v1585_v16 = vadd.f32 %v1584_v28, %v7706_v56 }
 0x224   : > { %4238 = vmatprep.subr.bf16.mxu1 %v6435_v45  ;;  %v1688_v45 = vadd.f32 %v1687_v53, %v7712_v33  ;;  %v7874_v53 = vpack.c.bf16 %v1575_v18, %v1571_v19  ;;  %v6466_v28 = vld [vmem:[#allocation5 + $0x5c0] ss:$16 sps:$4 sm:$0xff]  }
 0x225   : > { %v7868_v27 = vpack.c.bf16 %v1563_v13, %v1559_v21 }
 0x226   : > { %4126 = vmatpush1.bf16.msra.mxu0 %v6430_v54  ;;  %v1672_v54 = vadd.f32 %v7708_v14, %v7744_v46  ;;  %v6456_v14 = vld [vmem:[#allocation5 + $0x404] ss:$16 sps:$4 sm:$0xff]   ;;  %v7876_v50 = vpack.c.bf16 %v1688_v45, %v1684_v6  ;;  %v7900_v45 = vpack.c.bf16 %v1686_v36, %v1682_v0  ;;  %v1579_v36 = vadd.f32 %v7832_v3, %v7732_v2  ;;  %v6475_v3 = vld [vmem:[#allocation5 + $0x7a0] ss:$16 sps:$4 sm:$0xff]  }
 0x227   : > { %4239 = vmatpush1.bf16.msra.mxu1 %v6433_v26  ;;  %4127 = vmatprep.subr.bf16.mxu0 %v6438_v17  ;;  %v6451_v17 = vld [vmem:[#allocation5 + $0x620] ss:$16 sps:$4 sm:$0xff]  }
 0x228   : > { %3946 = vmatmul.mubr.bf16.gmra.mxu0 %v7840_v47  ;;  %4240 = vmatprep.subr.bf16.mxu1 %v6441_v23  ;;  %v7872_v26 = vpack.c.bf16 %v1676_v55, %v1672_v54  ;;  %v1697_v23 = vpop.f32.mrf.mxu1  ;;  %v1581_v55 = vadd.f32 %v1580_v43, %v7706_v56  ;;  %v6463_v54 = vld [vmem:[#allocation5 + $0x7e0] ss:$16 sps:$4 sm:$0xff]   ;;  %v6468_v43 = vld [vmem:[#allocation5 + $0x5c4] ss:$16 sps:$4 sm:$0xff]  }
 0x229   : > { %4059 = vmatmul.mubr.bf16.gmra.mxu1 %v7844_v30  ;;  %3955 = vmatprep.mubr.bf16.mxu0 %v7846_v9 }
 0x22a   : > { %4068 = vmatprep.mubr.bf16.mxu1 %v7848_v10  ;;  %4128 = vmatpush1.bf16.msra.mxu0 %v6436_v60  ;;  %v6457_v60 = vld [vmem:[#allocation5 + $0x600] ss:$16 sps:$4 sm:$0xff]  }
 0x22b   : > { %4241 = vmatpush1.bf16.msra.mxu1 %v6439_v57  ;;  %4129 = vmatprep.subr.bf16.mxu0 %v6444_v25  ;;  %v6462_v57 = vld [vmem:[#allocation5 + $0x5e4] ss:$16 sps:$4 sm:$0xff]   ;;  %v1569_v25 = vadd.f32 %v7772_v59, %v7732_v2  ;;  %v6460_v59 = vld [vmem:[#allocation5 + $0x5e0] ss:$16 sps:$4 sm:$0xff]  }
 0x22c   : > { %4242 = vmatprep.subr.bf16.mxu1 %v6447_v12  ;;  %v1698_v12 = vadd.f32 %v1697_v23, %v7712_v33 }
 0x22d   : > { %v7897_v18 = vpack.c.bf16 %v1573_v8, %v1569_v25  ;;  %v6469_v8 = vld [vmem:[#allocation5 + $0x7c0] ss:$16 sps:$4 sm:$0xff]  }
 0x22e   : > { %4130 = vmatpush1.bf16.msra.mxu0 %v6442_v37  ;;  %v6465_v37 = vld [vmem:[#allocation5 + $0x7e4] ss:$16 sps:$4 sm:$0xff]  }
 0x22f   : > { %4243 = vmatpush1.bf16.msra.mxu1 %v6445_v7  ;;  %4131 = vmatprep.subr.bf16.mxu0 %v6450_v5  ;;  %v1694_v7 = vadd.f32 %v1693_v41, %v7712_v33  ;;  %v6471_v41 = vld [vmem:[#allocation5 + $0x7c4] ss:$16 sps:$4 sm:$0xff]  }
 0x230   : > { %3956 = vmatmul.mubr.bf16.gmra.mxu0 %v7868_v27  ;;  %4244 = vmatprep.subr.bf16.mxu1 %v6453_v42  ;;  %v7902_v42 = vpack.c.bf16 %v1585_v16, %v1581_v55  ;;  %v6480_v55 = vld [vmem:[#allocation5 + $0x584] ss:$16 sps:$4 sm:$0xff]  }
 0x231   : > { %4069 = vmatmul.mubr.bf16.gmra.mxu1 %v7872_v26  ;;  %3965 = vmatprep.mubr.bf16.mxu0 %v7874_v53  ;;  %v7904_v19 = vpack.c.bf16 %v1698_v12, %v1694_v7  ;;  %v6472_v12 = vld [vmem:[#allocation5 + $0x5a0] ss:$16 sps:$4 sm:$0xff]  }
 0x232   : > { %4078 = vmatprep.mubr.bf16.mxu1 %v7876_v50  ;;  %4132 = vmatpush1.bf16.msra.mxu0 %v6448_v63  ;;  %v1583_v63 = vadd.f32 %v1582_v24, %v7732_v2  ;;  %v6477_v24 = vld [vmem:[#allocation5 + $0x7a4] ss:$16 sps:$4 sm:$0xff]  }
 0x233   : > { %4245 = vmatpush1.bf16.msra.mxu1 %v6451_v17  ;;  %4133 = vmatprep.subr.bf16.mxu0 %v6456_v14 }
 0x234   : > { %v7890_v13 = vpop.f32.mrf.mxu0  ;;  %v7892_v39 = vpop.f32.mrf.mxu1  ;;  %4246 = vmatprep.subr.bf16.mxu1 %v6459_v1  ;;  %v1696_v1 = vadd.f32 %v7866_v22, %v7744_v46  ;;  %v7920_v25 = vpack.c.bf16 %v1583_v63, %v1579_v36  ;;  %v6489_v63 = vld [vmem:[#allocation5 + $0x764] ss:$16 sps:$4 sm:$0xff]   ;;  %v6496_v36 = vld [vmem:[#allocation5 + $0x520] ss:$16 sps:$4 sm:$0xff]  }
 0x236   : > { %v1590_v5 = vpop.f32.mrf.mxu0  ;;  %v1703_v21 = vpop.f32.mrf.mxu1  ;;  %4134 = vmatpush1.bf16.msra.mxu0 %v6454_v58  ;;  %v6474_v58 = vld [vmem:[#allocation5 + $0x5a4] ss:$16 sps:$4 sm:$0xff]  }
 0x237   : > { %4247 = vmatpush1.bf16.msra.mxu1 %v6457_v60  ;;  %4135 = vmatprep.subr.bf16.mxu0 %v6462_v57  ;;  %v1692_v60 = vadd.f32 %v7838_v51, %v7744_v46  ;;  %v1591_v57 = vadd.f32 %v1590_v5, %v7706_v56  ;;  %v1704_v22 = vadd.f32 %v1703_v21, %v7712_v33  ;;  %v6483_v51 = vld [vmem:[#allocation5 + $0x784] ss:$16 sps:$4 sm:$0xff]   ;;  %v6478_v21 = vld [vmem:[#allocation5 + $0x580] ss:$16 sps:$4 sm:$0xff]  }
 0x238   : > { %v1592_v44 = vpop.f32.mrf.mxu0  ;;  %v1705_v6 = vpop.f32.mrf.mxu1  ;;  %3966 = vmatmul.mubr.bf16.gmra.mxu0 %v7897_v18  ;;  %4248 = vmatprep.subr.bf16.mxu1 %v6465_v37 }
 0x239   : > { %4079 = vmatmul.mubr.bf16.gmra.mxu1 %v7900_v45  ;;  %3975 = vmatprep.mubr.bf16.mxu0 %v7902_v42  ;;  %v7923_v37 = vpack.c.bf16 %v1696_v1, %v1692_v60  ;;  %v1593_v5 = vadd.f32 %v1592_v44, %v7732_v2  ;;  %v6484_v44 = vld [vmem:[#allocation5 + $0x560] ss:$16 sps:$4 sm:$0xff]   ;;  %v6492_v1 = vld [vmem:[#allocation5 + $0x544] ss:$16 sps:$4 sm:$0xff]  }
 0x23a   : > { %4088 = vmatprep.mubr.bf16.mxu1 %v7904_v19  ;;  %v1594_v17 = vpop.f32.mrf.mxu0  ;;  %v1707_v14 = vpop.f32.mrf.mxu1  ;;  %4136 = vmatpush2.bf16.msra.mxu0 %v6460_v59  ;;  %v1706_v59 = vadd.f32 %v1705_v6, %v7744_v46  ;;  %v6487_v6 = vld [vmem:[#allocation5 + $0x760] ss:$16 sps:$4 sm:$0xff]  }
 0x23b   : > { %v1595_v23 = vadd.f32 %v1594_v17, %v7706_v56  ;;  %4249 = vmatpush2.bf16.msra.mxu1 %v6463_v54  ;;  %v1708_v16 = vadd.f32 %v1707_v14, %v7712_v33  ;;  %4137 = vmatprep.subr.bf16.mxu0 %v6468_v43  ;;  %v6481_v54 = vld [vmem:[#allocation5 + $0x780] ss:$16 sps:$4 sm:$0xff]   ;;  %v6486_v43 = vld [vmem:[#allocation5 + $0x564] ss:$16 sps:$4 sm:$0xff]   ;;  %v1702_v17 = vadd.f32 %v7892_v39, %v7744_v46 }
 0x23c   : > { %4250 = vmatprep.subr.bf16.mxu1 %v6471_v41  ;;  %v1589_v41 = vadd.f32 %v7890_v13, %v7732_v2  ;;  %v6490_v13 = vld [vmem:[#allocation5 + $0x540] ss:$16 sps:$4 sm:$0xff]  }
 0x23d   : > { %v7925_v0 = vpack.c.bf16 %v1595_v23, %v1591_v57  ;;  %v7927_v7 = vpack.c.bf16 %v1708_v16, %v1704_v22  ;;  %v6495_v23 = vld [vmem:[#allocation5 + $0x744] ss:$16 sps:$4 sm:$0xff]   ;;  %v6493_v39 = vld [vmem:[#allocation5 + $0x740] ss:$16 sps:$4 sm:$0xff]  }
 0x23e   : > { %4138 = vmatpush2.bf16.msra.mxu0 %v6466_v28  ;;  %v7939_v14 = vpack.c.bf16 %v1593_v5, %v1589_v41  ;;  %v7941_v28 = vpack.c.bf16 %v1706_v59, %v1702_v17  ;;  %v6499_v16 = vld [vmem:[#allocation5 + $0x720] ss:$16 sps:$4 sm:$0xff]   ;;  %v6507_v22 = vld [vmem:[#allocation5 + $0x704] ss:$16 sps:$4 sm:$0xff]   ;;  %v6510_v59 = vld [vmem:[#allocation5 + $0xec] ss:$16 sps:$4 sm:$0xff]  }
 0x23f   : > { %4251 = vmatpush2.bf16.msra.mxu1 %v6469_v8  ;;  %4139 = vmatprep.subr.bf16.mxu0 %v6474_v58  ;;  %v6498_v8 = vld [vmem:[#allocation5 + $0x524] ss:$16 sps:$4 sm:$0xff]  }
 0x240   : > { %3976 = vmatmul.mubr.bf16.gmra.mxu0 %v7920_v25  ;;  %4252 = vmatprep.subr.bf16.mxu1 %v6477_v24  ;;  %v6501_v58 = vld [vmem:[#allocation5 + $0x724] ss:$16 sps:$4 sm:$0xff]  }
 0x241   : > { %4089 = vmatmul.mubr.bf16.gmra.mxu1 %v7923_v37  ;;  %3985 = vmatprep.mubr.bf16.mxu0 %v7925_v0  ;;  %v6504_v24 = vld [vmem:[#allocation5 + $0x504] ss:$16 sps:$4 sm:$0xff]  }
 0x242   : > { %4098 = vmatprep.mubr.bf16.mxu1 %v7927_v7  ;;  %4140 = vmatpush2.bf16.msra.mxu0 %v6472_v12 }
 0x243   : > { %4253 = vmatpush2.bf16.msra.mxu1 %v6475_v3  ;;  %4141 = vmatprep.subr.bf16.mxu0 %v6480_v55  ;;  %v6502_v55 = vld [vmem:[#allocation5 + $0x500] ss:$16 sps:$4 sm:$0xff]  }
 0x244   : > { %4254 = vmatprep.subr.bf16.mxu1 %v6483_v51  ;;  %v6505_v51 = vld [vmem:[#allocation5 + $0x700] ss:$16 sps:$4 sm:$0xff]  }
 0x246   : > { %4142 = vmatpush2.bf16.msra.mxu0 %v6478_v21 }
 0x247   : > { %4255 = vmatpush2.bf16.msra.mxu1 %v6481_v54  ;;  %4143 = vmatprep.subr.bf16.mxu0 %v6486_v43  ;;  %v6513_v54 = vld [vmem:[#allocation5 + $0x2ec] ss:$16 sps:$4 sm:$0xff]  }
 0x248   : > { %3986 = vmatmul.mubr.bf16.gmra.mxu0 %v7939_v14  ;;  %4256 = vmatprep.subr.bf16.mxu1 %v6489_v63 }
 0x249   : > { %4099 = vmatmul.mubr.bf16.gmra.mxu1 %v7941_v28 }
 0x24a   : > { %4144 = vmatpush2.bf16.msra.mxu0 %v6484_v44  ;;  %v1156_v44 = vsub.s32 5, %v7194_v31 }
 0x24b   : > { %4257 = vmatpush2.bf16.msra.mxu1 %v6487_v6  ;;  %4145 = vmatprep.subr.bf16.mxu0 %v6492_v1  ;;  %v1164_v6 = vsub.s32 7, %v7194_v31 }
 0x24c   : > { %4258 = vmatprep.subr.bf16.mxu1 %v6495_v23 }
 0x24e   : > { %4146 = vmatpush2.bf16.msra.mxu0 %v6490_v13 }
 0x24f   : > { %4259 = vmatpush2.bf16.msra.mxu1 %v6493_v39  ;;  %4147 = vmatprep.subr.bf16.mxu0 %v6498_v8 }
 0x250   : > { %v1598_v60 = vpop.f32.mrf.mxu0  ;;  %v1711_v57 = vpop.f32.mrf.mxu1  ;;  %4260 = vmatprep.subr.bf16.mxu1 %v6501_v58 }
 0x251   : > { %v1599_v8 = vadd.f32 %v1598_v60, %v7732_v2  ;;  %v1712_v58 = vadd.f32 %v1711_v57, %v7744_v46  ;;  %v7969_v60 = vrot.slane %v7696_v15, %v1164_v6 }
 0x252   : > { %v1600_v12 = vpop.f32.mrf.mxu0  ;;  %v1713_v3 = vpop.f32.mrf.mxu1  ;;  %4148 = vmatpush2.bf16.msra.mxu0 %v6496_v36  ;;  %v1152_v36 = vsub.s32 4, %v7194_v31 }
 0x253   : > { %4261 = vmatpush2.bf16.msra.mxu1 %v6499_v16  ;;  %4149 = vmatprep.subr.bf16.mxu0 %v6504_v24  ;;  %v1601_v1 = vadd.f32 %v1600_v12, %v7706_v56  ;;  %v1714_v23 = vadd.f32 %v1713_v3, %v7712_v33  ;;  %v1160_v24 = vsub.s32 6, %v7194_v31 }
 0x254   : > { %v1602_v5 = vpop.f32.mrf.mxu0  ;;  %v1715_v21 = vpop.f32.mrf.mxu1  ;;  %4262 = vmatprep.subr.bf16.mxu1 %v6507_v22  ;;  %v7974_v31 = vrot.slane %v7696_v15, %v1152_v36 }
 0x255   : > { %v1603_v43 = vadd.f32 %v1602_v5, %v7732_v2  ;;  %v1716_v41 = vadd.f32 %v1715_v21, %v7744_v46  ;;  %v7966_v46 = vrot.slane %v7696_v15, %v1156_v44  ;;  %v7977_v57 = vrot.slane %v7696_v15, %v1160_v24 }
 0x256   : > { %v1604_v63 = vpop.f32.mrf.mxu0  ;;  %v1717_v17 = vpop.f32.mrf.mxu1  ;;  %4150 = vmatpush2.bf16.msra.mxu0 %v6502_v55 }
 0x257   : > { %v1605_v13 = vadd.f32 %v1604_v63, %v7706_v56  ;;  %v1718_v39 = vadd.f32 %v1717_v17, %v7712_v33  ;;  %4263 = vmatpush2.bf16.msra.mxu1 %v6505_v51  ;;  %4345 = vmatprep.subr.bf16.mxu0 %v6510_v59  ;;  %v7961_v56 = vpack.c.bf16 %v1603_v43, %v1599_v8  ;;  %v6508_v8 = vld [vmem:[#allocation5 + $0xe8] ss:$16 sps:$4 sm:$0xff]  }
 0x258   : > { %v1754_v16 = vpop.f32.mrf.mxu0  ;;  %v1867_v22 = vpop.f32.mrf.mxu1  ;;  %4458 = vmatprep.subr.bf16.mxu1 %v6513_v54  ;;  %v7963_v33 = vpack.c.bf16 %v1716_v41, %v1712_v58  ;;  %v6511_v58 = vld [vmem:[#allocation5 + $0x2e8] ss:$16 sps:$4 sm:$0xff]  }
 0x259   : > { %v7957_v12 = vpack.c.bf16 %v1605_v13, %v1601_v1  ;;  %v7959_v3 = vpack.c.bf16 %v1718_v39, %v1714_v23  ;;  %v1755_v44 = vadd.f32 %v1754_v16, %v7974_v31  ;;  %v1868_v6 = vadd.f32 %v1867_v22, %v7977_v57 }
 0x25a   : > { %v1756_v55 = vpop.f32.mrf.mxu0  ;;  %v1869_v2 = vpop.f32.mrf.mxu1 }
 0x25b   : > { %3995 = vmatprep.mubr.bf16.mxu0 %v7957_v12  ;;  %4108 = vmatprep.mubr.bf16.mxu1 %v7959_v3  ;;  %v1757_v41 = vadd.f32 %v1756_v55, %v7966_v46  ;;  %v1870_v63 = vadd.f32 %v1869_v2, %v7969_v60 }
 0x25c   : > { %v1758_v51 = vpop.f32.mrf.mxu0  ;;  %v1871_v5 = vpop.f32.mrf.mxu1  ;;  %3996 = vmatmul.mubr.bf16.gmra.mxu0 %v7961_v56  ;;  %4109 = vmatmul.mubr.bf16.gmra.mxu1 %v7963_v33 }
 0x25d   : > { %v1759_v21 = vadd.f32 %v1758_v51, %v7974_v31  ;;  %v1872_v59 = vadd.f32 %v1871_v5, %v7977_v57  ;;  %v6516_v51 = vld [vmem:[#allocation5 + $0xcc] ss:$16 sps:$4 sm:$0xff]  }
 0x25e   : > { %v1760_v54 = vpop.f32.mrf.mxu0  ;;  %v1873_v43 = vpop.f32.mrf.mxu1  ;;  %v6519_v5 = vld [vmem:[#allocation5 + $0x2cc] ss:$16 sps:$4 sm:$0xff]  }
 0x25f   : > { %v1761_v17 = vadd.f32 %v1760_v54, %v7966_v46  ;;  %v1874_v15 = vadd.f32 %v1873_v43, %v7969_v60  ;;  %v7993_v36 = vpack.c.bf16 %v1759_v21, %v1755_v44  ;;  %v7995_v24 = vpack.c.bf16 %v1872_v59, %v1868_v6  ;;  %v6514_v21 = vld [vmem:[#allocation5 + $0xc8] ss:$16 sps:$4 sm:$0xff]  }
 0x260   : > { %v1764_v1 = vpop.f32.mrf.mxu0  ;;  %v1877_v23 = vpop.f32.mrf.mxu1 }
 0x261   : > { %v7989_v13 = vpack.c.bf16 %v1761_v17, %v1757_v41  ;;  %v7991_v39 = vpack.c.bf16 %v1874_v15, %v1870_v63  ;;  %9016 = vst [vmem:[#allocation20_spill] sm:$0xff] %v7995_v24  ;;  %v6517_v63 = vld [vmem:[#allocation5 + $0x2c8] ss:$16 sps:$4 sm:$0xff]   ;;  %v6522_v17 = vld [vmem:[#allocation5 + $0xac] ss:$16 sps:$4 sm:$0xff]  }
 0x262   : > { %v1766_v55 = vpop.f32.mrf.mxu0  ;;  %v1879_v2 = vpop.f32.mrf.mxu1 }
 0x263   : > { %4151 = vmatprep.mubr.bf16.mxu0 %v7989_v13  ;;  %4264 = vmatprep.mubr.bf16.mxu1 %v7991_v39  ;;  %v1767_v15 = vadd.f32 %v1766_v55, %v7966_v46  ;;  %v1880_v44 = vadd.f32 %v1879_v2, %v7969_v60 }
 0x264   : > { %v1768_v16 = vpop.f32.mrf.mxu0  ;;  %v1881_v22 = vpop.f32.mrf.mxu1  ;;  %4152 = vmatmul.mubr.bf16.vlgmr.msra.gmra.mxu0 %v7993_v36  ;;  %4265 = vmatmul.mubr.bf16.vlgmr.msra.gmra.mxu1 %v7995_v24 }
 0x265   : > { %4346 = vmatpush1.bf16.msra.mxu0 %v6508_v8  ;;  %4459 = vmatpush1.bf16.msra.mxu1 %v6511_v58  ;;  %v1769_v59 = vadd.f32 %v1768_v16, %v7974_v31  ;;  %v1882_v54 = vadd.f32 %v1881_v22, %v7977_v57  ;;  %v1765_v58 = vadd.f32 %v1764_v1, %v7974_v31  ;;  %v6523_v1 = vld [vmem:[#allocation5 + $0x2a8] ss:$16 sps:$4 sm:$0xff]  }
 0x266   : > { %v1770_v43 = vpop.f32.mrf.mxu0  ;;  %v1883_v41 = vpop.f32.mrf.mxu1  ;;  %4347 = vmatprep.subr.bf16.mxu0 %v6516_v51  ;;  %4460 = vmatprep.subr.bf16.mxu1 %v6519_v5  ;;  %v1878_v16 = vadd.f32 %v1877_v23, %v7977_v57  ;;  %v6520_v5 = vld [vmem:[#allocation5 + $0xa8] ss:$16 sps:$4 sm:$0xff]   ;;  %v6531_v23 = vld [vmem:[#allocation5 + $0x28c] ss:$16 sps:$4 sm:$0xff]  }
 0x267   : > { %v1771_v6 = vadd.f32 %v1770_v43, %v7966_v46  ;;  %v1884_v8 = vadd.f32 %v1883_v41, %v7969_v60  ;;  %v8013_v55 = vpack.c.bf16 %v1769_v59, %v1765_v58 }
 0x268   : > { %v1774_v48 = vpop.f32.mrf.mxu0  ;;  %v1887_v22 = vpop.f32.mrf.mxu1  ;;  %v8015_v2 = vpack.c.bf16 %v1882_v54, %v1878_v16 }
 0x269   : > { %v8009_v62 = vpack.c.bf16 %v1771_v6, %v1767_v15  ;;  %v8011_v51 = vpack.c.bf16 %v1884_v8, %v1880_v44  ;;  %4348 = vmatpush1.bf16.msra.mxu0 %v6514_v21  ;;  %9018 = vst [vmem:[#allocation22_spill] sm:$0xff] %v8013_v55  ;;  %4461 = vmatpush1.bf16.msra.mxu1 %v6517_v63  ;;  %v6526_v21 = vld [vmem:[#allocation5 + $0x88] ss:$16 sps:$4 sm:$0xff]   ;;  %v6534_v8 = vld [vmem:[#allocation5 + $0x6c] ss:$16 sps:$4 sm:$0xff]  }
 0x26a   : > { %9019 = vst [vmem:[#allocation23_spill] sm:$0xff] %v8015_v2  ;;  %v1776_v43 = vpop.f32.mrf.mxu0  ;;  %v1889_v41 = vpop.f32.mrf.mxu1  ;;  %4349 = vmatprep.subr.bf16.mxu0 %v6522_v17  ;;  %4462 = vmatprep.subr.bf16.mxu1 %v6525_v35  ;;  %v6529_v6 = vld [vmem:[#allocation5 + $0x288] ss:$16 sps:$4 sm:$0xff]   ;;  %v1775_v35 = vadd.f32 %v1774_v48, %v7974_v31 }
 0x26b   : > { %9017 = vst [vmem:[#allocation21_spill] sm:$0xff] %v8011_v51  ;;  %4161 = vmatprep.mubr.bf16.mxu0 %v8009_v62  ;;  %4274 = vmatprep.mubr.bf16.mxu1 %v8011_v51  ;;  %v1777_v58 = vadd.f32 %v1776_v43, %v7966_v46  ;;  %v1890_v16 = vadd.f32 %v1889_v41, %v7969_v60  ;;  %v6532_v51 = vld [vmem:[#allocation5 + $0x68] ss:$16 sps:$4 sm:$0xff]   ;;  %v6537_v43 = vld [vmem:[#allocation5 + $0x26c] ss:$16 sps:$4 sm:$0xff]  }
 0x26c   : > { %v1778_v15 = vpop.f32.mrf.mxu0  ;;  %v1891_v44 = vpop.f32.mrf.mxu1  ;;  %4162 = vmatmul.mubr.bf16.gmra.mxu0 %v8013_v55  ;;  %4275 = vmatmul.mubr.bf16.gmra.mxu1 %v8015_v2  ;;  %v6535_v48 = vld [vmem:[#allocation5 + $0x268] ss:$16 sps:$4 sm:$0xff]  }
 0x26d   : > { %4350 = vmatpush1.bf16.msra.mxu0 %v6520_v5  ;;  %v1779_v59 = vadd.f32 %v1778_v15, %v7974_v31  ;;  %v1892_v54 = vadd.f32 %v1891_v44, %v7977_v57  ;;  %4463 = vmatpush1.bf16.msra.mxu1 %v6523_v1  ;;  %v1888_v15 = vadd.f32 %v1887_v22, %v7977_v57  ;;  %v6543_v22 = vld [vmem:[#allocation5 + $0x24c] ss:$16 sps:$4 sm:$0xff]  }
 0x26e   : > { %v1780_v63 = vpop.f32.mrf.mxu0  ;;  %v1893_v17 = vpop.f32.mrf.mxu1  ;;  %4351 = vmatprep.subr.bf16.mxu0 %v6528_v34  ;;  %4464 = vmatprep.subr.bf16.mxu1 %v6531_v23 }
 0x26f   : > { %v1781_v55 = vadd.f32 %v1780_v63, %v7966_v46  ;;  %v1894_v5 = vadd.f32 %v1893_v17, %v7969_v60  ;;  %v8033_v24 = vpack.c.bf16 %v1779_v59, %v1775_v35  ;;  %v8035_v41 = vpack.c.bf16 %v1892_v54, %v1888_v15  ;;  %v6540_v17 = vld [vmem:[#allocation5 + $0x4c] ss:$16 sps:$4 sm:$0xff]  }
 0x270   : > { %v1784_v44 = vpop.f32.mrf.mxu0  ;;  %v1897_v1 = vpop.f32.mrf.mxu1 }
 0x271   : > { %v8029_v2 = vpack.c.bf16 %v1781_v55, %v1777_v58  ;;  %v8031_v34 = vpack.c.bf16 %v1894_v5, %v1890_v16  ;;  %4352 = vmatpush1.bf16.msra.mxu0 %v6526_v21  ;;  %9022 = vst [vmem:[#allocation26_spill] sm:$0xff] %v8033_v24  ;;  %9023 = vst [vmem:[#allocation27_spill] sm:$0xff] %v8035_v41  ;;  %4465 = vmatpush1.bf16.msra.mxu1 %v6529_v6  ;;  %v6538_v21 = vld [vmem:[#allocation5 + $0x48] ss:$16 sps:$4 sm:$0xff]   ;;  %v6546_v5 = vld [vmem:[#allocation5 + $0x2c] ss:$16 sps:$4 sm:$0xff]  }
 0x272   : > { %v1786_v63 = vpop.f32.mrf.mxu0  ;;  %v1899_v23 = vpop.f32.mrf.mxu1  ;;  %4353 = vmatprep.subr.bf16.mxu0 %v6534_v8  ;;  %4466 = vmatprep.subr.bf16.mxu1 %v6537_v43  ;;  %v6541_v16 = vld [vmem:[#allocation5 + $0x248] ss:$16 sps:$4 sm:$0xff]   ;;  %v1785_v43 = vadd.f32 %v1784_v44, %v7974_v31 }
 0x273   : > { %9020 = vst [vmem:[#allocation24_spill] sm:$0xff] %v8029_v2  ;;  %9021 = vst [vmem:[#allocation25_spill] sm:$0xff] %v8031_v34  ;;  %4171 = vmatprep.mubr.bf16.mxu0 %v8029_v2  ;;  %4284 = vmatprep.mubr.bf16.mxu1 %v8031_v34  ;;  %v1787_v35 = vadd.f32 %v1786_v63, %v7966_v46  ;;  %v1900_v15 = vadd.f32 %v1899_v23, %v7969_v60  ;;  %v6544_v34 = vld [vmem:[#allocation5 + $0x28] ss:$16 sps:$4 sm:$0xff]   ;;  %v6549_v63 = vld [vmem:[#allocation5 + $0x22c] ss:$16 sps:$4 sm:$0xff]  }
 0x274   : > { %v1788_v55 = vpop.f32.mrf.mxu0  ;;  %v1901_v58 = vpop.f32.mrf.mxu1  ;;  %4172 = vmatmul.mubr.bf16.gmra.mxu0 %v8033_v24  ;;  %4285 = vmatmul.mubr.bf16.gmra.mxu1 %v8035_v41  ;;  %v6547_v44 = vld [vmem:[#allocation5 + $0x228] ss:$16 sps:$4 sm:$0xff]  }
 0x275   : > { %4354 = vmatpush1.bf16.msra.mxu0 %v6532_v51  ;;  %v1789_v59 = vadd.f32 %v1788_v55, %v7974_v31  ;;  %v1902_v54 = vadd.f32 %v1901_v58, %v7977_v57  ;;  %4467 = vmatpush1.bf16.msra.mxu1 %v6535_v48  ;;  %v1898_v55 = vadd.f32 %v1897_v1, %v7977_v57 }
 0x276   : > { %v1790_v6 = vpop.f32.mrf.mxu0  ;;  %v1903_v8 = vpop.f32.mrf.mxu1  ;;  %4355 = vmatprep.subr.bf16.mxu0 %v6540_v17  ;;  %4468 = vmatprep.subr.bf16.mxu1 %v6543_v22 }
 0x277   : > { %v1791_v24 = vadd.f32 %v1790_v6, %v7966_v46  ;;  %v1904_v51 = vadd.f32 %v1903_v8, %v7969_v60  ;;  %v8053_v2 = vpack.c.bf16 %v1789_v59, %v1785_v43  ;;  %v8055_v23 = vpack.c.bf16 %v1902_v54, %v1898_v55  ;;  %v6552_v8 = vld [vmem:[#allocation5 + $0xc] ss:$16 sps:$4 sm:$0xff]  }
 0x278   : > { %v1794_v58 = vpop.f32.mrf.mxu0  ;;  %v1907_v48 = vpop.f32.mrf.mxu1 }
 0x279   : > { %v8049_v41 = vpack.c.bf16 %v1791_v24, %v1787_v35  ;;  %v8051_v17 = vpack.c.bf16 %v1904_v51, %v1900_v15  ;;  %4356 = vmatpush1.bf16.msra.mxu0 %v6538_v21  ;;  %9026 = vst [vmem:[#allocation30_spill] sm:$0xff] %v8053_v2  ;;  %9027 = vst [vmem:[#allocation31_spill] sm:$0xff] %v8055_v23  ;;  %4469 = vmatpush1.bf16.msra.mxu1 %v6541_v16  ;;  %v6555_v24 = vld [vmem:[#allocation5 + $0x20c] ss:$16 sps:$4 sm:$0xff]   ;;  %v6550_v21 = vld [vmem:[#allocation5 + $0x8] ss:$16 sps:$4 sm:$0xff]  }
 0x27a   : > { %v1796_v6 = vpop.f32.mrf.mxu0  ;;  %v1909_v22 = vpop.f32.mrf.mxu1  ;;  %4357 = vmatprep.subr.bf16.mxu0 %v6546_v5  ;;  %4470 = vmatprep.subr.bf16.mxu1 %v6549_v63  ;;  %v6553_v15 = vld [vmem:[#allocation5 + $0x208] ss:$16 sps:$4 sm:$0xff]   ;;  %v6558_v51 = vld [vmem:[#allocation5 + $0x1ec] ss:$16 sps:$4 sm:$0xff]   ;;  %v1795_v63 = vadd.f32 %v1794_v58, %v7974_v31 }
 0x27b   : > { %9024 = vst [vmem:[#allocation28_spill] sm:$0xff] %v8049_v41  ;;  %9025 = vst [vmem:[#allocation29_spill] sm:$0xff] %v8051_v17  ;;  %4181 = vmatprep.mubr.bf16.mxu0 %v8049_v41  ;;  %4294 = vmatprep.mubr.bf16.mxu1 %v8051_v17  ;;  %v1797_v43 = vadd.f32 %v1796_v6, %v7966_v46  ;;  %v1910_v55 = vadd.f32 %v1909_v22, %v7969_v60  ;;  %v6556_v17 = vld [vmem:[#allocation5 + $0x1e8] ss:$16 sps:$4 sm:$0xff]   ;;  %v6561_v6 = vld [vmem:[#allocation5 + $0x3ec] ss:$16 sps:$4 sm:$0xff]  }
 0x27c   : > { %v1798_v1 = vpop.f32.mrf.mxu0  ;;  %v1911_v35 = vpop.f32.mrf.mxu1  ;;  %4182 = vmatmul.mubr.bf16.gmra.mxu0 %v8053_v2  ;;  %4295 = vmatmul.mubr.bf16.gmra.mxu1 %v8055_v23  ;;  %v6559_v58 = vld [vmem:[#allocation5 + $0x3e8] ss:$16 sps:$4 sm:$0xff]  }
 0x27d   : > { %4358 = vmatpush1.bf16.msra.mxu0 %v6544_v34  ;;  %v1799_v59 = vadd.f32 %v1798_v1, %v7974_v31  ;;  %v1912_v54 = vadd.f32 %v1911_v35, %v7977_v57  ;;  %4471 = vmatpush1.bf16.msra.mxu1 %v6547_v44  ;;  %v1908_v1 = vadd.f32 %v1907_v48, %v7977_v57 }
 0x27e   : > { %v1800_v16 = vpop.f32.mrf.mxu0  ;;  %v1913_v5 = vpop.f32.mrf.mxu1  ;;  %4359 = vmatprep.subr.bf16.mxu0 %v6552_v8  ;;  %4472 = vmatprep.subr.bf16.mxu1 %v6555_v24 }
 0x27f   : > { %v1801_v2 = vadd.f32 %v1800_v16, %v7966_v46  ;;  %v1914_v34 = vadd.f32 %v1913_v5, %v7969_v60  ;;  %v8073_v41 = vpack.c.bf16 %v1799_v59, %v1795_v63  ;;  %v8075_v22 = vpack.c.bf16 %v1912_v54, %v1908_v1  ;;  %v6564_v5 = vld [vmem:[#allocation5 + $0x1cc] ss:$16 sps:$4 sm:$0xff]  }
 0x280   : > { %v1804_v35 = vpop.f32.mrf.mxu0  ;;  %v1917_v44 = vpop.f32.mrf.mxu1 }
 0x281   : > { %v8069_v23 = vpack.c.bf16 %v1801_v2, %v1797_v43  ;;  %v8071_v8 = vpack.c.bf16 %v1914_v34, %v1910_v55  ;;  %4360 = vmatpush1.bf16.msra.mxu0 %v6550_v21  ;;  %9030 = vst [vmem:[#allocation34_spill] sm:$0xff] %v8073_v41  ;;  %9031 = vst [vmem:[#allocation35_spill] sm:$0xff] %v8075_v22  ;;  %4473 = vmatpush1.bf16.msra.mxu1 %v6553_v15  ;;  %v6567_v2 = vld [vmem:[#allocation5 + $0x3cc] ss:$16 sps:$4 sm:$0xff]   ;;  %v6562_v21 = vld [vmem:[#allocation5 + $0x1c8] ss:$16 sps:$4 sm:$0xff]  }
 0x282   : > { %v1806_v16 = vpop.f32.mrf.mxu0  ;;  %v1919_v24 = vpop.f32.mrf.mxu1  ;;  %4361 = vmatprep.subr.bf16.mxu0 %v6558_v51  ;;  %4474 = vmatprep.subr.bf16.mxu1 %v6561_v6  ;;  %v6565_v55 = vld [vmem:[#allocation5 + $0x3c8] ss:$16 sps:$4 sm:$0xff]   ;;  %v6570_v34 = vld [vmem:[#allocation5 + $0x1ac] ss:$16 sps:$4 sm:$0xff]   ;;  %v1805_v6 = vadd.f32 %v1804_v35, %v7974_v31 }
 0x283   : > { %9028 = vst [vmem:[#allocation32_spill] sm:$0xff] %v8069_v23  ;;  %9029 = vst [vmem:[#allocation33_spill] sm:$0xff] %v8071_v8  ;;  %4191 = vmatprep.mubr.bf16.mxu0 %v8069_v23  ;;  %4304 = vmatprep.mubr.bf16.mxu1 %v8071_v8  ;;  %v1807_v63 = vadd.f32 %v1806_v16, %v7966_v46  ;;  %v1920_v1 = vadd.f32 %v1919_v24, %v7969_v60  ;;  %v6568_v8 = vld [vmem:[#allocation5 + $0x1a8] ss:$16 sps:$4 sm:$0xff]   ;;  %v6573_v16 = vld [vmem:[#allocation5 + $0x3ac] ss:$16 sps:$4 sm:$0xff]  }
 0x284   : > { %v1808_v48 = vpop.f32.mrf.mxu0  ;;  %v1921_v43 = vpop.f32.mrf.mxu1  ;;  %4192 = vmatmul.mubr.bf16.gmra.mxu0 %v8073_v41  ;;  %4305 = vmatmul.mubr.bf16.gmra.mxu1 %v8075_v22  ;;  %v6571_v35 = vld [vmem:[#allocation5 + $0x3a8] ss:$16 sps:$4 sm:$0xff]  }
 0x285   : > { %4362 = vmatpush2.bf16.msra.mxu0 %v6556_v17  ;;  %v1809_v59 = vadd.f32 %v1808_v48, %v7974_v31  ;;  %v1922_v54 = vadd.f32 %v1921_v43, %v7977_v57  ;;  %4475 = vmatpush2.bf16.msra.mxu1 %v6559_v58  ;;  %v1918_v48 = vadd.f32 %v1917_v44, %v7977_v57 }
 0x286   : > { %v1810_v15 = vpop.f32.mrf.mxu0  ;;  %v1923_v51 = vpop.f32.mrf.mxu1  ;;  %4363 = vmatprep.subr.bf16.mxu0 %v6564_v5  ;;  %4476 = vmatprep.subr.bf16.mxu1 %v6567_v2 }
 0x287   : > { %v1811_v41 = vadd.f32 %v1810_v15, %v7966_v46  ;;  %v1924_v17 = vadd.f32 %v1923_v51, %v7969_v60  ;;  %v8093_v23 = vpack.c.bf16 %v1809_v59, %v1805_v6  ;;  %v8095_v24 = vpack.c.bf16 %v1922_v54, %v1918_v48  ;;  %v6576_v51 = vld [vmem:[#allocation5 + $0x18c] ss:$16 sps:$4 sm:$0xff]  }
 0x288   : > { %v1814_v43 = vpop.f32.mrf.mxu0  ;;  %v1927_v58 = vpop.f32.mrf.mxu1 }
 0x289   : > { %v8089_v22 = vpack.c.bf16 %v1811_v41, %v1807_v63  ;;  %v8091_v5 = vpack.c.bf16 %v1924_v17, %v1920_v1  ;;  %4364 = vmatpush2.bf16.msra.mxu0 %v6562_v21  ;;  %9034 = vst [vmem:[#allocation38_spill] sm:$0xff] %v8093_v23  ;;  %9035 = vst [vmem:[#allocation39_spill] sm:$0xff] %v8095_v24  ;;  %4477 = vmatpush2.bf16.msra.mxu1 %v6565_v55  ;;  %v6579_v41 = vld [vmem:[#allocation5 + $0x38c] ss:$16 sps:$4 sm:$0xff]   ;;  %v6574_v21 = vld [vmem:[#allocation5 + $0x188] ss:$16 sps:$4 sm:$0xff]  }
 0x28a   : > { %v1816_v15 = vpop.f32.mrf.mxu0  ;;  %v1929_v2 = vpop.f32.mrf.mxu1  ;;  %4365 = vmatprep.subr.bf16.mxu0 %v6570_v34  ;;  %4478 = vmatprep.subr.bf16.mxu1 %v6573_v16  ;;  %v6577_v1 = vld [vmem:[#allocation5 + $0x388] ss:$16 sps:$4 sm:$0xff]   ;;  %v6582_v17 = vld [vmem:[#allocation5 + $0x16c] ss:$16 sps:$4 sm:$0xff]   ;;  %v1815_v16 = vadd.f32 %v1814_v43, %v7974_v31 }
 0x28b   : > { %9032 = vst [vmem:[#allocation36_spill] sm:$0xff] %v8089_v22  ;;  %9033 = vst [vmem:[#allocation37_spill] sm:$0xff] %v8091_v5  ;;  %4201 = vmatprep.mubr.bf16.mxu0 %v8089_v22  ;;  %4314 = vmatprep.mubr.bf16.mxu1 %v8091_v5  ;;  %v1817_v6 = vadd.f32 %v1816_v15, %v7966_v46  ;;  %v1930_v48 = vadd.f32 %v1929_v2, %v7969_v60  ;;  %v6580_v5 = vld [vmem:[#allocation5 + $0x168] ss:$16 sps:$4 sm:$0xff]   ;;  %v6585_v15 = vld [vmem:[#allocation5 + $0x36c] ss:$16 sps:$4 sm:$0xff]  }
 0x28c   : > { %v1818_v44 = vpop.f32.mrf.mxu0  ;;  %v1931_v63 = vpop.f32.mrf.mxu1  ;;  %4202 = vmatmul.mubr.bf16.gmra.mxu0 %v8093_v23  ;;  %4315 = vmatmul.mubr.bf16.gmra.mxu1 %v8095_v24  ;;  %v6583_v43 = vld [vmem:[#allocation5 + $0x368] ss:$16 sps:$4 sm:$0xff]  }
 0x28d   : > { %4366 = vmatpush2.bf16.msra.mxu0 %v6568_v8  ;;  %v1819_v59 = vadd.f32 %v1818_v44, %v7974_v31  ;;  %v1932_v54 = vadd.f32 %v1931_v63, %v7977_v57  ;;  %4479 = vmatpush2.bf16.msra.mxu1 %v6571_v35  ;;  %v1928_v44 = vadd.f32 %v1927_v58, %v7977_v57 }
 0x28e   : > { %v1820_v55 = vpop.f32.mrf.mxu0  ;;  %v1933_v34 = vpop.f32.mrf.mxu1  ;;  %4367 = vmatprep.subr.bf16.mxu0 %v6576_v51  ;;  %4480 = vmatprep.subr.bf16.mxu1 %v6579_v41 }
 0x28f   : > { %v1821_v23 = vadd.f32 %v1820_v55, %v7966_v46  ;;  %v1934_v8 = vadd.f32 %v1933_v34, %v7969_v60  ;;  %v8113_v22 = vpack.c.bf16 %v1819_v59, %v1815_v16  ;;  %v8115_v2 = vpack.c.bf16 %v1932_v54, %v1928_v44  ;;  %v6588_v34 = vld [vmem:[#allocation5 + $0x14c] ss:$16 sps:$4 sm:$0xff]  }
 0x290   : > { %v1824_v63 = vpop.f32.mrf.mxu0  ;;  %v1937_v35 = vpop.f32.mrf.mxu1 }
 0x291   : > { %v8109_v24 = vpack.c.bf16 %v1821_v23, %v1817_v6  ;;  %v8111_v51 = vpack.c.bf16 %v1934_v8, %v1930_v48  ;;  %4368 = vmatpush2.bf16.msra.mxu0 %v6574_v21  ;;  %9037 = vst [vmem:[#allocation41_spill] sm:$0xff] %v8113_v22  ;;  %9038 = vst [vmem:[#allocation42_spill] sm:$0xff] %v8115_v2  ;;  %4481 = vmatpush2.bf16.msra.mxu1 %v6577_v1  ;;  %v6591_v23 = vld [vmem:[#allocation5 + $0x34c] ss:$16 sps:$4 sm:$0xff]   ;;  %v6586_v21 = vld [vmem:[#allocation5 + $0x148] ss:$16 sps:$4 sm:$0xff]  }
 0x292   : > { %v1826_v55 = vpop.f32.mrf.mxu0  ;;  %v1939_v41 = vpop.f32.mrf.mxu1  ;;  %4369 = vmatprep.subr.bf16.mxu0 %v6582_v17  ;;  %4482 = vmatprep.subr.bf16.mxu1 %v6585_v15  ;;  %v6589_v48 = vld [vmem:[#allocation5 + $0x348] ss:$16 sps:$4 sm:$0xff]   ;;  %v6594_v8 = vld [vmem:[#allocation5 + $0x12c] ss:$16 sps:$4 sm:$0xff]   ;;  %v1825_v15 = vadd.f32 %v1824_v63, %v7974_v31 }
 0x293   : > { %9036 = vst [vmem:[#allocation40_spill] sm:$0xff] %v8111_v51  ;;  %4211 = vmatprep.mubr.bf16.mxu0 %v8109_v24  ;;  %4324 = vmatprep.mubr.bf16.mxu1 %v8111_v51  ;;  %v1827_v16 = vadd.f32 %v1826_v55, %v7966_v46  ;;  %v1940_v44 = vadd.f32 %v1939_v41, %v7969_v60  ;;  %v6592_v55 = vld [vmem:[#allocation5 + $0x128] ss:$16 sps:$4 sm:$0xff]   ;;  %v6597_v41 = vld [vmem:[#allocation5 + $0x32c] ss:$16 sps:$4 sm:$0xff]  }
 0x294   : > { %v1828_v58 = vpop.f32.mrf.mxu0  ;;  %v1941_v6 = vpop.f32.mrf.mxu1  ;;  %4212 = vmatmul.mubr.bf16.gmra.mxu0 %v8113_v22  ;;  %4325 = vmatmul.mubr.bf16.gmra.mxu1 %v8115_v2 }
 0x295   : > { %4370 = vmatpush2.bf16.msra.mxu0 %v6580_v5  ;;  %v1829_v59 = vadd.f32 %v1828_v58, %v7974_v31  ;;  %v1942_v54 = vadd.f32 %v1941_v6, %v7977_v57  ;;  %4483 = vmatpush2.bf16.msra.mxu1 %v6583_v43  ;;  %v1938_v58 = vadd.f32 %v1937_v35, %v7977_v57  ;;  %v6595_v57 = vld [vmem:[#allocation5 + $0x328] ss:$16 sps:$4 sm:$0xff]  }
 0x296   : > { %v1830_v1 = vpop.f32.mrf.mxu0  ;;  %v1943_v17 = vpop.f32.mrf.mxu1  ;;  %4371 = vmatprep.subr.bf16.mxu0 %v6588_v34  ;;  %4484 = vmatprep.subr.bf16.mxu1 %v6591_v23  ;;  %v6603_v23 = vld [vmem:[#allocation5 + $0x30c] ss:$16 sps:$4 sm:$0xff]  }
 0x297   : > { %v1831_v22 = vadd.f32 %v1830_v1, %v7966_v46  ;;  %v1944_v5 = vadd.f32 %v1943_v17, %v7969_v60  ;;  %v8137_v51 = vpack.c.bf16 %v1829_v59, %v1825_v15  ;;  %v8139_v46 = vpack.c.bf16 %v1942_v54, %v1938_v58  ;;  %v6601_v1 = vld [vmem:[#allocation5 + $0x308] ss:$16 sps:$4 sm:$0xff]   ;;  %v6606_v17 = vld [vmem:[#allocation5 + $0x4ec] ss:$16 sps:$4 sm:$0xff]  }
 0x298   : > { %v8129_v6 = vpop.f32.mrf.mxu0  ;;  %v8131_v43 = vpop.f32.mrf.mxu1  ;;  %v6607_v15 = vld [vmem:[#allocation5 + $0x6e8] ss:$16 sps:$4 sm:$0xff]   ;;  %v6612_v58 = vld [vmem:[#allocation5 + $0x4cc] ss:$16 sps:$4 sm:$0xff]  }
 0x299   : > { %9039 = vst [vmem:[#allocation43_spill] sm:$0xff] %v8131_v43  ;;  %v8133_v34 = vpack.c.bf16 %v1831_v22, %v1827_v16  ;;  %v8135_v2 = vpack.c.bf16 %v1944_v5, %v1940_v44  ;;  %4372 = vmatpush2.bf16.msra.mxu0 %v6586_v21  ;;  %4485 = vmatpush2.bf16.msra.mxu1 %v6589_v48  ;;  %v6600_v22 = vld [vmem:[#allocation5 + $0x10c] ss:$16 sps:$4 sm:$0xff]   ;;  %v6598_v21 = vld [vmem:[#allocation5 + $0x108] ss:$16 sps:$4 sm:$0xff]  }
 0x29a   : > { %v8141_v60 = vpop.f32.mrf.mxu0  ;;  %v8143_v31 = vpop.f32.mrf.mxu1  ;;  %4373 = vmatprep.subr.bf16.mxu0 %v6594_v8  ;;  %4486 = vmatprep.subr.bf16.mxu1 %v6597_v41  ;;  %v6609_v48 = vld [vmem:[#allocation5 + $0x6ec] ss:$16 sps:$4 sm:$0xff]   ;;  %v6604_v44 = vld [vmem:[#allocation5 + $0x4e8] ss:$16 sps:$4 sm:$0xff]  }
 0x29b   : > { %9040 = vst [vmem:[#allocation44_spill] sm:$0xff] %v8143_v31  ;;  %4221 = vmatprep.mubr.bf16.mxu0 %v8133_v34  ;;  %4334 = vmatprep.mubr.bf16.mxu1 %v8135_v2  ;;  %v6615_v41 = vld [vmem:[#allocation5 + $0x6cc] ss:$16 sps:$4 sm:$0xff]  }
 0x29c   : > { %v8147_v63 = vpop.f32.mrf.mxu0  ;;  %v8149_v35 = vpop.f32.mrf.mxu1  ;;  %4222 = vmatmul.mubr.bf16.gmra.mxu0 %v8137_v51  ;;  %4335 = vmatmul.mubr.bf16.gmra.mxu1 %v8139_v46 }
 0x29d   : > { %9041 = vst [vmem:[#allocation45_spill] sm:$0xff] %v8149_v35  ;;  %4374 = vmatpush2.bf16.msra.mxu0 %v6592_v55  ;;  %4377 = vmatprep.mubr.bf16.mxu0 %v7728_v20 }
 0x29e   : > { %4487 = vmatpush2.bf16.msra.mxu1 %v6595_v57  ;;  %v8154_v59 = vpop.f32.mrf.mxu0  ;;  %v8156_v54 = vpop.f32.mrf.mxu1  ;;  %4490 = vmatprep.mubr.bf16.mxu1 %v7734_v38  ;;  %v6610_v57 = vld [vmem:[#allocation5 + $0x4c8] ss:$16 sps:$4 sm:$0xff]  }
 0x29f   : > { %9042 = vst [vmem:[#allocation46_spill] sm:$0xff] %v8156_v54  ;;  %4375 = vmatprep.subr.bf16.mxu0 %v6600_v22  ;;  %4488 = vmatprep.subr.bf16.mxu1 %v6603_v23 }
 0x2a0   : > { %v8159_v8 = vpop.f32.mrf.mxu0  ;;  %v8161_v16 = vpop.f32.mrf.mxu1 }
 0x2a1   : > { %9043 = vst [vmem:[#allocation47_spill] sm:$0xff] %v8161_v16  ;;  %4376 = vmatpush2.bf16.msra.mxu0 %v6598_v21  ;;  %v6618_v21 = vld [vmem:[#allocation5 + $0x4ac] ss:$16 sps:$4 sm:$0xff]   ;;  %v9084_v16 = vld [vmem:[#allocation28_spill] sm:$0xff] }
 0x2a2   : > { %4489 = vmatpush2.bf16.msra.mxu1 %v6601_v1  ;;  %v8163_v20 = vpop.f32.mrf.mxu0  ;;  %v8165_v5 = vpop.f32.mrf.mxu1  ;;  %4571 = vmatprep.subr.bf16.mxu0 %v6606_v17  ;;  %v6613_v1 = vld [vmem:[#allocation5 + $0x6c8] ss:$16 sps:$4 sm:$0xff]  }
 0x2a3   : > { %9044 = vst [vmem:[#allocation48_spill] sm:$0xff] %v8165_v5  ;;  %4684 = vmatprep.subr.bf16.mxu1 %v6609_v48  ;;  %v6616_v48 = vld [vmem:[#allocation5 + $0x4a8] ss:$16 sps:$4 sm:$0xff]  }
 0x2a4   : > { %v8167_v55 = vpop.f32.mrf.mxu0  ;;  %v8169_v38 = vpop.f32.mrf.mxu1  ;;  %4378 = vmatmul.mubr.bf16.vlgmr.msra.gmra.mxu0 %v7768_v40 }
 0x2a5   : > { %9045 = vst [vmem:[#allocation49_spill] sm:$0xff] %v8169_v38  ;;  %4491 = vmatmul.mubr.bf16.vlgmr.msra.gmra.mxu1 %v7774_v61  ;;  %4572 = vmatpush1.bf16.msra.mxu0 %v6604_v44  ;;  %v6621_v61 = vld [vmem:[#allocation5 + $0x6ac] ss:$16 sps:$4 sm:$0xff]  }
 0x2a6   : > { %4387 = vmatprep.mubr.bf16.mxu0 %v7776_v49  ;;  %4500 = vmatprep.mubr.bf16.mxu1 %v7780_v52  ;;  %v8175_v22 = vpop.f32.mrf.mxu0  ;;  %v8177_v23 = vpop.f32.mrf.mxu1  ;;  %v6619_v52 = vld [vmem:[#allocation5 + $0x6a8] ss:$16 sps:$4 sm:$0xff]  }
 0x2a7   : > { %9046 = vst [vmem:[#allocation50_spill] sm:$0xff] %v8177_v23  ;;  %4685 = vmatpush1.bf16.msra.mxu1 %v6607_v15  ;;  %4573 = vmatprep.subr.bf16.mxu0 %v6612_v58  ;;  %v6624_v23 = vld [vmem:[#allocation5 + $0x48c] ss:$16 sps:$4 sm:$0xff]  }
 0x2a8   : > { %v8179_v17 = vpop.f32.mrf.mxu0  ;;  %v8181_v40 = vpop.f32.mrf.mxu1  ;;  %4686 = vmatprep.subr.bf16.mxu1 %v6615_v41  ;;  %v6627_v58 = vld [vmem:[#allocation5 + $0x68c] ss:$16 sps:$4 sm:$0xff]   ;;  %v6622_v41 = vld [vmem:[#allocation5 + $0x488] ss:$16 sps:$4 sm:$0xff]  }
 0x2a9   : > { %9047 = vst [vmem:[#allocation51_spill] sm:$0xff] %v8181_v40  ;;  %4574 = vmatpush1.bf16.msra.mxu0 %v6610_v57 }
 0x2aa   : > { %v8183_v44 = vpop.f32.mrf.mxu0  ;;  %v8185_v49 = vpop.f32.mrf.mxu1  ;;  %4575 = vmatprep.subr.bf16.mxu0 %v6618_v21 }
 0x2ab   : > { %9048 = vst [vmem:[#allocation52_spill] sm:$0xff] %v8185_v49  ;;  %4687 = vmatpush1.bf16.msra.mxu1 %v6613_v1  ;;  %v6630_v1 = vld [vmem:[#allocation5 + $0x46c] ss:$16 sps:$4 sm:$0xff]   ;;  %v6691_v49 = vld [vmem:[#allocation5 + $0x728] ss:$16 sps:$4 sm:$0xff]  }
 0x2ac   : > { %v8187_v38 = vpop.f32.mrf.mxu0  ;;  %v8189_v15 = vpop.f32.mrf.mxu1  ;;  %4388 = vmatmul.mubr.bf16.gmra.mxu0 %v7804_v4  ;;  %4688 = vmatprep.subr.bf16.mxu1 %v6621_v61  ;;  %v6628_v61 = vld [vmem:[#allocation5 + $0x468] ss:$16 sps:$4 sm:$0xff]  }
 0x2ad   : > { %9049 = vst [vmem:[#allocation53_spill] sm:$0xff] %v8189_v15  ;;  %4501 = vmatmul.mubr.bf16.gmra.mxu1 %v7810_v32  ;;  %4576 = vmatpush1.bf16.msra.mxu0 %v6616_v48  ;;  %v6625_v15 = vld [vmem:[#allocation5 + $0x688] ss:$16 sps:$4 sm:$0xff]   ;;  %v6633_v32 = vld [vmem:[#allocation5 + $0x66c] ss:$16 sps:$4 sm:$0xff]  }
 0x2ae   : > { %4397 = vmatprep.mubr.bf16.mxu0 %v7812_v11  ;;  %4510 = vmatprep.mubr.bf16.mxu1 %v7816_v29  ;;  %v8195_v57 = vpop.f32.mrf.mxu0  ;;  %v8197_v21 = vpop.f32.mrf.mxu1  ;;  %v6631_v29 = vld [vmem:[#allocation5 + $0x668] ss:$16 sps:$4 sm:$0xff]  }
 0x2af   : > { %9050 = vst [vmem:[#allocation54_spill] sm:$0xff] %v8197_v21  ;;  %4689 = vmatpush1.bf16.msra.mxu1 %v6619_v52  ;;  %4577 = vmatprep.subr.bf16.mxu0 %v6624_v23  ;;  %v6636_v21 = vld [vmem:[#allocation5 + $0x44c] ss:$16 sps:$4 sm:$0xff]  }
 0x2b0   : > { %v8199_v54 = vpop.f32.mrf.mxu0  ;;  %v8201_v4 = vpop.f32.mrf.mxu1  ;;  %4690 = vmatprep.subr.bf16.mxu1 %v6627_v58  ;;  %v6639_v52 = vld [vmem:[#allocation5 + $0x64c] ss:$16 sps:$4 sm:$0xff]   ;;  %v6634_v58 = vld [vmem:[#allocation5 + $0x448] ss:$16 sps:$4 sm:$0xff]  }
 0x2b1   : > { %9051 = vst [vmem:[#allocation55_spill] sm:$0xff] %v8201_v4  ;;  %4578 = vmatpush1.bf16.msra.mxu0 %v6622_v41 }
 0x2b2   : > { %v8203_v48 = vpop.f32.mrf.mxu0  ;;  %v8205_v11 = vpop.f32.mrf.mxu1  ;;  %4579 = vmatprep.subr.bf16.mxu0 %v6630_v1  ;;  %v6642_v1 = vld [vmem:[#allocation5 + $0x42c] ss:$16 sps:$4 sm:$0xff]  }
 0x2b3   : > { %9052 = vst [vmem:[#allocation56_spill] sm:$0xff] %v8205_v11  ;;  %4691 = vmatpush1.bf16.msra.mxu1 %v6625_v15 }
 0x2b4   : > { %v8207_v35 = vpop.f32.mrf.mxu0  ;;  %v8209_v23 = vpop.f32.mrf.mxu1  ;;  %4398 = vmatmul.mubr.bf16.gmra.mxu0 %v7840_v47  ;;  %4692 = vmatprep.subr.bf16.mxu1 %v6633_v32  ;;  %v6640_v32 = vld [vmem:[#allocation5 + $0x428] ss:$16 sps:$4 sm:$0xff]  }
 0x2b5   : > { %9053 = vst [vmem:[#allocation57_spill] sm:$0xff] %v8209_v23  ;;  %4511 = vmatmul.mubr.bf16.gmra.mxu1 %v7844_v30  ;;  %4580 = vmatpush1.bf16.msra.mxu0 %v6628_v61  ;;  %v6637_v23 = vld [vmem:[#allocation5 + $0x648] ss:$16 sps:$4 sm:$0xff]   ;;  %v6645_v30 = vld [vmem:[#allocation5 + $0x62c] ss:$16 sps:$4 sm:$0xff]  }
 0x2b6   : > { %4407 = vmatprep.mubr.bf16.mxu0 %v7846_v9  ;;  %4520 = vmatprep.mubr.bf16.mxu1 %v7848_v10  ;;  %v8215_v41 = vpop.f32.mrf.mxu0  ;;  %v8217_v15 = vpop.f32.mrf.mxu1  ;;  %v6643_v10 = vld [vmem:[#allocation5 + $0x628] ss:$16 sps:$4 sm:$0xff]  }
 0x2b7   : > { %9054 = vst [vmem:[#allocation58_spill] sm:$0xff] %v8217_v15  ;;  %4693 = vmatpush1.bf16.msra.mxu1 %v6631_v29  ;;  %4581 = vmatprep.subr.bf16.mxu0 %v6636_v21  ;;  %v6648_v15 = vld [vmem:[#allocation5 + $0x40c] ss:$16 sps:$4 sm:$0xff]  }
 0x2b8   : > { %v8219_v11 = vpop.f32.mrf.mxu0  ;;  %v8221_v47 = vpop.f32.mrf.mxu1  ;;  %4694 = vmatprep.subr.bf16.mxu1 %v6639_v52  ;;  %v6651_v29 = vld [vmem:[#allocation5 + $0x60c] ss:$16 sps:$4 sm:$0xff]   ;;  %v6646_v52 = vld [vmem:[#allocation5 + $0x408] ss:$16 sps:$4 sm:$0xff]  }
 0x2b9   : > { %9055 = vst [vmem:[#allocation59_spill] sm:$0xff] %v8221_v47  ;;  %4582 = vmatpush1.bf16.msra.mxu0 %v6634_v58 }
 0x2ba   : > { %v8223_v61 = vpop.f32.mrf.mxu0  ;;  %v8225_v9 = vpop.f32.mrf.mxu1  ;;  %4583 = vmatprep.subr.bf16.mxu0 %v6642_v1  ;;  %v6654_v1 = vld [vmem:[#allocation5 + $0x5ec] ss:$16 sps:$4 sm:$0xff]  }
 0x2bb   : > { %9056 = vst [vmem:[#allocation60_spill] sm:$0xff] %v8225_v9  ;;  %4695 = vmatpush1.bf16.msra.mxu1 %v6637_v23 }
 0x2bc   : > { %v8227_v4 = vpop.f32.mrf.mxu0  ;;  %v8229_v21 = vpop.f32.mrf.mxu1  ;;  %4408 = vmatmul.mubr.bf16.gmra.mxu0 %v7868_v27  ;;  %4696 = vmatprep.subr.bf16.mxu1 %v6645_v30  ;;  %v6652_v30 = vld [vmem:[#allocation5 + $0x5e8] ss:$16 sps:$4 sm:$0xff]  }
 0x2bd   : > { %9057 = vst [vmem:[#allocation61_spill] sm:$0xff] %v8229_v21  ;;  %4521 = vmatmul.mubr.bf16.gmra.mxu1 %v7872_v26  ;;  %4584 = vmatpush1.bf16.msra.mxu0 %v6640_v32  ;;  %v6649_v21 = vld [vmem:[#allocation5 + $0x608] ss:$16 sps:$4 sm:$0xff]   ;;  %v6657_v26 = vld [vmem:[#allocation5 + $0x7ec] ss:$16 sps:$4 sm:$0xff]  }
 0x2be   : > { %4417 = vmatprep.mubr.bf16.mxu0 %v7874_v53  ;;  %4530 = vmatprep.mubr.bf16.mxu1 %v7876_v50  ;;  %v8235_v58 = vpop.f32.mrf.mxu0  ;;  %v8237_v23 = vpop.f32.mrf.mxu1  ;;  %v6655_v50 = vld [vmem:[#allocation5 + $0x7e8] ss:$16 sps:$4 sm:$0xff]  }
 0x2bf   : > { %9058 = vst [vmem:[#allocation62_spill] sm:$0xff] %v8237_v23  ;;  %4697 = vmatpush1.bf16.msra.mxu1 %v6643_v10  ;;  %4585 = vmatprep.subr.bf16.mxu0 %v6648_v15  ;;  %v6660_v23 = vld [vmem:[#allocation5 + $0x5cc] ss:$16 sps:$4 sm:$0xff]  }
 0x2c0   : > { %v8239_v9 = vpop.f32.mrf.mxu0  ;;  %v8241_v27 = vpop.f32.mrf.mxu1  ;;  %4698 = vmatprep.subr.bf16.mxu1 %v6651_v29  ;;  %v6663_v10 = vld [vmem:[#allocation5 + $0x7cc] ss:$16 sps:$4 sm:$0xff]   ;;  %v6658_v29 = vld [vmem:[#allocation5 + $0x5c8] ss:$16 sps:$4 sm:$0xff]  }
 0x2c1   : > { %9059 = vst [vmem:[#allocation63_spill] sm:$0xff] %v8241_v27  ;;  %4586 = vmatpush1.bf16.msra.mxu0 %v6646_v52 }
 0x2c2   : > { %v8243_v32 = vpop.f32.mrf.mxu0  ;;  %v8245_v53 = vpop.f32.mrf.mxu1  ;;  %4587 = vmatprep.subr.bf16.mxu0 %v6654_v1  ;;  %v6666_v1 = vld [vmem:[#allocation5 + $0x5ac] ss:$16 sps:$4 sm:$0xff]  }
 0x2c3   : > { %9060 = vst [vmem:[#allocation64_spill] sm:$0xff] %v8245_v53  ;;  %4699 = vmatpush1.bf16.msra.mxu1 %v6649_v21 }
 0x2c4   : > { %v8247_v47 = vpop.f32.mrf.mxu0  ;;  %v8249_v15 = vpop.f32.mrf.mxu1  ;;  %4418 = vmatmul.mubr.bf16.gmra.mxu0 %v7897_v18  ;;  %4700 = vmatprep.subr.bf16.mxu1 %v6657_v26  ;;  %v6664_v26 = vld [vmem:[#allocation5 + $0x5a8] ss:$16 sps:$4 sm:$0xff]  }
 0x2c5   : > { %9061 = vst [vmem:[#allocation65_spill] sm:$0xff] %v8247_v47  ;;  %9062 = vst [vmem:[#allocation66_spill] sm:$0xff] %v8249_v15  ;;  %4531 = vmatmul.mubr.bf16.gmra.mxu1 %v7900_v45  ;;  %4588 = vmatpush2.bf16.msra.mxu0 %v6652_v30  ;;  %v6661_v15 = vld [vmem:[#allocation5 + $0x7c8] ss:$16 sps:$4 sm:$0xff]   ;;  %v6669_v45 = vld [vmem:[#allocation5 + $0x7ac] ss:$16 sps:$4 sm:$0xff]  }
 0x2c6   : > { %4427 = vmatprep.mubr.bf16.mxu0 %v7902_v42  ;;  %4540 = vmatprep.mubr.bf16.mxu1 %v7904_v19  ;;  %v8255_v52 = vpop.f32.mrf.mxu0  ;;  %v8257_v21 = vpop.f32.mrf.mxu1  ;;  %v6667_v19 = vld [vmem:[#allocation5 + $0x7a8] ss:$16 sps:$4 sm:$0xff]  }
 0x2c7   : > { %9063 = vst [vmem:[#allocation67_spill] sm:$0xff] %v8255_v52  ;;  %9064 = vst [vmem:[#allocation68_spill] sm:$0xff] %v8257_v21  ;;  %4701 = vmatpush2.bf16.msra.mxu1 %v6655_v50  ;;  %4589 = vmatprep.subr.bf16.mxu0 %v6660_v23  ;;  %v6672_v21 = vld [vmem:[#allocation5 + $0x58c] ss:$16 sps:$4 sm:$0xff]   ;;  %v9092_v52 = vld [vmem:[#allocation34_spill] sm:$0xff] }
 0x2c8   : > { %v8259_v53 = vpop.f32.mrf.mxu0  ;;  %v8261_v18 = vpop.f32.mrf.mxu1  ;;  %4702 = vmatprep.subr.bf16.mxu1 %v6663_v10  ;;  %v6675_v50 = vld [vmem:[#allocation5 + $0x78c] ss:$16 sps:$4 sm:$0xff]   ;;  %v6670_v10 = vld [vmem:[#allocation5 + $0x588] ss:$16 sps:$4 sm:$0xff]  }
 0x2c9   : > { %9065 = vst [vmem:[#allocation69_spill] sm:$0xff] %v8261_v18  ;;  %4590 = vmatpush2.bf16.msra.mxu0 %v6658_v29 }
 0x2ca   : > { %v8263_v30 = vpop.f32.mrf.mxu0  ;;  %v8265_v42 = vpop.f32.mrf.mxu1  ;;  %4591 = vmatprep.subr.bf16.mxu0 %v6666_v1  ;;  %v6678_v1 = vld [vmem:[#allocation5 + $0x56c] ss:$16 sps:$4 sm:$0xff]  }
 0x2cb   : > { %9066 = vst [vmem:[#allocation70_spill] sm:$0xff] %v8265_v42  ;;  %4703 = vmatpush2.bf16.msra.mxu1 %v6661_v15 }
 0x2cc   : > { %v8267_v27 = vpop.f32.mrf.mxu0  ;;  %v8269_v23 = vpop.f32.mrf.mxu1  ;;  %4428 = vmatmul.mubr.bf16.gmra.mxu0 %v7920_v25  ;;  %4704 = vmatprep.subr.bf16.mxu1 %v6669_v45  ;;  %v6676_v45 = vld [vmem:[#allocation5 + $0x568] ss:$16 sps:$4 sm:$0xff]  }
 0x2cd   : > { %9067 = vst [vmem:[#allocation71_spill] sm:$0xff] %v8267_v27  ;;  %9068 = vst [vmem:[#allocation72_spill] sm:$0xff] %v8269_v23  ;;  %4541 = vmatmul.mubr.bf16.gmra.mxu1 %v7923_v37  ;;  %4592 = vmatpush2.bf16.msra.mxu0 %v6664_v26  ;;  %v6673_v23 = vld [vmem:[#allocation5 + $0x788] ss:$16 sps:$4 sm:$0xff]   ;;  %v6681_v37 = vld [vmem:[#allocation5 + $0x76c] ss:$16 sps:$4 sm:$0xff]  }
 0x2ce   : > { %4437 = vmatprep.mubr.bf16.mxu0 %v7925_v0  ;;  %4550 = vmatprep.mubr.bf16.mxu1 %v7927_v7  ;;  %v8275_v29 = vpop.f32.mrf.mxu0  ;;  %v8277_v15 = vpop.f32.mrf.mxu1  ;;  %v6679_v7 = vld [vmem:[#allocation5 + $0x768] ss:$16 sps:$4 sm:$0xff]  }
 0x2cf   : > { %9069 = vst [vmem:[#allocation73_spill] sm:$0xff] %v8275_v29  ;;  %9070 = vst [vmem:[#allocation74_spill] sm:$0xff] %v8277_v15  ;;  %4705 = vmatpush2.bf16.msra.mxu1 %v6667_v19  ;;  %4593 = vmatprep.subr.bf16.mxu0 %v6672_v21  ;;  %v6684_v15 = vld [vmem:[#allocation5 + $0x54c] ss:$16 sps:$4 sm:$0xff]  }
 0x2d0   : > { %v8279_v42 = vpop.f32.mrf.mxu0  ;;  %v8281_v25 = vpop.f32.mrf.mxu1  ;;  %4706 = vmatprep.subr.bf16.mxu1 %v6675_v50  ;;  %v6687_v19 = vld [vmem:[#allocation5 + $0x74c] ss:$16 sps:$4 sm:$0xff]   ;;  %v6682_v50 = vld [vmem:[#allocation5 + $0x548] ss:$16 sps:$4 sm:$0xff]  }
 0x2d1   : > { %9071 = vst [vmem:[#allocation75_spill] sm:$0xff] %v8281_v25  ;;  %4594 = vmatpush2.bf16.msra.mxu0 %v6670_v10 }
 0x2d2   : > { %v8283_v26 = vpop.f32.mrf.mxu0  ;;  %v8285_v0 = vpop.f32.mrf.mxu1  ;;  %4595 = vmatprep.subr.bf16.mxu0 %v6678_v1  ;;  %v6690_v1 = vld [vmem:[#allocation5 + $0x52c] ss:$16 sps:$4 sm:$0xff]  }
 0x2d3   : > { %9072 = vst [vmem:[#allocation76_spill] sm:$0xff] %v8285_v0  ;;  %4707 = vmatpush2.bf16.msra.mxu1 %v6673_v23 }
 0x2d4   : > { %v8287_v18 = vpop.f32.mrf.mxu0  ;;  %v8289_v21 = vpop.f32.mrf.mxu1  ;;  %4438 = vmatmul.mubr.bf16.gmra.mxu0 %v7939_v14  ;;  %4708 = vmatprep.subr.bf16.mxu1 %v6681_v37  ;;  %v6693_v14 = vld [vmem:[#allocation5 + $0x72c] ss:$16 sps:$4 sm:$0xff]  }
 0x2d5   : > { %9073 = vst [vmem:[#allocation77_spill] sm:$0xff] %v8287_v18  ;;  %9074 = vst [vmem:[#allocation78_spill] sm:$0xff] %v8289_v21  ;;  %4551 = vmatmul.mubr.bf16.gmra.mxu1 %v7941_v28  ;;  %4596 = vmatpush2.bf16.msra.mxu0 %v6676_v45  ;;  %v6685_v21 = vld [vmem:[#allocation5 + $0x748] ss:$16 sps:$4 sm:$0xff]  }
 0x2d6   : > { %4447 = vmatprep.mubr.bf16.mxu0 %v7957_v12  ;;  %4560 = vmatprep.mubr.bf16.mxu1 %v7959_v3  ;;  %v8295_v10 = vpop.f32.mrf.mxu0  ;;  %v8297_v23 = vpop.f32.mrf.mxu1  ;;  %v6688_v45 = vld [vmem:[#allocation5 + $0x528] ss:$16 sps:$4 sm:$0xff]  }
 0x2d7   : > { %9075 = vst [vmem:[#allocation79_spill] sm:$0xff] %v8295_v10  ;;  %9076 = vst [vmem:[#allocation80_spill] sm:$0xff] %v8297_v23  ;;  %4709 = vmatpush2.bf16.msra.mxu1 %v6679_v7  ;;  %4597 = vmatprep.subr.bf16.mxu0 %v6684_v15  ;;  %v6696_v7 = vld [vmem:[#allocation5 + $0x50c] ss:$16 sps:$4 sm:$0xff]  }
 0x2d8   : > { %v3927_v0 = vpop.f32.mrf.mxu0  ;;  %4710 = vmatprep.subr.bf16.mxu1 %v6687_v19  ;;  %v6699_v19 = vld [vmem:[#allocation5 + $0x70c] ss:$16 sps:$4 sm:$0xff]  }
 0x2d9   : > { %v3928_v37 = vadd.f32 %v3927_v0, %v8129_v6  ;;  %v4040_v28 = vpop.f32.mrf.mxu1  ;;  %4598 = vmatpush2.bf16.msra.mxu0 %v6682_v50  ;;  %v6694_v50 = vld [vmem:[#allocation5 + $0x508] ss:$16 sps:$4 sm:$0xff]  }
 0x2da   : > { %v3929_v25 = vpop.f32.mrf.mxu0  ;;  %4599 = vmatprep.subr.bf16.mxu0 %v6690_v1 }
 0x2db   : > { %v8300_v12 = vadd.f32 %v4040_v28, %v3928_v37  ;;  %4711 = vmatpush2.bf16.msra.mxu1 %v6685_v21  ;;  %v3930_v3 = vadd.f32 %v3929_v25, %v8141_v60  ;;  %v4042_v23 = vpop.f32.mrf.mxu1  ;;  %v6697_v21 = vld [vmem:[#allocation5 + $0x708] ss:$16 sps:$4 sm:$0xff]  }
 0x2dc   : > { %v8303_v15 = vpop.f32.mrf.mxu0  ;;  %4448 = vmatmul.mubr.bf16.gmra.mxu0 %v7961_v56  ;;  %4712 = vmatprep.subr.bf16.mxu1 %v6693_v14  ;;  %v6700_v56 = vld [vmem:[%s8970_s10 + $0x78] sm:$0xff]  }
 0x2dd   : > { %v8306_v6 = vadd.f32 %v4042_v23, %v3930_v3  ;;  %v8308_v0 = vpop.f32.mrf.mxu1  ;;  %4561 = vmatmul.mubr.bf16.gmra.mxu1 %v7963_v33  ;;  %4600 = vmatpush2.bf16.msra.mxu0 %v6688_v45 }
 0x2de   : > { %4603 = vmatprep.mubr.bf16.mxu0 %v7989_v13  ;;  %4716 = vmatprep.mubr.bf16.mxu1 %v7991_v39  ;;  %v8313_v60 = vpop.f32.mrf.mxu0  ;;  %v6701_v13 = vld [vmem:[%s8970_s10 + $0x38] sm:$0xff]  }
 0x2df   : > { %4713 = vmatpush2.bf16.msra.mxu1 %v6691_v49  ;;  %v8318_v25 = vpop.f32.mrf.mxu1  ;;  %4601 = vmatprep.subr.bf16.mxu0 %v6696_v7  ;;  %v6702_v49 = vld [vmem:[%s8970_s10 + $0x70] sm:$0xff]  }
 0x2e0   : > { %v3937_v23 = vpop.f32.mrf.mxu0  ;;  %4714 = vmatprep.subr.bf16.mxu1 %v6699_v19  ;;  %v6703_v7 = vld [vmem:[%s8970_s10 + $0x30] sm:$0xff]   ;;  %v9077_v19 = vld [vmem:[#allocation20_spill] sm:$0xff] }
 0x2e1   : > { %v3938_v33 = vadd.f32 %v3937_v23, %v8159_v8  ;;  %v4050_v1 = vpop.f32.mrf.mxu1  ;;  %4602 = vmatpush2.bf16.msra.mxu0 %v6694_v50 }
 0x2e2   : > { %v3939_v39 = vpop.f32.mrf.mxu0  ;;  %6044 = vmatprep.subr.bf16.mxu0 %v6700_v56 }
 0x2e3   : > { %v8327_v14 = vadd.f32 %v4050_v1, %v3938_v33  ;;  %4715 = vmatpush2.bf16.msra.mxu1 %v6697_v21  ;;  %v3940_v37 = vadd.f32 %v3939_v39, %v8163_v20  ;;  %v4052_v28 = vpop.f32.mrf.mxu1  ;;  %v9078_v20 = vld [vmem:[#allocation21_spill] sm:$0xff] }
 0x2e4   : > { %v8330_v45 = vpop.f32.mrf.mxu0  ;;  %4604 = vmatmul.mubr.bf16.vlgmr.msra.gmra.mxu0 %v7993_v36  ;;  %v6704_v36 = vld [vmem:[%s8970_s10 + $0x68] sm:$0xff]  }
 0x2e5   : > { %v8333_v8 = vadd.f32 %v4052_v28, %v3940_v37  ;;  %v8335_v3 = vpop.f32.mrf.mxu1  ;;  %4613 = vmatprep.mubr.bf16.mxu0 %v8009_v62  ;;  %6045 = vmatpush3.bf16.msra.mxu0 %v6701_v13  ;;  %v6705_v33 = vld [vmem:[%s8970_s10 + $0x28] sm:$0xff]   ;;  %v6706_v13 = vld [vmem:[%s8970_s10 + $0x60] sm:$0xff]  }
 0x2e6   : > { %4717 = vmatmul.mubr.bf16.vlgmr.msra.gmra.mxu1 %v9077_v19  ;;  %v8342_v50 = vpop.f32.mrf.mxu0  ;;  %6046 = vmatprep.subr.bf16.mxu0 %v6702_v49 }
 0x2e7   : > { %4726 = vmatprep.mubr.bf16.mxu1 %v9078_v20  ;;  %v8348_v56 = vpop.f32.mrf.mxu1  ;;  %v9080_v20 = vld [vmem:[#allocation24_spill] sm:$0xff] }
 0x2e8   : > { %v3947_v21 = vpop.f32.mrf.mxu0 }
 0x2e9   : > { %v3948_v62 = vadd.f32 %v3947_v21, %v8179_v17  ;;  %v4060_v23 = vpop.f32.mrf.mxu1  ;;  %6047 = vmatpush3.bf16.msra.mxu0 %v6703_v7  ;;  %v9079_v17 = vld [vmem:[#allocation22_spill] sm:$0xff]  ;;  %v9081_v21 = vld [vmem:[#allocation23_spill] sm:$0xff] }
 0x2ea   : > { %v3949_v1 = vpop.f32.mrf.mxu0  ;;  %6048 = vmatprep.subr.bf16.mxu0 %v6704_v36  ;;  %v6707_v36 = vld [vmem:[%s8970_s10 + $0x20] sm:$0xff]  }
 0x2eb   : > { %v8357_v39 = vadd.f32 %v4060_v23, %v3948_v62  ;;  %v3950_v49 = vadd.f32 %v3949_v1, %v8183_v44  ;;  %v4062_v37 = vpop.f32.mrf.mxu1  ;;  %v6708_v44 = vld [vmem:[%s8970_s10 + $0x58] sm:$0xff]   ;;  %v9082_v23 = vld [vmem:[#allocation25_spill] sm:$0xff] }
 0x2ec   : > { %v8360_v28 = vpop.f32.mrf.mxu0  ;;  %4614 = vmatmul.mubr.bf16.gmra.mxu0 %v9079_v17  ;;  %v6709_v17 = vld [vmem:[%s8970_s10 + $0x18] sm:$0xff]  }
 0x2ed   : > { %v8363_v7 = vadd.f32 %v4062_v37, %v3950_v49  ;;  %v8365_v19 = vpop.f32.mrf.mxu1  ;;  %4623 = vmatprep.mubr.bf16.mxu0 %v9080_v20  ;;  %6049 = vmatpush3.bf16.msra.mxu0 %v6705_v33 }
 0x2ee   : > { %4727 = vmatmul.mubr.bf16.gmra.mxu1 %v9081_v21  ;;  %v8372_v62 = vpop.f32.mrf.mxu0  ;;  %6050 = vmatprep.subr.bf16.mxu0 %v6706_v13  ;;  %v6710_v13 = vld [vmem:[%s8970_s10 + $0x50] sm:$0xff]  }
 0x2ef   : > { %4736 = vmatprep.mubr.bf16.mxu1 %v9082_v23  ;;  %v8378_v1 = vpop.f32.mrf.mxu1 }
 0x2f0   : > { %v3957_v49 = vpop.f32.mrf.mxu0 }
 0x2f1   : > { %v3958_v33 = vadd.f32 %v3957_v49, %v8199_v54  ;;  %v4070_v37 = vpop.f32.mrf.mxu1  ;;  %6051 = vmatpush3.bf16.msra.mxu0 %v6707_v36  ;;  %v9083_v54 = vld [vmem:[#allocation26_spill] sm:$0xff] }
 0x2f2   : > { %v3959_v20 = vpop.f32.mrf.mxu0  ;;  %6052 = vmatprep.subr.bf16.mxu0 %v6708_v44  ;;  %v6711_v44 = vld [vmem:[%s8970_s10 + $0x10] sm:$0xff]  }
 0x2f3   : > { %v8387_v21 = vadd.f32 %v4070_v37, %v3958_v33  ;;  %v3960_v23 = vadd.f32 %v3959_v20, %v8203_v48  ;;  %v4072_v40 = vpop.f32.mrf.mxu1  ;;  %v6716_v48 = vld [vmem:[%s8970_s10 + $0xf8] sm:$0xff]   ;;  %v9086_v20 = vld [vmem:[#allocation29_spill] sm:$0xff] }
 0x2f4   : > { %v8390_v5 = vpop.f32.mrf.mxu0  ;;  %4624 = vmatmul.mubr.bf16.gmra.mxu0 %v9083_v54  ;;  %v9085_v33 = vld [vmem:[#allocation27_spill] sm:$0xff]  ;;  %6108 = vmatprep.subr.bf16.mxu1 %v6716_v48  ;;  %v6714_v48 = vld [vmem:[%s8970_s10 + $0x40] sm:$0xff]  }
 0x2f5   : > { %v8393_v36 = vadd.f32 %v4072_v40, %v3960_v23  ;;  %v8395_v49 = vpop.f32.mrf.mxu1  ;;  %4633 = vmatprep.mubr.bf16.mxu0 %v9084_v16  ;;  %6053 = vmatpush3.bf16.msra.mxu0 %v6709_v17  ;;  %v6712_v40 = vld [vmem:[%s8970_s10 + $0x48] sm:$0xff]   ;;  %v6717_v17 = vld [vmem:[%s8970_s10 + $0xb8] sm:$0xff]  }
 0x2f6   : > { %4737 = vmatmul.mubr.bf16.gmra.mxu1 %v9085_v33  ;;  %v8405_v37 = vpop.f32.mrf.mxu0  ;;  %6054 = vmatprep.subr.bf16.mxu0 %v6710_v13  ;;  %v6713_v13 = vld [vmem:[%s8970_s10 + $0x8] sm:$0xff]  }
 0x2f7   : > { %4746 = vmatprep.mubr.bf16.mxu1 %v9086_v20  ;;  %v8411_v16 = vpop.f32.mrf.mxu1  ;;  %6109 = vmatpush3.bf16.msra.mxu1 %v6717_v17  ;;  %v9088_v17 = vld [vmem:[#allocation32_spill] sm:$0xff] }
 0x2f8   : > { %v3967_v23 = vpop.f32.mrf.mxu0 }
 0x2f9   : > { %v3968_v54 = vadd.f32 %v3967_v23, %v8219_v11  ;;  %v4080_v33 = vpop.f32.mrf.mxu1  ;;  %6055 = vmatpush3.bf16.msra.mxu0 %v6711_v44  ;;  %v9087_v11 = vld [vmem:[#allocation30_spill] sm:$0xff] }
 0x2fa   : > { %v3969_v31 = vpop.f32.mrf.mxu0  ;;  %6056 = vmatprep.subr.bf16.mxu0 %v6712_v40  ;;  %v6715_v40 = vld [vmem:[%s8970_s10] sm:$0xff]  }
 0x2fb   : > { %v8423_v20 = vadd.f32 %v4080_v33, %v3968_v54  ;;  %v3970_v43 = vadd.f32 %v3969_v31, %v8223_v61  ;;  %v4082_v10 = vpop.f32.mrf.mxu1  ;;  %v6718_v31 = vld [vmem:[%s8970_s10 + $0xf0] sm:$0xff]   ;;  %v9089_v61 = vld [vmem:[#allocation31_spill] sm:$0xff] }
 0x2fc   : > { %v8426_v18 = vpop.f32.mrf.mxu0  ;;  %4634 = vmatmul.mubr.bf16.gmra.mxu0 %v9087_v11  ;;  %6110 = vmatprep.subr.bf16.mxu1 %v6718_v31  ;;  %v6719_v33 = vld [vmem:[%s8970_s10 + $0xb0] sm:$0xff]  }
 0x2fd   : > { %v8429_v44 = vadd.f32 %v4082_v10, %v3970_v43  ;;  %v8431_v23 = vpop.f32.mrf.mxu1  ;;  %4643 = vmatprep.mubr.bf16.mxu0 %v9088_v17  ;;  %6057 = vmatpush3.bf16.msra.mxu0 %v6713_v13  ;;  %v9090_v43 = vld [vmem:[#allocation33_spill] sm:$0xff] }
 0x2fe   : > { %4747 = vmatmul.mubr.bf16.gmra.mxu1 %v9089_v61  ;;  %v8441_v54 = vpop.f32.mrf.mxu0  ;;  %6058 = vmatprep.subr.bf16.mxu0 %v6714_v48 }
 0x2ff   : > { %4756 = vmatprep.mubr.bf16.mxu1 %v9090_v43  ;;  %v8444_v10 = vpop.f32.mrf.mxu1  ;;  %6111 = vmatpush3.bf16.msra.mxu1 %v6719_v33 }
 0x300   : > { %9091 = vst [vmem:[#allocation20_spill] sm:$0xff] %v8444_v10  ;;  %v3977_v13 = vpop.f32.mrf.mxu0  ;;  %v9094_v10 = vld [vmem:[#allocation36_spill] sm:$0xff] }
 0x301   : > { %v3978_v11 = vadd.f32 %v3977_v13, %v8239_v9  ;;  %v4090_v17 = vpop.f32.mrf.mxu1  ;;  %6059 = vmatpush3.bf16.msra.mxu0 %v6715_v40  ;;  %v6720_v9 = vld [vmem:[%s8970_s10 + $0xe8] sm:$0xff]   ;;  %v9095_v40 = vld [vmem:[#allocation35_spill] sm:$0xff] }
 0x302   : > { %v3979_v29 = vpop.f32.mrf.mxu0  ;;  %6112 = vmatprep.subr.bf16.mxu1 %v6720_v9  ;;  %v6722_v9 = vld [vmem:[%s8970_s10 + $0xe0] sm:$0xff]  }
 0x303   : > { %v8450_v61 = vadd.f32 %v4090_v17, %v3978_v11  ;;  %v3980_v48 = vadd.f32 %v3979_v29, %v8243_v32  ;;  %v4092_v27 = vpop.f32.mrf.mxu1  ;;  %v9096_v32 = vld [vmem:[#allocation37_spill] sm:$0xff] }
 0x304   : > { %v8453_v43 = vpop.f32.mrf.mxu0  ;;  %4644 = vmatmul.mubr.bf16.gmra.mxu0 %v9092_v52 }
 0x305   : > { %v8456_v31 = vadd.f32 %v4092_v27, %v3980_v48  ;;  %v8458_v47 = vpop.f32.mrf.mxu1  ;;  %4653 = vmatprep.mubr.bf16.mxu0 %v9094_v10  ;;  %v6721_v27 = vld [vmem:[%s8970_s10 + $0xa8] sm:$0xff]  }
 0x306   : > { %4757 = vmatmul.mubr.bf16.gmra.mxu1 %v9095_v40  ;;  %v8465_v33 = vpop.f32.mrf.mxu0 }
 0x307   : > { %9093 = vst [vmem:[#allocation21_spill] sm:$0xff] %v8456_v31  ;;  %4766 = vmatprep.mubr.bf16.mxu1 %v9096_v32  ;;  %v8468_v29 = vpop.f32.mrf.mxu1  ;;  %6113 = vmatpush3.bf16.msra.mxu1 %v6721_v27  ;;  %v9098_v31 = vld [vmem:[#allocation38_spill] sm:$0xff]  ;;  %v9101_v27 = vld [vmem:[#allocation41_spill] sm:$0xff] }
 0x308   : > { %9097 = vst [vmem:[#allocation22_spill] sm:$0xff] %v8468_v29  ;;  %v3987_v52 = vpop.f32.mrf.mxu0  ;;  %v9099_v29 = vld [vmem:[#allocation39_spill] sm:$0xff]  ;;  %6114 = vmatprep.subr.bf16.mxu1 %v6722_v9 }
 0x309   : > { %v3988_v10 = vadd.f32 %v3987_v52, %v8259_v53  ;;  %v4100_v13 = vpop.f32.mrf.mxu1  ;;  %v9100_v53 = vld [vmem:[#allocation40_spill] sm:$0xff] }
 0x30a   : > { %v3989_v11 = vpop.f32.mrf.mxu0 }
 0x30b   : > { %v8474_v17 = vadd.f32 %v4100_v13, %v3988_v10  ;;  %v3990_v48 = vadd.f32 %v3989_v11, %v8263_v30  ;;  %v4102_v40 = vpop.f32.mrf.mxu1  ;;  %v6723_v30 = vld [vmem:[%s8970_s10 + $0xa0] sm:$0xff]   ;;  %v6725_v10 = vld [vmem:[%s8970_s10 + $0x98] sm:$0xff]  }
 0x30c   : > { %4654 = vmatmul.mubr.bf16.gmra.mxu0 %v9098_v31  ;;  %6115 = vmatpush3.bf16.msra.mxu1 %v6723_v30  ;;  %v8494_v31 = vpop.f32.mrf.mxu0 }
 0x30d   : > { %v8478_v32 = vadd.f32 %v4102_v40, %v3990_v48  ;;  %4663 = vmatprep.mubr.bf16.mxu0 %v8109_v24  ;;  %v6724_v24 = vld [vmem:[%s8970_s10 + $0xd8] sm:$0xff]   ;;  %v8496_v52 = vpop.f32.mrf.mxu1 }
 0x30e   : > { %4767 = vmatmul.mubr.bf16.gmra.mxu1 %v9099_v29  ;;  %v9102_v29 = vld [vmem:[#allocation42_spill] sm:$0xff]  ;;  %6116 = vmatprep.subr.bf16.mxu1 %v6724_v24  ;;  %v8503_v13 = vpop.f32.mrf.mxu0 }
 0x30f   : > { %4776 = vmatprep.mubr.bf16.mxu1 %v9100_v53  ;;  %v6727_v24 = vld [vmem:[%s8970_s10 + $0x90] sm:$0xff]  }
 0x310   : > { %6117 = vmatpush3.bf16.msra.mxu1 %v6725_v10 }
 0x314   : > { %4664 = vmatmul.mubr.bf16.gmra.mxu0 %v9101_v27 }
 0x315   : > { %4673 = vmatprep.mubr.bf16.mxu0 %v8133_v34  ;;  %v8505_v34 = vpop.f32.mrf.mxu1 }
 0x316   : > { %4777 = vmatmul.mubr.bf16.gmra.mxu1 %v9102_v29 }
 0x317   : > { %4786 = vmatprep.mubr.bf16.mxu1 %v8135_v2  ;;  %v6726_v2 = vld [vmem:[%s8970_s10 + $0xd0] sm:$0xff]  }
 0x318   : > { %6118 = vmatprep.subr.bf16.mxu1 %v6726_v2 }
 0x319   : > { %6119 = vmatpush3.bf16.msra.mxu1 %v6727_v24 }
 0x31c   : > { %v3997_v11 = vpop.f32.mrf.mxu0  ;;  %v4110_v48 = vpop.f32.mrf.mxu1  ;;  %4674 = vmatmul.mubr.bf16.gmra.mxu0 %v8137_v51 }
 0x31d   : > { %v3998_v40 = vadd.f32 %v3997_v11, %v8279_v42  ;;  %v3932_v11 = vadd.f32 %v8303_v15, %v8147_v63 }
 0x31e   : > { %4787 = vmatmul.mubr.bf16.gmra.mxu1 %v8139_v46  ;;  %v3999_v9 = vpop.f32.mrf.mxu0  ;;  %v4112_v53 = vpop.f32.mrf.mxu1 }
 0x31f   : > { %v8513_v30 = vadd.f32 %v4110_v48, %v3998_v40  ;;  %v4000_v27 = vadd.f32 %v3999_v9, %v8283_v26  ;;  %v3934_v40 = vadd.f32 %v8313_v60, %v8154_v59  ;;  %v6728_v9 = vld [vmem:[%s8970_s10 + $0xc8] sm:$0xff]   ;;  %v4045_v63 = vadd.f32 %v8308_v0, %v3932_v11 }
 0x320   : > { %v8519_v51 = vpop.f32.mrf.mxu0  ;;  %v8521_v42 = vpop.f32.mrf.mxu1  ;;  %6120 = vmatprep.subr.bf16.mxu1 %v6728_v9  ;;  %v3942_v0 = vadd.f32 %v8330_v45, %v8167_v55 }
 0x321   : > { %9103 = vst [vmem:[#allocation24_spill] sm:$0xff] %v8513_v30  ;;  %9104 = vst [vmem:[#allocation23_spill] sm:$0xff] %v8521_v42  ;;  %v8523_v29 = vadd.f32 %v4112_v53, %v4000_v27  ;;  %v8540_v53 = vld [vmem:[%s8969_s9] sm:$0xf]  ;;  %v6729_v42 = vld [vmem:[%s8970_s10 + $0x88] sm:$0xff]  }
 0x322   : > { %v8525_v10 = vpop.f32.mrf.mxu0  ;;  %v8527_v46 = vpop.f32.mrf.mxu1  ;;  %6121 = vmatpush3.bf16.msra.mxu1 %v6729_v42 }
 0x323   : > { %9105 = vst [vmem:[#allocation25_spill] sm:$0xff] %v8523_v29  ;;  %9106 = vst [vmem:[#allocation26_spill] sm:$0xff] %v8525_v10 }
 0x324   : > { %9107 = vst [vmem:[#allocation28_spill] sm:$0xff] %v8527_v46  ;;  %v4153_v26 = vpop.f32.mrf.mxu0  ;;  %v4266_v48 = vpop.f32.mrf.mxu1 }
 0x325   : > { %v4154_v2 = vadd.f32 %v4153_v26, %v8300_v12  ;;  %v4047_v12 = vadd.f32 %v8318_v25, %v3934_v40  ;;  %v9108_v26 = vld [vmem:[#allocation16_spill] sm:$0xff] }
 0x326   : > { %v4155_v27 = vpop.f32.mrf.mxu0  ;;  %v4268_v24 = vpop.f32.mrf.mxu1  ;;  %v8547_v30 = vrot.slane %v8540_v53, %v9108_v26 }
 0x327   : > { %v4156_v15 = vadd.f32 %v4155_v27, %v8306_v6  ;;  %v4267_v60 = vadd.f32 %v4266_v48, %v4154_v2  ;;  %v9109_v27 = vld [vmem:[#allocation17_spill] sm:$0xff] }
 0x328   : > { %v4157_v46 = vpop.f32.mrf.mxu0  ;;  %v4270_v59 = vpop.f32.mrf.mxu1  ;;  %v8556_v10 = vrot.slane %v8540_v53, %v9109_v27 }
 0x329   : > { %v4158_v29 = vadd.f32 %v4157_v46, %v4045_v63  ;;  %v4269_v9 = vadd.f32 %v4268_v24, %v4156_v15  ;;  %v3944_v46 = vadd.f32 %v8342_v50, %v8175_v22  ;;  %v4819_v63 = vadd.f32 %v8547_v30, %v4267_v60  ;;  %v6730_v50 = vld [vmem:[%s8970_s10 + $0xc0] sm:$0xff]  }
 0x32a   : > { %v4159_v11 = vpop.f32.mrf.mxu0  ;;  %v4272_v6 = vpop.f32.mrf.mxu1  ;;  %v4055_v24 = vadd.f32 %v8335_v3, %v3942_v0  ;;  %6122 = vmatprep.subr.bf16.mxu1 %v6730_v50  ;;  %v6731_v0 = vld [vmem:[%s8970_s10 + $0x80] sm:$0xff]  }
 0x32b   : > { %v4271_v25 = vadd.f32 %v4270_v59, %v4158_v29  ;;  %v4160_v48 = vadd.f32 %v4159_v11, %v4047_v12  ;;  %v4820_v29 = vadd.f32 %v8556_v10, %v4269_v9  ;;  %v4057_v11 = vadd.f32 %v8348_v56, %v3944_v46  ;;  %6123 = vmatpush3.bf16.msra.mxu1 %v6731_v0 }
 0x32c   : > { %v4163_v40 = vpop.f32.mrf.mxu0  ;;  %v4276_v2 = vpop.f32.mrf.mxu1  ;;  %v3952_v9 = vadd.f32 %v8360_v28, %v8187_v38  ;;  %v3954_v56 = vadd.f32 %v8372_v62, %v8195_v57  ;;  %v3964_v0 = vadd.f32 %v8405_v37, %v8215_v41 }
 0x32d   : > { %v4823_v26 = vadd.f32 %v8547_v30, %v4271_v25  ;;  %v4273_v55 = vadd.f32 %v4272_v6, %v4160_v48  ;;  %v4164_v45 = vadd.f32 %v4163_v40, %v8327_v14 }
 0x32e   : > { %v4165_v15 = vpop.f32.mrf.mxu0  ;;  %v4278_v27 = vpop.f32.mrf.mxu1  ;;  %v4065_v28 = vadd.f32 %v8365_v19, %v3952_v9 }
 0x32f   : > { %v4883_v59 = vpack.c.bf16 %v4823_v26, %v4819_v63  ;;  %v4824_v42 = vadd.f32 %v8556_v10, %v4273_v55  ;;  %v4166_v22 = vadd.f32 %v4165_v15, %v8333_v8  ;;  %v4277_v14 = vadd.f32 %v4276_v2, %v4164_v45 }
 0x330   : > { %v4167_v12 = vpop.f32.mrf.mxu0  ;;  %v4280_v60 = vpop.f32.mrf.mxu1 }
 0x331   : > { %v4168_v6 = vadd.f32 %v4167_v12, %v4055_v24  ;;  %v4884_v3 = vpack.c.bf16 %v4824_v42, %v4820_v29  ;;  %v4279_v48 = vadd.f32 %v4278_v27, %v4166_v22  ;;  %v4827_v26 = vadd.f32 %v8547_v30, %v4277_v14 }
 0x332   : > { %v4169_v8 = vpop.f32.mrf.mxu0  ;;  %v4282_v25 = vpop.f32.mrf.mxu1  ;;  %v4067_v22 = vadd.f32 %v8378_v1, %v3954_v56 }
 0x333   : > { %v4281_v40 = vadd.f32 %v4280_v60, %v4168_v6  ;;  %v4170_v63 = vadd.f32 %v4169_v8, %v4057_v11  ;;  %5210 = vmatprep.mubr.bf16.mxu0 %v4884_v3  ;;  %v4828_v27 = vadd.f32 %v8556_v10, %v4279_v48 }
 0x334   : > { %v4173_v46 = vpop.f32.mrf.mxu0  ;;  %v4286_v2 = vpop.f32.mrf.mxu1  ;;  %5211 = vmatmul.mubr.bf16.vlgmr.msra.gmra.mxu0 %v4883_v59 }
 0x335   : > { %v4831_v55 = vadd.f32 %v8547_v30, %v4281_v40  ;;  %v4283_v45 = vadd.f32 %v4282_v25, %v4170_v63  ;;  %v4174_v38 = vadd.f32 %v4173_v46, %v8357_v39  ;;  %v3962_v39 = vadd.f32 %v8390_v5, %v8207_v35 }
 0x336   : > { %v4175_v24 = vpop.f32.mrf.mxu0  ;;  %v4288_v15 = vpop.f32.mrf.mxu1 }
 0x337   : > { %v4887_v29 = vpack.c.bf16 %v4831_v55, %v4827_v26  ;;  %v4832_v42 = vadd.f32 %v8556_v10, %v4283_v45  ;;  %v4176_v57 = vadd.f32 %v4175_v24, %v8363_v7  ;;  %v4287_v50 = vadd.f32 %v4286_v2, %v4174_v38 }
 0x338   : > { %v4177_v62 = vpop.f32.mrf.mxu0  ;;  %v4290_v59 = vpop.f32.mrf.mxu1  ;;  %v4075_v35 = vadd.f32 %v8395_v49, %v3962_v39  ;;  %v4077_v26 = vadd.f32 %v8411_v16, %v3964_v0  ;;  %v9111_v0 = vld [vmem:[#allocation65_spill] sm:$0xff] }
 0x339   : > { %v4178_v12 = vadd.f32 %v4177_v62, %v4065_v28  ;;  %v4888_v60 = vpack.c.bf16 %v4832_v42, %v4828_v27  ;;  %v4289_v14 = vadd.f32 %v4288_v15, %v4176_v57  ;;  %v4835_v1 = vadd.f32 %v8547_v30, %v4287_v50 }
 0x33a   : > { %v4179_v19 = vpop.f32.mrf.mxu0  ;;  %v4292_v11 = vpop.f32.mrf.mxu1 }
 0x33b   : > { %v4291_v6 = vadd.f32 %v4290_v59, %v4178_v12  ;;  %v4180_v3 = vadd.f32 %v4179_v19, %v4067_v22  ;;  %5218 = vmatprep.mubr.bf16.mxu0 %v4888_v60  ;;  %v4836_v63 = vadd.f32 %v8556_v10, %v4289_v14  ;;  %v9110_v19 = vld [vmem:[#allocation20_spill] sm:$0xff] }
 0x33c   : > { %v4183_v7 = vpop.f32.mrf.mxu0  ;;  %v4296_v9 = vpop.f32.mrf.mxu1  ;;  %5219 = vmatmul.mubr.bf16.gmra.mxu0 %v4887_v29  ;;  %v3974_v29 = vadd.f32 %v8441_v54, %v8235_v58 }
 0x33d   : > { %v4839_v8 = vadd.f32 %v8547_v30, %v4291_v6  ;;  %v4293_v25 = vadd.f32 %v4292_v11, %v4180_v3  ;;  %v4184_v48 = vadd.f32 %v4183_v7, %v8387_v21  ;;  %v3972_v21 = vadd.f32 %v8426_v18, %v8227_v4 }
 0x33e   : > { %v4185_v5 = vpop.f32.mrf.mxu0  ;;  %v4298_v40 = vpop.f32.mrf.mxu1  ;;  %v4087_v11 = vadd.f32 %v9110_v19, %v3974_v29 }
 0x33f   : > { %v4891_v56 = vpack.c.bf16 %v4839_v8, %v4835_v1  ;;  %v4840_v46 = vadd.f32 %v8556_v10, %v4293_v25  ;;  %v4186_v41 = vadd.f32 %v4185_v5, %v8393_v36  ;;  %v4297_v55 = vadd.f32 %v4296_v9, %v4184_v48  ;;  %v9112_v25 = vld [vmem:[#allocation67_spill] sm:$0xff] }
 0x340   : > { %v4187_v37 = vpop.f32.mrf.mxu0  ;;  %v4300_v2 = vpop.f32.mrf.mxu1  ;;  %v4085_v4 = vadd.f32 %v8431_v23, %v3972_v21  ;;  %v3984_v48 = vadd.f32 %v8465_v33, %v9112_v25  ;;  %v9113_v33 = vld [vmem:[#allocation21_spill] sm:$0xff]  ;;  %v9114_v21 = vld [vmem:[#allocation22_spill] sm:$0xff] }
 0x341   : > { %v4188_v45 = vadd.f32 %v4187_v37, %v4075_v35  ;;  %v4892_v38 = vpack.c.bf16 %v4840_v46, %v4836_v63  ;;  %v4299_v24 = vadd.f32 %v4298_v40, %v4186_v41  ;;  %v4843_v16 = vadd.f32 %v8547_v30, %v4297_v55 }
 0x342   : > { %v4189_v49 = vpop.f32.mrf.mxu0  ;;  %v4302_v28 = vpop.f32.mrf.mxu1 }
 0x343   : > { %v4301_v15 = vadd.f32 %v4300_v2, %v4188_v45  ;;  %v4190_v27 = vadd.f32 %v4189_v49, %v4077_v26  ;;  %5226 = vmatprep.mubr.bf16.mxu0 %v4892_v38  ;;  %v4844_v50 = vadd.f32 %v8556_v10, %v4299_v24  ;;  %v4097_v49 = vadd.f32 %v9114_v21, %v3984_v48  ;;  %v9123_v21 = vld [vmem:[#allocation28_spill] sm:$0xff] }
 0x344   : > { %v4193_v36 = vpop.f32.mrf.mxu0  ;;  %v4306_v42 = vpop.f32.mrf.mxu1  ;;  %5227 = vmatmul.mubr.bf16.gmra.mxu0 %v4891_v56 }
 0x345   : > { %v4847_v57 = vadd.f32 %v8547_v30, %v4301_v15  ;;  %v4303_v62 = vadd.f32 %v4302_v28, %v4190_v27  ;;  %v4194_v59 = vadd.f32 %v4193_v36, %v8423_v20  ;;  %v3982_v20 = vadd.f32 %v8453_v43, %v9111_v0  ;;  %v9115_v27 = vld [vmem:[#allocation71_spill] sm:$0xff] }
 0x346   : > { %v4195_v18 = vpop.f32.mrf.mxu0  ;;  %v4308_v22 = vpop.f32.mrf.mxu1 }
 0x347   : > { %v4895_v12 = vpack.c.bf16 %v4847_v57, %v4843_v16  ;;  %v4848_v60 = vadd.f32 %v8556_v10, %v4303_v62  ;;  %v4196_v58 = vadd.f32 %v4195_v18, %v8429_v44  ;;  %v4307_v14 = vadd.f32 %v4306_v42, %v4194_v59  ;;  %v9116_v57 = vld [vmem:[#allocation73_spill] sm:$0xff] }
 0x348   : > { %v4197_v54 = vpop.f32.mrf.mxu0  ;;  %v4310_v39 = vpop.f32.mrf.mxu1  ;;  %v4095_v43 = vadd.f32 %v8458_v47, %v3982_v20  ;;  %v3994_v62 = vadd.f32 %v8503_v13, %v9116_v57  ;;  %v9124_v57 = vld [vmem:[#allocation43_spill] sm:$0xff] }
 0x349   : > { %v4198_v6 = vadd.f32 %v4197_v54, %v4085_v4  ;;  %v4896_v3 = vpack.c.bf16 %v4848_v60, %v4844_v50  ;;  %v4309_v9 = vadd.f32 %v4308_v22, %v4196_v58  ;;  %v4851_v5 = vadd.f32 %v8547_v30, %v4307_v14 }
 0x34a   : > { %v4199_v23 = vpop.f32.mrf.mxu0  ;;  %v4312_v7 = vpop.f32.mrf.mxu1 }
 0x34b   : > { %v4311_v1 = vadd.f32 %v4310_v39, %v4198_v6  ;;  %v4200_v8 = vadd.f32 %v4199_v23, %v4087_v11  ;;  %5234 = vmatprep.mubr.bf16.mxu0 %v4896_v3  ;;  %v4852_v37 = vadd.f32 %v8556_v10, %v4309_v9  ;;  %v4107_v6 = vadd.f32 %v8505_v34, %v3994_v62  ;;  %v9117_v23 = vld [vmem:[#allocation77_spill] sm:$0xff] }
 0x34c   : > { %v4203_v44 = vpop.f32.mrf.mxu0  ;;  %v4316_v35 = vpop.f32.mrf.mxu1  ;;  %5235 = vmatmul.mubr.bf16.gmra.mxu0 %v4895_v12 }
 0x34d   : > { %v4855_v40 = vadd.f32 %v8547_v30, %v4311_v1  ;;  %v4313_v63 = vadd.f32 %v4312_v7, %v4200_v8  ;;  %v4204_v56 = vadd.f32 %v4203_v44, %v8450_v61  ;;  %v3992_v61 = vadd.f32 %v8494_v31, %v9115_v27  ;;  %v9119_v44 = vld [vmem:[#allocation26_spill] sm:$0xff] }
 0x34e   : > { %v4205_v46 = vpop.f32.mrf.mxu0  ;;  %v4318_v41 = vpop.f32.mrf.mxu1 }
 0x34f   : > { %v4899_v2 = vpack.c.bf16 %v4855_v40, %v4851_v5  ;;  %v4856_v26 = vadd.f32 %v8556_v10, %v4313_v63  ;;  %v4206_v55 = vadd.f32 %v4205_v46, %v9113_v33  ;;  %v4317_v28 = vadd.f32 %v4316_v35, %v4204_v56  ;;  %v9120_v63 = vld [vmem:[#allocation23_spill] sm:$0xff]  ;;  %v9122_v33 = vld [vmem:[#allocation24_spill] sm:$0xff] }
 0x350   : > { %v4207_v45 = vpop.f32.mrf.mxu0  ;;  %v4320_v38 = vpop.f32.mrf.mxu1  ;;  %v4105_v31 = vadd.f32 %v8496_v52, %v3992_v61 }
 0x351   : > { %v4208_v24 = vadd.f32 %v4207_v45, %v4095_v43  ;;  %v4900_v15 = vpack.c.bf16 %v4856_v26, %v4852_v37  ;;  %v4319_v36 = vadd.f32 %v4318_v41, %v4206_v55  ;;  %v4859_v18 = vadd.f32 %v8547_v30, %v4317_v28 }
 0x352   : > { %v4209_v47 = vpop.f32.mrf.mxu0  ;;  %v4322_v29 = vpop.f32.mrf.mxu1 }
 0x353   : > { %v4321_v42 = vadd.f32 %v4320_v38, %v4208_v24  ;;  %v4210_v16 = vadd.f32 %v4209_v47, %v4097_v49  ;;  %5242 = vmatprep.mubr.bf16.mxu0 %v4900_v15  ;;  %v4860_v54 = vadd.f32 %v8556_v10, %v4319_v36 }
 0x354   : > { %v4213_v59 = vpop.f32.mrf.mxu0  ;;  %v4326_v4 = vpop.f32.mrf.mxu1  ;;  %5243 = vmatmul.mubr.bf16.gmra.mxu0 %v4899_v2  ;;  %v9121_v2 = vld [vmem:[#allocation25_spill] sm:$0xff] }
 0x355   : > { %v4863_v22 = vadd.f32 %v8547_v30, %v4321_v42  ;;  %v4323_v50 = vadd.f32 %v4322_v29, %v4210_v16  ;;  %v4214_v12 = vadd.f32 %v4213_v59, %v8474_v17  ;;  %v4002_v17 = vadd.f32 %v8519_v51, %v9117_v23 }
 0x356   : > { %v4215_v60 = vpop.f32.mrf.mxu0  ;;  %v4328_v58 = vpop.f32.mrf.mxu1 }
 0x357   : > { %v4903_v39 = vpack.c.bf16 %v4863_v22, %v4859_v18  ;;  %v4864_v19 = vadd.f32 %v8556_v10, %v4323_v50  ;;  %v4216_v13 = vadd.f32 %v4215_v60, %v8478_v32  ;;  %v4327_v3 = vadd.f32 %v4326_v4, %v4214_v12  ;;  %v9118_v32 = vld [vmem:[#allocation79_spill] sm:$0xff] }
 0x358   : > { %v4217_v11 = vpop.f32.mrf.mxu0  ;;  %v4330_v14 = vpop.f32.mrf.mxu1  ;;  %v4004_v35 = vadd.f32 %v9119_v44, %v9118_v32  ;;  %v4115_v56 = vadd.f32 %v9120_v63, %v4002_v17 }
 0x359   : > { %v4218_v0 = vadd.f32 %v4217_v11, %v4105_v31  ;;  %v4904_v20 = vpack.c.bf16 %v4864_v19, %v4860_v54  ;;  %v4329_v9 = vadd.f32 %v4328_v58, %v4216_v13  ;;  %v4867_v34 = vadd.f32 %v8547_v30, %v4327_v3  ;;  %v9125_v31 = vld [vmem:[#allocation44_spill] sm:$0xff] }
 0x35a   : > { %v4219_v52 = vpop.f32.mrf.mxu0  ;;  %v4332_v7 = vpop.f32.mrf.mxu1  ;;  %v4117_v49 = vadd.f32 %v9123_v21, %v4004_v35  ;;  %v9128_v35 = vld [vmem:[#allocation51_spill] sm:$0xff] }
 0x35b   : > { %v4331_v1 = vadd.f32 %v4330_v14, %v4218_v0  ;;  %v4220_v8 = vadd.f32 %v4219_v52, %v4107_v6  ;;  %5250 = vmatprep.mubr.bf16.mxu0 %v4904_v20  ;;  %v4868_v46 = vadd.f32 %v8556_v10, %v4329_v9  ;;  %v9126_v0 = vld [vmem:[#allocation47_spill] sm:$0xff]  ;;  %v9127_v52 = vld [vmem:[#allocation48_spill] sm:$0xff] }
 0x35c   : > { %v4223_v25 = vpop.f32.mrf.mxu0  ;;  %v4336_v48 = vpop.f32.mrf.mxu1  ;;  %5251 = vmatmul.mubr.bf16.gmra.mxu0 %v4903_v39 }
 0x35d   : > { %v4871_v5 = vadd.f32 %v8547_v30, %v4331_v1  ;;  %v4333_v40 = vadd.f32 %v4332_v7, %v4220_v8  ;;  %v4224_v55 = vadd.f32 %v4223_v25, %v9122_v33 }
 0x35e   : > { %v4225_v51 = vpop.f32.mrf.mxu0  ;;  %v4338_v43 = vpop.f32.mrf.mxu1 }
 0x35f   : > { %v4907_v41 = vpack.c.bf16 %v4871_v5, %v4867_v34  ;;  %v4872_v37 = vadd.f32 %v8556_v10, %v4333_v40  ;;  %v4226_v26 = vadd.f32 %v4225_v51, %v9121_v2  ;;  %v4337_v36 = vadd.f32 %v4336_v48, %v4224_v55  ;;  %v9130_v55 = vld [vmem:[#allocation55_spill] sm:$0xff] }
 0x360   : > { %v4227_v45 = vpop.f32.mrf.mxu0  ;;  %v4340_v38 = vpop.f32.mrf.mxu1 }
 0x361   : > { %v4228_v28 = vadd.f32 %v4227_v45, %v4115_v56  ;;  %v4908_v24 = vpack.c.bf16 %v4872_v37, %v4868_v46  ;;  %v4339_v61 = vadd.f32 %v4338_v43, %v4226_v26  ;;  %v4875_v54 = vadd.f32 %v8547_v30, %v4337_v36  ;;  %v9129_v56 = vld [vmem:[#allocation52_spill] sm:$0xff] }
 0x362   : > { %v4229_v15 = vpop.f32.mrf.mxu0  ;;  %v4342_v27 = vpop.f32.mrf.mxu1 }
 0x363   : > { %v4341_v47 = vadd.f32 %v4340_v38, %v4228_v28  ;;  %v4230_v29 = vadd.f32 %v4229_v15, %v4117_v49  ;;  %5258 = vmatprep.mubr.bf16.mxu0 %v4908_v24  ;;  %v4876_v22 = vadd.f32 %v8556_v10, %v4339_v61  ;;  %v9131_v28 = vld [vmem:[#allocation56_spill] sm:$0xff] }
 0x364   : > { %v4379_v42 = vpop.f32.mrf.mxu0  ;;  %5259 = vmatmul.mubr.bf16.gmra.mxu0 %v4907_v41 }
 0x365   : > { %v4343_v16 = vadd.f32 %v4342_v27, %v4230_v29  ;;  %v4380_v62 = vadd.f32 %v4379_v42, %v9124_v57  ;;  %v4492_v59 = vpop.f32.mrf.mxu1  ;;  %v4879_v4 = vadd.f32 %v8547_v30, %v4341_v47 }
 0x366   : > { %v4381_v18 = vpop.f32.mrf.mxu0 }
 0x367   : > { %v4880_v50 = vadd.f32 %v8556_v10, %v4343_v16  ;;  %v8650_v12 = vadd.f32 %v4492_v59, %v4380_v62  ;;  %v4382_v60 = vadd.f32 %v4381_v18, %v9125_v31  ;;  %v4494_v58 = vpop.f32.mrf.mxu1  ;;  %v4911_v14 = vpack.c.bf16 %v4879_v4, %v4875_v54  ;;  %v9132_v16 = vld [vmem:[#allocation59_spill] sm:$0xff]  ;;  %v9133_v18 = vld [vmem:[#allocation60_spill] sm:$0xff] }
 0x368   : > { %v8654_v39 = vpop.f32.mrf.mxu0 }
 0x369   : > { %v8656_v19 = vadd.f32 %v4494_v58, %v4382_v60  ;;  %v8658_v13 = vpop.f32.mrf.mxu1  ;;  %v4912_v11 = vpack.c.bf16 %v4880_v50, %v4876_v22 }
 0x36a   : > { %v8660_v6 = vpop.f32.mrf.mxu0 }
 0x36b   : > { %v8662_v3 = vpop.f32.mrf.mxu1  ;;  %5266 = vmatprep.mubr.bf16.mxu0 %v4912_v11 }
 0x36c   : > { %v4389_v10 = vpop.f32.mrf.mxu0  ;;  %5267 = vmatmul.mubr.bf16.gmra.mxu0 %v4911_v14 }
 0x36d   : > { %v4390_v20 = vadd.f32 %v4389_v10, %v9126_v0  ;;  %v4502_v23 = vpop.f32.mrf.mxu1  ;;  %v9134_v10 = vld [vmem:[#allocation63_spill] sm:$0xff] }
 0x36e   : > { %v4391_v17 = vpop.f32.mrf.mxu0 }
 0x36f   : > { %v8665_v30 = vadd.f32 %v4502_v23, %v4390_v20  ;;  %v4392_v7 = vadd.f32 %v4391_v17, %v9127_v52  ;;  %v4504_v9 = vpop.f32.mrf.mxu1  ;;  %v9135_v52 = vld [vmem:[#allocation64_spill] sm:$0xff] }
 0x370   : > { %v8668_v1 = vpop.f32.mrf.mxu0 }
 0x371   : > { %v8670_v8 = vadd.f32 %v4504_v9, %v4392_v7  ;;  %v8672_v25 = vpop.f32.mrf.mxu1 }
 0x372   : > { %v8674_v48 = vpop.f32.mrf.mxu0 }
 0x373   : > { %v8676_v32 = vpop.f32.mrf.mxu1 }
 0x374   : > { %v4399_v44 = vpop.f32.mrf.mxu0 }
 0x375   : > { %v4400_v34 = vadd.f32 %v4399_v44, %v9128_v35  ;;  %v4512_v5 = vpop.f32.mrf.mxu1 }
 0x376   : > { %v4401_v40 = vpop.f32.mrf.mxu0 }
 0x377   : > { %v8679_v63 = vadd.f32 %v4512_v5, %v4400_v34  ;;  %v4402_v51 = vadd.f32 %v4401_v40, %v9129_v56  ;;  %v4514_v43 = vpop.f32.mrf.mxu1 }
 0x378   : > { %v8682_v46 = vpop.f32.mrf.mxu0 }
 0x379   : > { %v8684_v41 = vadd.f32 %v4514_v43, %v4402_v51  ;;  %v8686_v37 = vpop.f32.mrf.mxu1  ;;  %v9136_v51 = vld [vmem:[#allocation69_spill] sm:$0xff] }
 0x37a   : > { %v8688_v2 = vpop.f32.mrf.mxu0 }
 0x37b   : > { %v8690_v26 = vpop.f32.mrf.mxu1 }
 0x37c   : > { %v4409_v33 = vpop.f32.mrf.mxu0 }
 0x37d   : > { %v4410_v45 = vadd.f32 %v4409_v33, %v9130_v55  ;;  %v4522_v38 = vpop.f32.mrf.mxu1 }
 0x37e   : > { %v4411_v21 = vpop.f32.mrf.mxu0 }
 0x37f   : > { %v8693_v49 = vadd.f32 %v4522_v38, %v4410_v45  ;;  %v4412_v24 = vadd.f32 %v4411_v21, %v9131_v28  ;;  %v4524_v15 = vpop.f32.mrf.mxu1  ;;  %v9137_v38 = vld [vmem:[#allocation70_spill] sm:$0xff] }
 0x380   : > { %v8696_v27 = vpop.f32.mrf.mxu0 }
 0x381   : > { %v8698_v61 = vadd.f32 %v4524_v15, %v4412_v24  ;;  %v8700_v47 = vpop.f32.mrf.mxu1 }
 0x382   : > { %v8702_v29 = vpop.f32.mrf.mxu0 }
 0x383   : > { %v8704_v36 = vpop.f32.mrf.mxu1 }
 0x384   : > { %v4419_v42 = vpop.f32.mrf.mxu0 }
 0x385   : > { %v4420_v57 = vadd.f32 %v4419_v42, %v9132_v16  ;;  %v4532_v62 = vpop.f32.mrf.mxu1 }
 0x386   : > { %v4421_v59 = vpop.f32.mrf.mxu0 }
 0x387   : > { %v8707_v4 = vadd.f32 %v4532_v62, %v4420_v57  ;;  %v4422_v22 = vadd.f32 %v4421_v59, %v9133_v18  ;;  %v4534_v50 = vpop.f32.mrf.mxu1  ;;  %v9138_v59 = vld [vmem:[#allocation75_spill] sm:$0xff] }
 0x388   : > { %v8710_v31 = vpop.f32.mrf.mxu0 }
 0x389   : > { %v8712_v60 = vadd.f32 %v4534_v50, %v4422_v22  ;;  %v8714_v58 = vpop.f32.mrf.mxu1 }
 0x38a   : > { %v8716_v54 = vpop.f32.mrf.mxu0 }
 0x38b   : > { %v8718_v11 = vpop.f32.mrf.mxu1 }
 0x38c   : > { %v4429_v14 = vpop.f32.mrf.mxu0 }
 0x38d   : > { %v4430_v0 = vadd.f32 %v4429_v14, %v9134_v10  ;;  %v4542_v20 = vpop.f32.mrf.mxu1  ;;  %v9140_v10 = vld [vmem:[#allocation76_spill] sm:$0xff] }
 0x38e   : > { %v4431_v23 = vpop.f32.mrf.mxu0 }
 0x38f   : > { %v8721_v17 = vadd.f32 %v4542_v20, %v4430_v0  ;;  %v4432_v7 = vadd.f32 %v4431_v23, %v9135_v52  ;;  %v4544_v9 = vpop.f32.mrf.mxu1 }
 0x390   : > { %v8724_v44 = vpop.f32.mrf.mxu0 }
 0x391   : > { %v8726_v35 = vadd.f32 %v4544_v9, %v4432_v7  ;;  %v8728_v34 = vpop.f32.mrf.mxu1 }
 0x392   : > { %v8730_v5 = vpop.f32.mrf.mxu0 }
 0x393   : > { %v8732_v40 = vpop.f32.mrf.mxu1 }
 0x394   : > { %v4439_v56 = vpop.f32.mrf.mxu0 }
 0x395   : > { %v4440_v43 = vadd.f32 %v4439_v56, %v9136_v51  ;;  %v4552_v33 = vpop.f32.mrf.mxu1  ;;  %v9143_v56 = vld [vmem:[#allocation45_spill] sm:$0xff] }
 0x396   : > { %v4441_v55 = vpop.f32.mrf.mxu0  ;;  %v4384_v51 = vadd.f32 %v8654_v39, %v9143_v56  ;;  %v9146_v39 = vld [vmem:[#allocation19_spill] sm:$0xff] }
 0x397   : > { %v8735_v45 = vadd.f32 %v4552_v33, %v4440_v43  ;;  %v4442_v21 = vadd.f32 %v4441_v55, %v9137_v38  ;;  %v4554_v28 = vpop.f32.mrf.mxu1  ;;  %v9145_v55 = vld [vmem:[#allocation46_spill] sm:$0xff] }
 0x398   : > { %v8738_v24 = vpop.f32.mrf.mxu0  ;;  %v4386_v38 = vadd.f32 %v8660_v6, %v9145_v55  ;;  %v9147_v6 = vld [vmem:[#allocation49_spill] sm:$0xff] }
 0x399   : > { %v8740_v15 = vadd.f32 %v4554_v28, %v4442_v21  ;;  %v8742_v42 = vpop.f32.mrf.mxu1  ;;  %v4394_v55 = vadd.f32 %v8668_v1, %v9147_v6 }
 0x39a   : > { %v8744_v16 = vpop.f32.mrf.mxu0 }
 0x39b   : > { %v8746_v57 = vpop.f32.mrf.mxu1  ;;  %v4507_v1 = vadd.f32 %v8672_v25, %v4394_v55  ;;  %v9150_v25 = vld [vmem:[#allocation53_spill] sm:$0xff] }
 0x39c   : > { %v4449_v62 = vpop.f32.mrf.mxu0 }
 0x39d   : > { %v4450_v18 = vadd.f32 %v4449_v62, %v9138_v59  ;;  %v4562_v22 = vpop.f32.mrf.mxu1  ;;  %v4497_v62 = vadd.f32 %v8658_v13, %v4384_v51 }
 0x39e   : > { %v4451_v50 = vpop.f32.mrf.mxu0 }
 0x39f   : > { %v8749_v14 = vadd.f32 %v4562_v22, %v4450_v18  ;;  %v4452_v0 = vadd.f32 %v4451_v50, %v9140_v10  ;;  %v4564_v20 = vpop.f32.mrf.mxu1  ;;  %v4499_v10 = vadd.f32 %v8662_v3, %v4386_v38  ;;  %v9149_v38 = vld [vmem:[#allocation50_spill] sm:$0xff] }
 0x3a0   : > { %v8752_v23 = vpop.f32.mrf.mxu0 }
 0x3a1   : > { %9139 = vst [vmem:[#allocation27_spill] sm:$0xff] %v8749_v14  ;;  %v8754_v52 = vadd.f32 %v4564_v20, %v4452_v0  ;;  %v8756_v7 = vpop.f32.mrf.mxu1  ;;  %v8772_v20 = vrot.slane %v8540_v53, %v9146_v39 }
 0x3a2   : > { %9142 = vst [vmem:[#allocation30_spill] sm:$0xff] %v8756_v7  ;;  %v8758_v9 = vpop.f32.mrf.mxu0 }
 0x3a3   : > { %9141 = vst [vmem:[#allocation29_spill] sm:$0xff] %v8754_v52  ;;  %v8762_v43 = vpop.f32.mrf.mxu1 }
 0x3a4   : > { %9144 = vst [vmem:[#allocation32_spill] sm:$0xff] %v8762_v43  ;;  %v4605_v33 = vpop.f32.mrf.mxu0 }
 0x3a5   : > { %v4606_v18 = vadd.f32 %v4605_v33, %v8650_v12 }
 0x3a6   : > { %v4718_v21 = vpop.f32.mrf.mxu1  ;;  %v4607_v28 = vpop.f32.mrf.mxu0 }
 0x3a7   : > { %v4608_v59 = vadd.f32 %v4607_v28, %v8656_v19  ;;  %v4719_v19 = vadd.f32 %v4718_v21, %v4606_v18  ;;  %v9148_v28 = vld [vmem:[#allocation18_spill] sm:$0xff] }
 0x3a8   : > { %v4720_v22 = vpop.f32.mrf.mxu1  ;;  %v4609_v50 = vpop.f32.mrf.mxu0  ;;  %v8778_v12 = vrot.slane %v8540_v53, %v9148_v28 }
 0x3a9   : > { %v4610_v0 = vadd.f32 %v4609_v50, %v4497_v62  ;;  %v4721_v14 = vadd.f32 %v4720_v22, %v4608_v59  ;;  %v4396_v62 = vadd.f32 %v8674_v48, %v9149_v38 }
 0x3aa   : > { %v4722_v56 = vpop.f32.mrf.mxu1  ;;  %v4611_v43 = vpop.f32.mrf.mxu0  ;;  %v4821_v53 = vadd.f32 %v8778_v12, %v4719_v19 }
 0x3ab   : > { %v4723_v13 = vadd.f32 %v4722_v56, %v4610_v0  ;;  %v4612_v51 = vadd.f32 %v4611_v43, %v4499_v10  ;;  %v4822_v59 = vadd.f32 %v8772_v20, %v4721_v14  ;;  %v4509_v48 = vadd.f32 %v8676_v32, %v4396_v62 }
 0x3ac   : > { %v4724_v33 = vpop.f32.mrf.mxu1  ;;  %v4615_v3 = vpop.f32.mrf.mxu0  ;;  %v4404_v14 = vadd.f32 %v8682_v46, %v9150_v25 }
 0x3ad   : > { %v4725_v50 = vadd.f32 %v4724_v33, %v4612_v51  ;;  %v4825_v39 = vadd.f32 %v8778_v12, %v4723_v13  ;;  %v4616_v18 = vadd.f32 %v4615_v3, %v8665_v30  ;;  %v9151_v30 = vld [vmem:[#allocation54_spill] sm:$0xff] }
 0x3ae   : > { %v4728_v52 = vpop.f32.mrf.mxu1  ;;  %v4617_v7 = vpop.f32.mrf.mxu0  ;;  %v4406_v3 = vadd.f32 %v8688_v2, %v9151_v30 }
 0x3af   : > { %v4826_v43 = vadd.f32 %v8772_v20, %v4725_v50  ;;  %v4618_v21 = vadd.f32 %v4617_v7, %v8670_v8  ;;  %v4885_v6 = vpack.c.bf16 %v4825_v39, %v4821_v53  ;;  %v4729_v8 = vadd.f32 %v4728_v52, %v4616_v18 }
 0x3b0   : > { %v4730_v22 = vpop.f32.mrf.mxu1  ;;  %v4619_v10 = vpop.f32.mrf.mxu0  ;;  %v4517_v39 = vadd.f32 %v8686_v37, %v4404_v14  ;;  %v4519_v2 = vadd.f32 %v8690_v26, %v4406_v3  ;;  %v9152_v37 = vld [vmem:[#allocation57_spill] sm:$0xff] }
 0x3b1   : > { %v4620_v0 = vadd.f32 %v4619_v10, %v4507_v1  ;;  %v4886_v56 = vpack.c.bf16 %v4826_v43, %v4822_v59  ;;  %v4731_v55 = vadd.f32 %v4730_v22, %v4618_v21  ;;  %v4829_v52 = vadd.f32 %v8778_v12, %v4729_v8 }
 0x3b2   : > { %v4732_v13 = vpop.f32.mrf.mxu1  ;;  %v4621_v51 = vpop.f32.mrf.mxu0 }
 0x3b3   : > { %v4733_v28 = vadd.f32 %v4732_v13, %v4620_v0  ;;  %v4622_v33 = vadd.f32 %v4621_v51, %v4509_v48  ;;  %5307 = vmatprep.mubr.bf16.mxu1 %v4886_v56  ;;  %v4830_v46 = vadd.f32 %v8772_v20, %v4731_v55  ;;  %v4414_v56 = vadd.f32 %v8696_v27, %v9152_v37 }
 0x3b4   : > { %v4734_v7 = vpop.f32.mrf.mxu1  ;;  %v4625_v19 = vpop.f32.mrf.mxu0  ;;  %5308 = vmatmul.mubr.bf16.vlgmr.msra.gmra.mxu1 %v4885_v6 }
 0x3b5   : > { %v4735_v32 = vadd.f32 %v4734_v7, %v4622_v33  ;;  %v4833_v38 = vadd.f32 %v8778_v12, %v4733_v28  ;;  %v4626_v43 = vadd.f32 %v4625_v19, %v8679_v63  ;;  %v9153_v63 = vld [vmem:[#allocation58_spill] sm:$0xff]  ;;  %v4527_v7 = vadd.f32 %v8700_v47, %v4414_v56  ;;  %v9154_v47 = vld [vmem:[#allocation61_spill] sm:$0xff] }
 0x3b6   : > { %v4738_v62 = vpop.f32.mrf.mxu1  ;;  %v4627_v50 = vpop.f32.mrf.mxu0  ;;  %v4416_v55 = vadd.f32 %v8702_v29, %v9153_v63 }
 0x3b7   : > { %v4834_v1 = vadd.f32 %v8772_v20, %v4735_v32  ;;  %v4628_v59 = vadd.f32 %v4627_v50, %v8684_v41  ;;  %v4889_v10 = vpack.c.bf16 %v4833_v38, %v4829_v52  ;;  %v4739_v41 = vadd.f32 %v4738_v62, %v4626_v43 }
 0x3b8   : > { %v4740_v21 = vpop.f32.mrf.mxu1  ;;  %v4629_v53 = vpop.f32.mrf.mxu0  ;;  %v4529_v29 = vadd.f32 %v8704_v36, %v4416_v55  ;;  %v4424_v52 = vadd.f32 %v8710_v31, %v9154_v47 }
 0x3b9   : > { %v4630_v18 = vadd.f32 %v4629_v53, %v4517_v39  ;;  %v4890_v22 = vpack.c.bf16 %v4834_v1, %v4830_v46  ;;  %v4741_v6 = vadd.f32 %v4740_v21, %v4628_v59  ;;  %v4837_v3 = vadd.f32 %v8778_v12, %v4739_v41 }
 0x3ba   : > { %v4742_v48 = vpop.f32.mrf.mxu1  ;;  %v4631_v0 = vpop.f32.mrf.mxu0  ;;  %v4537_v37 = vadd.f32 %v8714_v58, %v4424_v52  ;;  %v9156_v58 = vld [vmem:[#allocation66_spill] sm:$0xff] }
 0x3bb   : > { %v4743_v13 = vadd.f32 %v4742_v48, %v4630_v18  ;;  %v4632_v51 = vadd.f32 %v4631_v0, %v4519_v2  ;;  %5315 = vmatprep.mubr.bf16.mxu1 %v4890_v22  ;;  %v4838_v27 = vadd.f32 %v8772_v20, %v4741_v6 }
 0x3bc   : > { %v4744_v25 = vpop.f32.mrf.mxu1  ;;  %v4635_v14 = vpop.f32.mrf.mxu0  ;;  %5316 = vmatmul.mubr.bf16.gmra.mxu1 %v4889_v10 }
 0x3bd   : > { %v4745_v26 = vadd.f32 %v4744_v25, %v4632_v51  ;;  %v4841_v28 = vadd.f32 %v8778_v12, %v4743_v13  ;;  %v4636_v32 = vadd.f32 %v4635_v14, %v8693_v49  ;;  %v9155_v49 = vld [vmem:[#allocation62_spill] sm:$0xff] }
 0x3be   : > { %v4748_v33 = vpop.f32.mrf.mxu1  ;;  %v4637_v8 = vpop.f32.mrf.mxu0  ;;  %v4426_v22 = vadd.f32 %v8716_v54, %v9155_v49 }
 0x3bf   : > { %v4842_v19 = vadd.f32 %v8772_v20, %v4745_v26  ;;  %v4638_v30 = vadd.f32 %v4637_v8, %v8698_v61  ;;  %v4893_v46 = vpack.c.bf16 %v4841_v28, %v4837_v3  ;;  %v4749_v61 = vadd.f32 %v4748_v33, %v4636_v32 }
 0x3c0   : > { %v4750_v38 = vpop.f32.mrf.mxu1  ;;  %v4639_v62 = vpop.f32.mrf.mxu0  ;;  %v4539_v54 = vadd.f32 %v8718_v11, %v4426_v22  ;;  %v4434_v33 = vadd.f32 %v8724_v44, %v9156_v58 }
 0x3c1   : > { %v4640_v50 = vadd.f32 %v4639_v62, %v4527_v7  ;;  %v4894_v39 = vpack.c.bf16 %v4842_v19, %v4838_v27  ;;  %v4751_v43 = vadd.f32 %v4750_v38, %v4638_v30  ;;  %v4845_v13 = vadd.f32 %v8778_v12, %v4749_v61 }
 0x3c2   : > { %v4752_v1 = vpop.f32.mrf.mxu1  ;;  %v4641_v59 = vpop.f32.mrf.mxu0 }
 0x3c3   : > { %v4753_v21 = vadd.f32 %v4752_v1, %v4640_v50  ;;  %v4642_v53 = vadd.f32 %v4641_v59, %v4529_v29  ;;  %5323 = vmatprep.mubr.bf16.mxu1 %v4894_v39  ;;  %v4846_v31 = vadd.f32 %v8772_v20, %v4751_v43  ;;  %v4547_v29 = vadd.f32 %v8728_v34, %v4434_v33  ;;  %v9158_v34 = vld [vmem:[#allocation72_spill] sm:$0xff] }
 0x3c4   : > { %v4754_v2 = vpop.f32.mrf.mxu1  ;;  %v4645_v18 = vpop.f32.mrf.mxu0  ;;  %5324 = vmatmul.mubr.bf16.gmra.mxu1 %v4893_v46 }
 0x3c5   : > { %v4755_v36 = vadd.f32 %v4754_v2, %v4642_v53  ;;  %v4849_v10 = vadd.f32 %v8778_v12, %v4753_v21  ;;  %v4646_v51 = vadd.f32 %v4645_v18, %v8707_v4  ;;  %v9157_v4 = vld [vmem:[#allocation68_spill] sm:$0xff]  ;;  %v4444_v2 = vadd.f32 %v8738_v24, %v9158_v34 }
 0x3c6   : > { %v4758_v48 = vpop.f32.mrf.mxu1  ;;  %v4647_v0 = vpop.f32.mrf.mxu0  ;;  %v4436_v3 = vadd.f32 %v8730_v5, %v9157_v4 }
 0x3c7   : > { %v4850_v56 = vadd.f32 %v8772_v20, %v4755_v36  ;;  %v4648_v6 = vadd.f32 %v4647_v0, %v8712_v60  ;;  %v4897_v55 = vpack.c.bf16 %v4849_v10, %v4845_v13  ;;  %v4759_v60 = vadd.f32 %v4758_v48, %v4646_v51 }
 0x3c8   : > { %v4760_v41 = vpop.f32.mrf.mxu1  ;;  %v4649_v25 = vpop.f32.mrf.mxu0  ;;  %v4549_v5 = vadd.f32 %v8732_v40, %v4436_v3 }
 0x3c9   : > { %v4650_v14 = vadd.f32 %v4649_v25, %v4537_v37  ;;  %v4898_v63 = vpack.c.bf16 %v4850_v56, %v4846_v31  ;;  %v4761_v8 = vadd.f32 %v4760_v41, %v4648_v6  ;;  %v4853_v46 = vadd.f32 %v8778_v12, %v4759_v60 }
 0x3ca   : > { %v4762_v26 = vpop.f32.mrf.mxu1  ;;  %v4651_v28 = vpop.f32.mrf.mxu0  ;;  %v4557_v56 = vadd.f32 %v8742_v42, %v4444_v2  ;;  %v9160_v42 = vld [vmem:[#allocation78_spill] sm:$0xff] }
 0x3cb   : > { %v4763_v7 = vadd.f32 %v4762_v26, %v4650_v14  ;;  %v4652_v27 = vadd.f32 %v4651_v28, %v4539_v54  ;;  %5331 = vmatprep.mubr.bf16.mxu1 %v4898_v63  ;;  %v4854_v44 = vadd.f32 %v8772_v20, %v4761_v8  ;;  %v4454_v58 = vadd.f32 %v8752_v23, %v9160_v42 }
 0x3cc   : > { %v4764_v19 = vpop.f32.mrf.mxu1  ;;  %v4655_v30 = vpop.f32.mrf.mxu0  ;;  %5332 = vmatmul.mubr.bf16.gmra.mxu1 %v4897_v55 }
 0x3cd   : > { %v4765_v11 = vadd.f32 %v4764_v19, %v4652_v27  ;;  %v4857_v32 = vadd.f32 %v8778_v12, %v4763_v7  ;;  %v4656_v1 = vadd.f32 %v4655_v30, %v8721_v17  ;;  %v9159_v17 = vld [vmem:[#allocation74_spill] sm:$0xff] }
 0x3ce   : > { %v4768_v38 = vpop.f32.mrf.mxu1  ;;  %v4657_v62 = vpop.f32.mrf.mxu0  ;;  %v4446_v48 = vadd.f32 %v8744_v16, %v9159_v17 }
 0x3cf   : > { %v4858_v50 = vadd.f32 %v8772_v20, %v4765_v11  ;;  %v4658_v39 = vadd.f32 %v4657_v62, %v8726_v35  ;;  %v4901_v21 = vpack.c.bf16 %v4857_v32, %v4853_v46  ;;  %v4769_v35 = vadd.f32 %v4768_v38, %v4656_v1  ;;  %v9162_v11 = vld [vmem:[#allocation30_spill] sm:$0xff]  ;;  %v9163_v62 = vld [vmem:[#allocation29_spill] sm:$0xff] }
 0x3d0   : > { %v4770_v59 = vpop.f32.mrf.mxu1  ;;  %v4659_v47 = vpop.f32.mrf.mxu0  ;;  %v4559_v16 = vadd.f32 %v8746_v57, %v4446_v48  ;;  %v4567_v32 = vadd.f32 %v9162_v11, %v4454_v58 }
 0x3d1   : > { %v4660_v52 = vadd.f32 %v4659_v47, %v4547_v29  ;;  %v4902_v43 = vpack.c.bf16 %v4858_v50, %v4854_v44  ;;  %v4771_v18 = vadd.f32 %v4770_v59, %v4658_v39  ;;  %v4861_v51 = vadd.f32 %v8778_v12, %v4769_v35  ;;  %v9164_v50 = vld [vmem:[#allocation27_spill] sm:$0xff] }
 0x3d2   : > { %v4772_v53 = vpop.f32.mrf.mxu1  ;;  %v4661_v61 = vpop.f32.mrf.mxu0 }
 0x3d3   : > { %v4773_v49 = vadd.f32 %v4772_v53, %v4660_v52  ;;  %v4662_v22 = vadd.f32 %v4661_v61, %v4549_v5  ;;  %5339 = vmatprep.mubr.bf16.mxu1 %v4902_v43  ;;  %v4862_v24 = vadd.f32 %v8772_v20, %v4771_v18 }
 0x3d4   : > { %v4774_v36 = vpop.f32.mrf.mxu1  ;;  %v4665_v10 = vpop.f32.mrf.mxu0  ;;  %5340 = vmatmul.mubr.bf16.gmra.mxu1 %v4901_v21 }
 0x3d5   : > { %v4775_v40 = vadd.f32 %v4774_v36, %v4662_v22  ;;  %v4865_v0 = vadd.f32 %v8778_v12, %v4773_v49  ;;  %v4666_v41 = vadd.f32 %v4665_v10, %v8735_v45  ;;  %v9161_v45 = vld [vmem:[#allocation80_spill] sm:$0xff] }
 0x3d6   : > { %v4778_v37 = vpop.f32.mrf.mxu1  ;;  %v4667_v31 = vpop.f32.mrf.mxu0  ;;  %v4456_v19 = vadd.f32 %v8758_v9, %v9161_v45  ;;  %v9165_v9 = vld [vmem:[#allocation32_spill] sm:$0xff] }
 0x3d7   : > { %v4866_v6 = vadd.f32 %v8772_v20, %v4775_v40  ;;  %v4668_v13 = vadd.f32 %v4667_v31, %v8740_v15  ;;  %v4905_v55 = vpack.c.bf16 %v4865_v0, %v4861_v51  ;;  %v4779_v15 = vadd.f32 %v4778_v37, %v4666_v41 }
 0x3d8   : > { %v4780_v25 = vpop.f32.mrf.mxu1  ;;  %v4669_v54 = vpop.f32.mrf.mxu0  ;;  %v4569_v59 = vadd.f32 %v9165_v9, %v4456_v19 }
 0x3d9   : > { %v4670_v14 = vadd.f32 %v4669_v54, %v4557_v56  ;;  %v4906_v63 = vpack.c.bf16 %v4866_v6, %v4862_v24  ;;  %v4781_v33 = vadd.f32 %v4780_v25, %v4668_v13  ;;  %v4869_v44 = vadd.f32 %v8778_v12, %v4779_v15 }
 0x3da   : > { %v4782_v26 = vpop.f32.mrf.mxu1  ;;  %v4671_v28 = vpop.f32.mrf.mxu0 }
 0x3db   : > { %v4783_v8 = vadd.f32 %v4782_v26, %v4670_v14  ;;  %v4672_v7 = vadd.f32 %v4671_v28, %v4559_v16  ;;  %5347 = vmatprep.mubr.bf16.mxu1 %v4906_v63  ;;  %v4870_v23 = vadd.f32 %v8772_v20, %v4781_v33  ;;  %v8873_v33 = vld [vmem:[%s8971_s11] ss:$0 sm:$0xff] }
 0x3dc   : > { %v4784_v27 = vpop.f32.mrf.mxu1  ;;  %v4675_v60 = vpop.f32.mrf.mxu0  ;;  %5348 = vmatmul.mubr.bf16.gmra.mxu1 %v4905_v55 }
 0x3dd   : > { %v4785_v57 = vadd.f32 %v4784_v27, %v4672_v7  ;;  %v4873_v30 = vadd.f32 %v8778_v12, %v4783_v8  ;;  %v4676_v39 = vadd.f32 %v4675_v60, %v9164_v50 }
 0x3de   : > { %v4788_v4 = vpop.f32.mrf.mxu1  ;;  %v4677_v3 = vpop.f32.mrf.mxu0 }
 0x3df   : > { %v4874_v38 = vadd.f32 %v8772_v20, %v4785_v57  ;;  %v4678_v29 = vadd.f32 %v4677_v3, %v9163_v62  ;;  %v4909_v52 = vpack.c.bf16 %v4873_v30, %v4869_v44  ;;  %v4789_v2 = vadd.f32 %v4788_v4, %v4676_v39 }
 0x3e0   : > { %v4790_v46 = vpop.f32.mrf.mxu1  ;;  %v4679_v1 = vpop.f32.mrf.mxu0 }
 0x3e1   : > { %v4680_v47 = vadd.f32 %v4679_v1, %v4567_v32  ;;  %v4910_v5 = vpack.c.bf16 %v4874_v38, %v4870_v23  ;;  %v4791_v53 = vadd.f32 %v4790_v46, %v4678_v29  ;;  %v4877_v10 = vadd.f32 %v8778_v12, %v4789_v2 }
 0x3e2   : > { %v4792_v43 = vpop.f32.mrf.mxu1  ;;  %v4681_v21 = vpop.f32.mrf.mxu0 }
 0x3e3   : > { %v4793_v61 = vadd.f32 %v4792_v43, %v4680_v47  ;;  %v4682_v34 = vadd.f32 %v4681_v21, %v4569_v59  ;;  %5355 = vmatprep.mubr.bf16.mxu1 %v4910_v5  ;;  %v4878_v35 = vadd.f32 %v8772_v20, %v4791_v53 }
 0x3e4   : > { %v4794_v18 = vpop.f32.mrf.mxu1  ;;  %5356 = vmatmul.mubr.bf16.gmra.mxu1 %v4909_v52 }
 0x3e5   : > { %v4795_v49 = vadd.f32 %v4794_v18, %v4682_v34  ;;  %v4881_v22 = vadd.f32 %v8778_v12, %v4793_v61 }
 0x3e7   : > { %v4882_v36 = vadd.f32 %v8772_v20, %v4795_v49  ;;  %v4913_v48 = vpack.c.bf16 %v4881_v22, %v4877_v10 }
 0x3e9   : > { %v4914_v17 = vpack.c.bf16 %v4882_v36, %v4878_v35 }
 0x3eb   : > { %5363 = vmatprep.mubr.bf16.mxu1 %v4914_v17 }
 0x3ec   : > { %5364 = vmatmul.mubr.bf16.gmra.mxu1 %v4913_v48 }
 0x3f4   : > { %v6060_v40 = vpop.f32.mrf.mxu0 }
 0x3f6   : > { %v6061_v0 = vpop.f32.mrf.mxu0 }
 0x3f7   : > { %v6062_v42 = vadd.f32 %v6061_v0, %v6060_v40 }
 0x3f8   : > { %v6063_v37 = vpop.f32.mrf.mxu0 }
 0x3f9   : > { %v5213_v60 = vadd.f32 %v6062_v42, %v8873_v33 }
 0x3fa   : > { %v6064_v31 = vpop.f32.mrf.mxu0 }
 0x3fb   : > { %v6065_v58 = vadd.f32 %v6064_v31, %v6063_v37 }
 0x3fc   : > { %v6066_v56 = vpop.f32.mrf.mxu0 }
 0x3fd   : > { %v5216_v45 = vadd.f32 %v6065_v58, %v8873_v33 }
 0x3fe   : > { %v6067_v24 = vpop.f32.mrf.mxu0 }
 0x3ff   : > { %v6068_v32 = vadd.f32 %v6067_v24, %v6066_v56 }
 0x400   : > { %v6069_v6 = vpop.f32.mrf.mxu0 }
 0x401   : > { %v5221_v39 = vadd.f32 %v6068_v32, %v8873_v33 }
 0x402   : > { %v6070_v13 = vpop.f32.mrf.mxu0 }
 0x403   : > { %v6071_v23 = vadd.f32 %v6070_v13, %v6069_v6 }
 0x404   : > { %v6072_v51 = vpop.f32.mrf.mxu0 }
 0x405   : > { %v5224_v46 = vadd.f32 %v6071_v23, %v8873_v33 }
 0x406   : > { %v6073_v41 = vpop.f32.mrf.mxu0 }
 0x407   : > { %v6074_v43 = vadd.f32 %v6073_v41, %v6072_v51 }
 0x408   : > { %v6075_v25 = vpop.f32.mrf.mxu0 }
 0x409   : > { %v5229_v49 = vadd.f32 %v6074_v43, %v8873_v33 }
 0x40a   : > { %v6076_v54 = vpop.f32.mrf.mxu0 }
 0x40b   : > { %v6077_v21 = vadd.f32 %v6076_v54, %v6075_v25 }
 0x40c   : > { %v6078_v20 = vpop.f32.mrf.mxu0 }
 0x40d   : > { %v5232_v22 = vadd.f32 %v6077_v21, %v8873_v33 }
 0x40e   : > { %v6079_v16 = vpop.f32.mrf.mxu0 }
 0x40f   : > { %v6080_v0 = vadd.f32 %v6079_v16, %v6078_v20 }
 0x410   : > { %v6081_v12 = vpop.f32.mrf.mxu0 }
 0x411   : > { %v5237_v51 = vadd.f32 %v6080_v0, %v8873_v33 }
 0x412   : > { %v6082_v14 = vpop.f32.mrf.mxu0 }
 0x413   : > { %v6083_v37 = vadd.f32 %v6082_v14, %v6081_v12 }
 0x414   : > { %v8866_v63 = vpop.f32.mrf.mxu0 }
 0x415   : > { %v5240_v41 = vadd.f32 %v6083_v37, %v8873_v33 }
 0x416   : > { %v8868_v55 = vpop.f32.mrf.mxu0 }
 0x417   : > { %v6086_v20 = vadd.f32 %v8868_v55, %v8866_v63 }
 0x418   : > { %v8875_v8 = vpop.f32.mrf.mxu0 }
 0x41a   : > { %v6088_v57 = vpop.f32.mrf.mxu0 }
 0x41b   : > { %v6089_v16 = vadd.f32 %v6088_v57, %v8875_v8 }
 0x41c   : > { %v6090_v62 = vpop.f32.mrf.mxu0 }
 0x41e   : > { %v6091_v9 = vpop.f32.mrf.mxu0 }
 0x41f   : > { %v6092_v63 = vadd.f32 %v6091_v9, %v6090_v62 }
 0x420   : > { %v6093_v61 = vpop.f32.mrf.mxu0 }
 0x422   : > { %v6094_v36 = vpop.f32.mrf.mxu0 }
 0x423   : > { %v6095_v55 = vadd.f32 %v6094_v36, %v6093_v61 }
 0x424   : > { %v6096_v56 = vpop.f32.mrf.mxu0 }
 0x426   : > { %v6097_v54 = vpop.f32.mrf.mxu0 }
 0x428   : > { %v6099_v14 = vpop.f32.mrf.mxu0 }
 0x474   : > { %v6124_v26 = vpop.f32.mrf.mxu1 }
 0x476   : > { %v6125_v28 = vpop.f32.mrf.mxu1 }
 0x477   : > { %v6126_v15 = vadd.f32 %v6125_v28, %v6124_v26 }
 0x478   : > { %v6127_v7 = vpop.f32.mrf.mxu1 }
 0x479   : > { %v5310_v4 = vadd.f32 %v6126_v15, %v5213_v60  ;;  %v5245_v60 = vadd.f32 %v6086_v20, %v8873_v33 }
 0x47a   : > { %v6128_v27 = vpop.f32.mrf.mxu1 }
 0x47b   : > { %v6129_v19 = vadd.f32 %v6128_v27, %v6127_v7 }
 0x47c   : > { %v6130_v30 = vpop.f32.mrf.mxu1 }
 0x47d   : > { %v5313_v3 = vadd.f32 %v6129_v19, %v5216_v45  ;;  %v5248_v45 = vadd.f32 %v6089_v16, %v8873_v33 }
 0x47e   : > { %v6131_v11 = vpop.f32.mrf.mxu1 }
 0x47f   : > { %v6000_v38 = vpack.c.bf16 %v5313_v3, %v5310_v4  ;;  %v6132_v44 = vadd.f32 %v6131_v11, %v6130_v30  ;;  %v6100_v30 = vpop.f32.mrf.mxu0 }
 0x480   : > { %v6133_v29 = vpop.f32.mrf.mxu1  ;;  %v6101_v62 = vadd.f32 %v6100_v30, %v6099_v14 }
 0x481   : > { %6001 = vst [vmem:[%s8882_s26] sm:$0xff] %v6000_v38   ;;  %v5318_v47 = vadd.f32 %v6132_v44, %v5221_v39  ;;  %v6102_v57 = vpop.f32.mrf.mxu0  ;;  %v5253_v44 = vadd.f32 %v6092_v63, %v8873_v33 }
 0x482   : > { %v6134_v50 = vpop.f32.mrf.mxu1 }
 0x483   : > { %v6135_v1 = vadd.f32 %v6134_v50, %v6133_v29  ;;  %v5256_v50 = vadd.f32 %v6095_v55, %v8873_v33 }
 0x484   : > { %v6136_v59 = vpop.f32.mrf.mxu1 }
 0x485   : > { %v5321_v5 = vadd.f32 %v6135_v1, %v5224_v46  ;;  %v6103_v46 = vpop.f32.mrf.mxu0 }
 0x486   : > { %v6137_v52 = vpop.f32.mrf.mxu1 }
 0x487   : > { %v6005_v53 = vpack.c.bf16 %v5321_v5, %v5318_v47  ;;  %v6138_v2 = vadd.f32 %v6137_v52, %v6136_v59  ;;  %v6098_v52 = vadd.f32 %v6097_v54, %v6096_v56  ;;  %v6105_v43 = vpop.f32.mrf.mxu0 }
 0x488   : > { %v6139_v34 = vpop.f32.mrf.mxu1 }
 0x489   : > { %6037 = vst [vmem:[%s8882_s26 + $0x8] sm:$0xff] %v6005_v53   ;;  %v5326_v17 = vadd.f32 %v6138_v2, %v5229_v49  ;;  %v5264_v2 = vadd.f32 %v6101_v62, %v8873_v33  ;;  %v6106_v49 = vpop.f32.mrf.mxu0 }
 0x48a   : > { %v6140_v18 = vpop.f32.mrf.mxu1 }
 0x48b   : > { %v6141_v35 = vadd.f32 %v6140_v18, %v6139_v34  ;;  %v5261_v34 = vadd.f32 %v6098_v52, %v8873_v33 }
 0x48c   : > { %v6142_v10 = vpop.f32.mrf.mxu1 }
 0x48d   : > { %v5329_v48 = vadd.f32 %v6141_v35, %v5232_v22 }
 0x48e   : > { %v6143_v40 = vpop.f32.mrf.mxu1 }
 0x48f   : > { %v6010_v31 = vpack.c.bf16 %v5329_v48, %v5326_v17  ;;  %v6144_v6 = vadd.f32 %v6143_v40, %v6142_v10  ;;  %v6104_v17 = vadd.f32 %v6103_v46, %v6102_v57  ;;  %v6107_v48 = vadd.f32 %v6106_v49, %v6105_v43 }
 0x490   : > { %v6145_v24 = vpop.f32.mrf.mxu1 }
 0x491   : > { %6038 = vst [vmem:[%s8882_s26 + $0x10] sm:$0xff] %v6010_v31   ;;  %v5334_v28 = vadd.f32 %v6144_v6, %v5237_v51  ;;  %v5269_v56 = vadd.f32 %v6104_v17, %v8873_v33 }
 0x492   : > { %v6146_v13 = vpop.f32.mrf.mxu1 }
 0x493   : > { %v6147_v25 = vadd.f32 %v6146_v13, %v6145_v24  ;;  %v5272_v24 = vadd.f32 %v6107_v48, %v8873_v33 }
 0x494   : > { %v6148_v26 = vpop.f32.mrf.mxu1 }
 0x495   : > { %v5337_v42 = vadd.f32 %v6147_v25, %v5240_v41 }
 0x496   : > { %v6149_v58 = vpop.f32.mrf.mxu1 }
 0x497   : > { %v6015_v12 = vpack.c.bf16 %v5337_v42, %v5334_v28  ;;  %v6150_v15 = vadd.f32 %v6149_v58, %v6148_v26 }
 0x498   : > { %v6151_v7 = vpop.f32.mrf.mxu1 }
 0x499   : > { %6039 = vst [vmem:[%s8882_s26 + $0x18] sm:$0xff] %v6015_v12   ;;  %v5342_v3 = vadd.f32 %v6150_v15, %v5245_v60 }
 0x49a   : > { %v6152_v27 = vpop.f32.mrf.mxu1 }
 0x49b   : > { %v6153_v19 = vadd.f32 %v6152_v27, %v6151_v7 }
 0x49c   : > { %v6154_v4 = vpop.f32.mrf.mxu1 }
 0x49d   : > { %v5345_v11 = vadd.f32 %v6153_v19, %v5248_v45 }
 0x49e   : > { %v6155_v32 = vpop.f32.mrf.mxu1 }
 0x49f   : > { %v6020_v8 = vpack.c.bf16 %v5345_v11, %v5342_v3  ;;  %v6156_v38 = vadd.f32 %v6155_v32, %v6154_v4 }
 0x4a0   : > { %v6157_v23 = vpop.f32.mrf.mxu1 }
 0x4a1   : > { %6040 = vst [vmem:[%s8882_s26 + $0x20] sm:$0xff] %v6020_v8   ;;  %v5350_v59 = vadd.f32 %v6156_v38, %v5253_v44 }
 0x4a2   : > { %v6158_v29 = vpop.f32.mrf.mxu1 }
 0x4a3   : > { %v6159_v39 = vadd.f32 %v6158_v29, %v6157_v23 }
 0x4a4   : > { %v6160_v1 = vpop.f32.mrf.mxu1 }
 0x4a5   : > { %v5353_v47 = vadd.f32 %v6159_v39, %v5256_v50 }
 0x4a6   : > { %v6161_v5 = vpop.f32.mrf.mxu1 }
 0x4a7   : > { %v6025_v9 = vpack.c.bf16 %v5353_v47, %v5350_v59  ;;  %v6162_v53 = vadd.f32 %v6161_v5, %v6160_v1 }
 0x4a8   : > { %v6163_v21 = vpop.f32.mrf.mxu1 }
 0x4a9   : > { %6041 = vst [vmem:[%s8882_s26 + $0x28] sm:$0xff] %v6025_v9   ;;  %v5358_v35 = vadd.f32 %v6162_v53, %v5261_v34 }
 0x4aa   : > { %v6164_v61 = vpop.f32.mrf.mxu1 }
 0x4ab   : > { %v6165_v18 = vadd.f32 %v6164_v61, %v6163_v21 }
 0x4ac   : > { %v6166_v22 = vpop.f32.mrf.mxu1 }
 0x4ad   : > { %v5361_v36 = vadd.f32 %v6165_v18, %v5264_v2 }
 0x4ae   : > { %v6167_v10 = vpop.f32.mrf.mxu1 }
 0x4af   : > { %v6030_v40 = vpack.c.bf16 %v5361_v36, %v5358_v35  ;;  %v6168_v37 = vadd.f32 %v6167_v10, %v6166_v22 }
 0x4b0   : > { %v6169_v0 = vpop.f32.mrf.mxu1 }
 0x4b1   : > { %6042 = vst [vmem:[%s8882_s26 + $0x30] sm:$0xff] %v6030_v40   ;;  %v5366_v13 = vadd.f32 %v6168_v37, %v5269_v56 }
 0x4b2   : > { %v6170_v31 = vpop.f32.mrf.mxu1 }
 0x4b3   : > { %v6171_v6 = vadd.f32 %v6170_v31, %v6169_v0 }
 0x4b5   : > { %v5369_v51 = vadd.f32 %v6171_v6, %v5272_v24 }
 0x4b7   : > { %v6035_v41 = vpack.c.bf16 %v5369_v51, %v5366_v13 }
 0x4b9   : > { %6043 = vst [vmem:[%s8882_s26 + $0x38] sm:$0xff] %v6035_v41  }
 0x4ba   : > { %6823 = shalt.err (!%p6820_p0)
}
 0x4bb   : > { %s6824_s20 = scalar_lea.hbm %s8913_s27, 1024  ;;  %s6828_s26 = scalar_lea.hbm %s8972_s12, 2048 }
 0x4bc   : > { %p6825_p1 = scmp.ne.s32.totalorder %s8913_s27, %s6824_s20  ;;  %p6829_p4 = scmp.lt.s32.totalorder %s8913_s27, %s8972_s12 }
 0x4bd   : > { %p6830_p10 = scmp.lt.s32.totalorder %s6828_s26, %s6824_s20 }
 0x4be   : > { %p6826_p2 = pnand %p6825_p1, %p6997_p5 }
 0x4bf   : > { %p6831_p9 = por %p6830_p10, %p6829_p4 }
 0x4c0   : > { %p6827_p3 = pneg %p6826_p2 }
 0x4c2   : > { %p6832_p12 = pnand %p6831_p9, %p6827_p3 }
 0x4c4   : > { %6835 = shalt.err (!%p6832_p12)
}
 0x4c5   : > { %s6892_s23 = smov 64   ;;  %s6893_s14 = smov 4  }
 0x4c6   : > { %6184 = dma.vmem_to_hbm [thread:$0]  (%p6997_p5), %s8915_s16, 1024, %s8913_s27, %s8920_s30, %s6892_s23, %s6892_s23, %s6893_s14  }
 0x4c7 PF: > { %p6206_p13 = scmp.ge.s32.totalorder %s6878_s24, 2  ;;  %s5481_s15 = sand.u32 1, %s6866_s21  }
 0x4c8   : > { %s5482_s18 = scalar_lea.sflag [#allocation4], %s5481_s15 }
 0x4c9   : > { %p6197_p7 = pnand %p6206_p13, %p7001_p6 }
 0x4cb   : > { %p6198_p8 = pneg %p6197_p7 }
 0x4cd   : > { %6861 = dma.done.wait (%p6198_p8), %s5482_s18, 1024  }
 0x4ce   : > { %6863 = vsyncadd (%p6198_p8), %s5482_s18, 4294966272  ;;  %s9167_s24 = sld [smem:[#allocation13_spill]]  ;;  %s9170_s21 = smov %s6870_s22 }
 0x4cf   : > { %s9168_s20 = sld [smem:[#allocation12_spill]] }
 0x4d0   : > { %s9169_s23 = sld [smem:[#allocation14_spill]] }
 0x4d4   : > { %p24_p11 = scmp.ge.s32.totalorder %s9167_s24, 4  }
 0x4d5   : > { %s9171_s22 = smov %s9168_s20 }
 0x4d6   :  { %26 = sbr.rel (!%p24_p11) target bundleno = 5 (0x5), region = 116 }
 0x4db   :  { %5487 = vsyncpa [#allocation3], 1 }
 0x4dc   :  { %5489 = vsyncpa [#allocation3 + $0x1], 1 }
 0x4dd   :  { %5490 = vsyncpa [#allocation6], 1 }
 0x4de   :  { %5491 = vsyncpa [#allocation4], 1 }
 0x4df   :  { %5493 = vsyncpa [#allocation4 + $0x1], 1 }

</bundles_post_ra>
